<compile_context>
chip_gen: v6e
topology: v6e:2x2x1
jax: 0.10.0
libtpu: 0.0.40
codegen_flags: <defaults>
</compile_context>

<pallas_src>
import math
import functools

import jax
import jax.numpy as jnp
from jax import lax
from jax.experimental import pallas as pl
from jax.experimental.pallas import tpu as pltpu


def _det_head_kernel(x_ref, w1_ref, b1_ref, w2_ref, b2_ref, o_ref, xpad_ref):
    """Single grid step over the whole (small) problem.

    x_ref:    (N, H, W, Cin)      NHWC input, un-padded, float32
    w1_ref:   (9*Cin, Hid)        3x3 conv weights, tap-major, BN-scale folded
    b1_ref:   (1, Hid)            folded bias:  b1*scale + shift   (float32)
    w2_ref:   (Hid, 128)          1x1 conv weights, lane-padded to 128
    b2_ref:   (1, 128)            conv2 bias, lane-padded
    o_ref:    (N*H*W, 128)        lane-dense output slab (float32)
    xpad_ref: (N, H+2, W+2, Cin)  VMEM scratch holding the zero-padded halo
    """
    N, H, W, Cin = x_ref.shape
    cdt = w1_ref.dtype  # compute dtype for MXU operands (bf16 or f32)

    # Build the zero-padded activation once in VMEM (replaces the wrapper-side
    # jnp.pad, which cost a full extra HBM read+write pass).
    xpad_ref[...] = jnp.zeros_like(xpad_ref)
    xpad_ref[:, 1:H + 1, 1:W + 1, :] = x_ref[...]

    # im2col: pack the 9 taps along the channel axis -> one K = 9*Cin matmul
    # instead of nine K = Cin matmuls (MXU depth utilization, 1 push sequence).
    taps = [xpad_ref[:, dy:dy + H, dx:dx + W, :]
            for dy in range(3) for dx in range(3)]
    patch = jnp.concatenate(taps, axis=-1).reshape(N * H * W, 9 * Cin)

    # conv1 (+ folded bias/BN) + ReLU.
    acc = jnp.dot(patch.astype(cdt), w1_ref[...],
                  preferred_element_type=jnp.float32)
    h = jnp.maximum(acc + b1_ref[...], 0.0)

    # 1x1 conv == matmul into a 128-lane-padded output slab + bias.
    out = jnp.dot(h.astype(w2_ref.dtype), w2_ref[...],
                  preferred_element_type=jnp.float32) + b2_ref[...]
    o_ref[...] = out.astype(o_ref.dtype)


@functools.partial(jax.jit, static_argnames=("use_bf16",))
def pan_pp_det_head_forward(f_nchw, params, use_bf16=True):
    """PAN_PP_DetHead forward.  Input/output are NCHW (PyTorch semantics)."""
    w1 = params["conv1_w"]        # (Hid, Cin, 3, 3)  OIHW
    b1 = params["conv1_b"]        # (Hid,)
    gamma = params["bn_gamma"]    # (Hid,)
    beta = params["bn_beta"]      # (Hid,)
    mean = params["bn_mean"]      # (Hid,)
    var = params["bn_var"]        # (Hid,)
    eps = params["bn_eps"]
    w2 = params["conv2_w"]        # (Cout, Hid, 1, 1) OIHW
    b2 = params["conv2_b"]        # (Cout,)

    N, Cin, H, W = f_nchw.shape
    Hid = w1.shape[0]
    Cout = w2.shape[0]
    CP = 128                       # lane-padded output channel count
    cdt = jnp.bfloat16 if use_bf16 else jnp.float32

    # --- glue: layout / parameter prep in plain JAX -------------------------
    x_nhwc = jnp.transpose(f_nchw, (0, 2, 3, 1))                 # NCHW -> NHWC

    # Fold eval-mode BN (and the conv1 bias) into conv1:
    #   y = ((conv(x) + b1) - mean)/sqrt(var+eps)*gamma + beta
    #     =  conv(x) * scale + (b1*scale + shift)
    scale = gamma / jnp.sqrt(var + eps)
    shift = beta - mean * scale
    # (Hid, Cin, 3, 3) -> (3, 3, Cin, Hid) -> (9*Cin, Hid), then scale out-ch.
    w1_taps = jnp.transpose(w1, (2, 3, 1, 0)).reshape(9 * Cin, Hid)
    w1_folded = (w1_taps * scale[None, :]).astype(cdt)
    b1_folded = (b1 * scale + shift).reshape(1, Hid).astype(jnp.float32)

    # (Cout, Hid, 1, 1) -> (Hid, Cout), lane-pad Cout -> 128 with zeros.
    w2_mat = jnp.transpose(w2[:, :, 0, 0], (1, 0))
    w2_pad = jnp.zeros((Hid, CP), cdt).at[:, :Cout].set(w2_mat.astype(cdt))
    b2_pad = jnp.zeros((1, CP), jnp.float32).at[:, :Cout].set(
        b2.astype(jnp.float32))

    # --- hot path: Pallas kernel --------------------------------------------
    out_slab = pl.pallas_call(
        _det_head_kernel,
        out_shape=jax.ShapeDtypeStruct((N * H * W, CP), jnp.float32),
        grid_spec=pltpu.PrefetchScalarGridSpec(
            num_scalar_prefetch=0,
            grid=(1,),
            in_specs=[
                pl.BlockSpec((N, H, W, Cin), lambda i: (0, 0, 0, 0)),
                pl.BlockSpec((9 * Cin, Hid), lambda i: (0, 0)),
                pl.BlockSpec((1, Hid), lambda i: (0, 0)),
                pl.BlockSpec((Hid, CP), lambda i: (0, 0)),
                pl.BlockSpec((1, CP), lambda i: (0, 0)),
            ],
            out_specs=pl.BlockSpec((N * H * W, CP), lambda i: (0, 0)),
            scratch_shapes=[
                pltpu.VMEM((N, H + 2, W + 2, Cin), jnp.float32),
            ],
        ),
        compiler_params=pltpu.CompilerParams(
            dimension_semantics=("arbitrary",)),
    )(x_nhwc, w1_folded, b1_folded, w2_pad, b2_pad)

    # Slice back to the real channel count and restore NCHW.
    out_nhwc = out_slab[:, :Cout].reshape(N, H, W, Cout)
    return jnp.transpose(out_nhwc, (0, 3, 1, 2))


def init_params(key, in_channels, hidden_dim, num_classes):
    """Deterministic init matching the PyTorch module's __init__ shapes/scheme."""
    k1, k2, k3, k4 = jax.random.split(key, 4)
    # conv weights: normal(0, sqrt(2 / (kh*kw*out_ch)))  (as in the module)
    std1 = math.sqrt(2.0 / (3 * 3 * hidden_dim))
    std2 = math.sqrt(2.0 / (1 * 1 * num_classes))
    conv1_w = std1 * jax.random.normal(k1, (hidden_dim, in_channels, 3, 3),
                                       jnp.float32)
    conv2_w = std2 * jax.random.normal(k2, (num_classes, hidden_dim, 1, 1),
                                       jnp.float32)
    conv1_b = 0.01 * jax.random.normal(k3, (hidden_dim,), jnp.float32)
    conv2_b = 0.01 * jax.random.normal(k4, (num_classes,), jnp.float32)
    return {
        "conv1_w": conv1_w, "conv1_b": conv1_b,
        "bn_gamma": jnp.ones((hidden_dim,), jnp.float32),
        "bn_beta": jnp.zeros((hidden_dim,), jnp.float32),
        "bn_mean": jnp.zeros((hidden_dim,), jnp.float32),
        "bn_var": jnp.ones((hidden_dim,), jnp.float32),
        "bn_eps": jnp.float32(1e-5),
        "conv2_w": conv2_w, "conv2_b": conv2_b,
    }


def _reference_forward(f_nchw, params):
    """Pure-JAX reference (lax.conv) for a correctness check."""
    w1, b1 = params["conv1_w"], params["conv1_b"]
    w2, b2 = params["conv2_w"], params["conv2_b"]
    dn = ("NCHW", "OIHW", "NCHW")
    h = lax.conv_general_dilated(f_nchw, w1, (1, 1), ((1, 1), (1, 1)),
                                 dimension_numbers=dn)
    h = h + b1[None, :, None, None]
    scale = params["bn_gamma"] / jnp.sqrt(params["bn_var"] + params["bn_eps"])
    shift = params["bn_beta"] - params["bn_mean"] * scale
    h = h * scale[None, :, None, None] + shift[None, :, None, None]
    h = jnp.maximum(h, 0.0)
    o = lax.conv_general_dilated(h, w2, (1, 1), ((0, 0), (0, 0)),
                                 dimension_numbers=dn)
    return o + b2[None, :, None, None]


if __name__ == "__main__":
    # Small shapes: batch=2, in_channels=4, hidden_dim=32, spatial=16x16,
    # num_classes=6 (text + kernel + 4-d embedding), per PAN++ convention.
    N, Cin, H, W = 2, 4, 16, 16
    hidden_dim, num_classes = 32, 6

    key = jax.random.PRNGKey(0)
    kx, kp = jax.random.split(key)
    x = jax.random.normal(kx, (N, Cin, H, W), jnp.float32)
    params = init_params(kp, Cin, hidden_dim, num_classes)

    ref = _reference_forward(x, params)

    # 1) fp32 path: tight check of im2col indexing / BN-fold / lane-padding.
    out_f32 = jax.block_until_ready(
        pan_pp_det_head_forward(x, params, use_bf16=False))
    assert out_f32.shape == (N, num_classes, H, W), out_f32.shape
    err_f32 = float(jnp.max(jnp.abs(out_f32 - ref)))
    assert err_f32 < 2e-4, err_f32

    # 2) bf16-MXU path (default, per perf review): loose tolerance accounts
    #    for bf16 operand rounding; still catches any structural bug.
    out_bf16 = jax.block_until_ready(
        pan_pp_det_head_forward(x, params, use_bf16=True))
    assert out_bf16.shape == (N, num_classes, H, W), out_bf16.shape
    err_bf16 = float(jnp.max(jnp.abs(out_bf16 - ref)))
    assert err_bf16 < 1.5e-1, err_bf16

    print("KERNEL_OK")
</pallas_src>

<mosaic_0001>
module attributes {stable_mosaic.version = 11 : i64} {
  func.func @_det_head_kernel(%arg0: i32, %arg1: memref<2x16x16x4xf32, #tpu.memory_space<vmem>>, %arg2: memref<36x32xf32, #tpu.memory_space<vmem>>, %arg3: memref<1x32xf32, #tpu.memory_space<vmem>>, %arg4: memref<32x128xf32, #tpu.memory_space<vmem>>, %arg5: memref<1x128xf32, #tpu.memory_space<vmem>>, %arg6: memref<512x128xf32, #tpu.memory_space<vmem>>, %arg7: memref<2x18x18x4xf32, #tpu.memory_space<vmem>>) attributes {dimension_semantics = [#tpu.dimension_semantics<arbitrary>], iteration_bounds = array<i64: 1>, scalar_prefetch = 0 : i64, scratch_operands = 1 : i64, tpu.core_type = #tpu.core_type<tc>, window_params = [{pipeline_mode = #tpu.pipeline_mode<synchronous>, transform_indices = @transform_0, window_bounds = array<i64: 2, 16, 16, 4>}, {pipeline_mode = #tpu.pipeline_mode<synchronous>, transform_indices = @transform_1, window_bounds = array<i64: 36, 32>}, {pipeline_mode = #tpu.pipeline_mode<synchronous>, transform_indices = @transform_2, window_bounds = array<i64: 1, 32>}, {pipeline_mode = #tpu.pipeline_mode<synchronous>, transform_indices = @transform_3, window_bounds = array<i64: 32, 128>}, {pipeline_mode = #tpu.pipeline_mode<synchronous>, transform_indices = @transform_4, window_bounds = array<i64: 1, 128>}, {pipeline_mode = #tpu.pipeline_mode<synchronous>, transform_indices = @transform_5, window_bounds = array<i64: 512, 128>}]} {
    %cst = arith.constant 0.000000e+00 : f32
    %0 = vector.broadcast %cst : f32 to vector<2x18x18x4xf32>
    %c0 = arith.constant 0 : index
    %c0_0 = arith.constant 0 : index
    %c0_1 = arith.constant 0 : index
    %c0_2 = arith.constant 0 : index
    %1 = vector.load %arg7[%c0, %c0_0, %c0_1, %c0_2] : memref<2x18x18x4xf32, #tpu.memory_space<vmem>>, vector<2x18x18x4xf32>
    tpu.vector_store %arg7[%c0, %c0_0, %c0_1, %c0_2], %0 {strides = array<i32>} : memref<2x18x18x4xf32, #tpu.memory_space<vmem>>, vector<2x18x18x4xf32>,
    %c0_3 = arith.constant 0 : index
    %c0_4 = arith.constant 0 : index
    %c0_5 = arith.constant 0 : index
    %c0_6 = arith.constant 0 : index
    %2 = vector.load %arg1[%c0_3, %c0_4, %c0_5, %c0_6] : memref<2x16x16x4xf32, #tpu.memory_space<vmem>>, vector<2x16x16x4xf32>
    %c0_7 = arith.constant 0 : index
    %c1 = arith.constant 1 : index
    %c1_8 = arith.constant 1 : index
    %c0_9 = arith.constant 0 : index
    %3 = vector.load %arg7[%c0_7, %c1, %c1_8, %c0_9] : memref<2x18x18x4xf32, #tpu.memory_space<vmem>>, vector<2x16x16x4xf32>
    tpu.vector_store %arg7[%c0_7, %c1, %c1_8, %c0_9], %2 {strides = array<i32>} : memref<2x18x18x4xf32, #tpu.memory_space<vmem>>, vector<2x16x16x4xf32>,
    %c0_10 = arith.constant 0 : index
    %c0_11 = arith.constant 0 : index
    %c0_12 = arith.constant 0 : index
    %c0_13 = arith.constant 0 : index
    %4 = vector.load %arg7[%c0_10, %c0_11, %c0_12, %c0_13] : memref<2x18x18x4xf32, #tpu.memory_space<vmem>>, vector<2x16x16x4xf32>
    %c0_14 = arith.constant 0 : index
    %c0_15 = arith.constant 0 : index
    %c1_16 = arith.constant 1 : index
    %c0_17 = arith.constant 0 : index
    %5 = vector.load %arg7[%c0_14, %c0_15, %c1_16, %c0_17] : memref<2x18x18x4xf32, #tpu.memory_space<vmem>>, vector<2x16x16x4xf32>
    %c0_18 = arith.constant 0 : index
    %c0_19 = arith.constant 0 : index
    %c2 = arith.constant 2 : index
    %c0_20 = arith.constant 0 : index
    %6 = vector.load %arg7[%c0_18, %c0_19, %c2, %c0_20] : memref<2x18x18x4xf32, #tpu.memory_space<vmem>>, vector<2x16x16x4xf32>
    %c0_21 = arith.constant 0 : index
    %c1_22 = arith.constant 1 : index
    %c0_23 = arith.constant 0 : index
    %c0_24 = arith.constant 0 : index
    %7 = vector.load %arg7[%c0_21, %c1_22, %c0_23, %c0_24] : memref<2x18x18x4xf32, #tpu.memory_space<vmem>>, vector<2x16x16x4xf32>
    %c0_25 = arith.constant 0 : index
    %c1_26 = arith.constant 1 : index
    %c1_27 = arith.constant 1 : index
    %c0_28 = arith.constant 0 : index
    %8 = vector.load %arg7[%c0_25, %c1_26, %c1_27, %c0_28] : memref<2x18x18x4xf32, #tpu.memory_space<vmem>>, vector<2x16x16x4xf32>
    %c0_29 = arith.constant 0 : index
    %c1_30 = arith.constant 1 : index
    %c2_31 = arith.constant 2 : index
    %c0_32 = arith.constant 0 : index
    %9 = vector.load %arg7[%c0_29, %c1_30, %c2_31, %c0_32] : memref<2x18x18x4xf32, #tpu.memory_space<vmem>>, vector<2x16x16x4xf32>
    %c0_33 = arith.constant 0 : index
    %c2_34 = arith.constant 2 : index
    %c0_35 = arith.constant 0 : index
    %c0_36 = arith.constant 0 : index
    %10 = vector.load %arg7[%c0_33, %c2_34, %c0_35, %c0_36] : memref<2x18x18x4xf32, #tpu.memory_space<vmem>>, vector<2x16x16x4xf32>
    %c0_37 = arith.constant 0 : index
    %c2_38 = arith.constant 2 : index
    %c1_39 = arith.constant 1 : index
    %c0_40 = arith.constant 0 : index
    %11 = vector.load %arg7[%c0_37, %c2_38, %c1_39, %c0_40] : memref<2x18x18x4xf32, #tpu.memory_space<vmem>>, vector<2x16x16x4xf32>
    %c0_41 = arith.constant 0 : index
    %c2_42 = arith.constant 2 : index
    %c2_43 = arith.constant 2 : index
    %c0_44 = arith.constant 0 : index
    %12 = vector.load %arg7[%c0_41, %c2_42, %c2_43, %c0_44] : memref<2x18x18x4xf32, #tpu.memory_space<vmem>>, vector<2x16x16x4xf32>
    %13 = tpu.concatenate %4, %5, %6, %7, %8, %9, %10, %11, %12 in 3 : vector<2x16x16x4xf32>, vector<2x16x16x4xf32>, vector<2x16x16x4xf32>, vector<2x16x16x4xf32>, vector<2x16x16x4xf32>, vector<2x16x16x4xf32>, vector<2x16x16x4xf32>, vector<2x16x16x4xf32>, vector<2x16x16x4xf32> -> vector<2x16x16x36xf32>
    %14 = vector.shape_cast %13 : vector<2x16x16x36xf32> to vector<512x36xf32>
    %c0_45 = arith.constant 0 : index
    %c0_46 = arith.constant 0 : index
    %15 = vector.load %arg2[%c0_45, %c0_46] : memref<36x32xf32, #tpu.memory_space<vmem>>, vector<36x32xf32>
    %cst_47 = arith.constant dense<0.000000e+00> : vector<512x32xf32>
    %16 = tpu.matmul %14, %15, %cst_47 {dimension_numbers = #tpu.dot_dimension_numbers<[1], [0], [0], [1], [0, 0, 1, 1], [], []>} : vector<512x36xf32>, vector<36x32xf32>, vector<512x32xf32> -> vector<512x32xf32>
    %c0_48 = arith.constant 0 : index
    %c0_49 = arith.constant 0 : index
    %17 = vector.load %arg3[%c0_48, %c0_49] : memref<1x32xf32, #tpu.memory_space<vmem>>, vector<1x32xf32>
    %18 = vector.broadcast %17 : vector<1x32xf32> to vector<512x32xf32>
    %19 = arith.addf %16, %18 : vector<512x32xf32>
    %cst_50 = arith.constant 0.000000e+00 : f32
    %20 = vector.broadcast %cst_50 : f32 to vector<512x32xf32>
    %21 = arith.maximumf %19, %20 : vector<512x32xf32>
    %c0_51 = arith.constant 0 : index
    %c0_52 = arith.constant 0 : index
    %22 = vector.load %arg4[%c0_51, %c0_52] : memref<32x128xf32, #tpu.memory_space<vmem>>, vector<32x128xf32>
    %cst_53 = arith.constant dense<0.000000e+00> : vector<512x128xf32>
    %23 = tpu.matmul %21, %22, %cst_53 {dimension_numbers = #tpu.dot_dimension_numbers<[1], [0], [0], [1], [0, 0, 1, 1], [], []>} : vector<512x32xf32>, vector<32x128xf32>, vector<512x128xf32> -> vector<512x128xf32>
    %c0_54 = arith.constant 0 : index
    %c0_55 = arith.constant 0 : index
    %24 = vector.load %arg5[%c0_54, %c0_55] : memref<1x128xf32, #tpu.memory_space<vmem>>, vector<1x128xf32>
    %25 = vector.broadcast %24 : vector<1x128xf32> to vector<512x128xf32>
    %26 = arith.addf %23, %25 : vector<512x128xf32>
    %c0_56 = arith.constant 0 : index
    %c0_57 = arith.constant 0 : index
    %27 = vector.load %arg6[%c0_56, %c0_57] : memref<512x128xf32, #tpu.memory_space<vmem>>, vector<512x128xf32>
    tpu.vector_store %arg6[%c0_56, %c0_57], %26 {strides = array<i32>} : memref<512x128xf32, #tpu.memory_space<vmem>>, vector<512x128xf32>,
    return
  }
  func.func @transform_0(%arg0: i32) -> (i32, i32, i32, i32) {
    %c0_i32 = arith.constant 0 : i32
    %c0_i32_0 = arith.constant 0 : i32
    %c0_i32_1 = arith.constant 0 : i32
    %c0_i32_2 = arith.constant 0 : i32
    %c0_i32_3 = arith.constant 0 : i32
    return %c0_i32, %c0_i32_0, %c0_i32_1, %c0_i32_2 : i32, i32, i32, i32
  }
  func.func @transform_1(%arg0: i32) -> (i32, i32) {
    %c0_i32 = arith.constant 0 : i32
    %c0_i32_0 = arith.constant 0 : i32
    %c0_i32_1 = arith.constant 0 : i32
    return %c0_i32, %c0_i32_0 : i32, i32
  }
  func.func @transform_2(%arg0: i32) -> (i32, i32) {
    %c0_i32 = arith.constant 0 : i32
    %c0_i32_0 = arith.constant 0 : i32
    %c0_i32_1 = arith.constant 0 : i32
    return %c0_i32, %c0_i32_0 : i32, i32
  }
  func.func @transform_3(%arg0: i32) -> (i32, i32) {
    %c0_i32 = arith.constant 0 : i32
    %c0_i32_0 = arith.constant 0 : i32
    %c0_i32_1 = arith.constant 0 : i32
    return %c0_i32, %c0_i32_0 : i32, i32
  }
  func.func @transform_4(%arg0: i32) -> (i32, i32) {
    %c0_i32 = arith.constant 0 : i32
    %c0_i32_0 = arith.constant 0 : i32
    %c0_i32_1 = arith.constant 0 : i32
    return %c0_i32, %c0_i32_0 : i32, i32
  }
  func.func @transform_5(%arg0: i32) -> (i32, i32) {
    %c0_i32 = arith.constant 0 : i32
    %c0_i32_0 = arith.constant 0 : i32
    %c0_i32_1 = arith.constant 0 : i32
    return %c0_i32, %c0_i32_0 : i32, i32
  }
}

</mosaic_0001>

<bundles_post_ra>
// kernel: pan_pp_det_head_forward.1
= control target key start
LH: loop header
LB: loop body
LE: loop exit
PB: predicated region body
PF: predicated region fallthrough
CT: control target
= control target key end

     0   :  { %vm20_vm0 = vcmask 31744   ;;  %vm23_vm1 = vcmask 25600   ;;  %v5265_v0 = vmov 0.0   ;;  %s5266_s12 = smov 4   ;;  %s5267_s17 = smov 8   ;;  %vm3608_vm2 = vcmask 1043456   ;;  %s8084_s0 = inlined_call_operand.vmem [shape: f32[2,16,16,4], index: 0, kind: input, shape index: {}]   ;;  %s8085_s1 = inlined_call_operand.vmem [shape: f32[36,32], index: 1, kind: input, shape index: {}]   ;;  %s8086_s3 = inlined_call_operand.vmem [shape: f32[32,128], index: 3, kind: input, shape index: {}]   ;;  %s8087_s2 = inlined_call_operand.vmem [shape: f32[1,32], index: 2, kind: input, shape index: {}]   ;;  %s8088_s4 = inlined_call_operand.vmem [shape: f32[1,128], index: 4, kind: input, shape index: {}]   ;;  %s8089_s5 = inlined_call_operand.vmem [shape: f32[512,128], index: 5, kind: output, shape index: {}]  }
   0x1   :  { %21 = vst.msk [vmem:[#allocation2] sm:$0xff] %vm20_vm0, %v5265_v0  ;;  %22 = vst.msk [vmem:[#allocation2 + $0x8] sm:$0xff] %vm20_vm0, %v5265_v0  ;;  %v130_v1 = vld [vmem:[%s8084_s0] sm:$0xff]  ;;  %v131_v2 = vld [vmem:[%s8084_s0 + $0x8] sm:$0xff]  ;;  %s5269_s25 = smov 16   ;;  %s5270_s9 = smov 20  }
   0x2   :  { %25 = vst.msk [vmem:[#allocation2 + $0x18] sm:$0xff] %vm20_vm0, %v5265_v0  ;;  %26 = vst.msk [vmem:[#allocation2 + $0x20] sm:$0xff] %vm20_vm0, %v5265_v0  ;;  %v132_v3 = vld [vmem:[%s8084_s0 + $0x10] sm:$0xff]  ;;  %v133_v4 = vld [vmem:[%s8084_s0 + $0x18] sm:$0xff]  ;;  %s5271_s13 = smov 24   ;;  %s5272_s14 = smov 28  }
   0x3   :  { %28 = vst.msk [vmem:[#allocation2 + $0x30] sm:$0xff] %vm20_vm0, %v5265_v0  ;;  %29 = vst.msk [vmem:[#allocation2 + $0x38] sm:$0xff] %vm20_vm0, %v5265_v0  ;;  %v134_v5 = vld [vmem:[%s8084_s0 + $0x20] sm:$0xff]  ;;  %v135_v6 = vld [vmem:[%s8084_s0 + $0x28] sm:$0xff]  ;;  %vm2948_vm3 = vcmask 64512   ;;  %vm3013_vm4 = vcmask 97280  }
   0x4   :  { %31 = vst.msk [vmem:[#allocation2 + $0x48] sm:$0xff] %vm20_vm0, %v5265_v0  ;;  %32 = vst.msk [vmem:[#allocation2 + $0x50] sm:$0xff] %vm20_vm0, %v5265_v0  ;;  %v136_v7 = vld [vmem:[%s8084_s0 + $0x30] sm:$0xff]  ;;  %v137_v8 = vld [vmem:[%s8084_s0 + $0x38] sm:$0xff]  ;;  %vm3078_vm5 = vcmask 130048   ;;  %vm3143_vm6 = vcmask 162816  }
   0x5   :  { %34 = vst.msk [vmem:[#allocation2 + $0x60] sm:$0xff] %vm20_vm0, %v5265_v0  ;;  %35 = vst.msk [vmem:[#allocation2 + $0x68] sm:$0xff] %vm20_vm0, %v5265_v0  ;;  %v138_v9 = vld [vmem:[%s8084_s0 + $0x40] sm:$0xff]  ;;  %v139_v10 = vld [vmem:[%s8084_s0 + $0x48] sm:$0xff]  ;;  %vm3208_vm7 = vcmask 195584   ;;  %vm3273_vm8 = vcmask 228352  }
   0x6   :  { %37 = vst.msk [vmem:[#allocation2 + $0x78] sm:$0xff] %vm20_vm0, %v5265_v0  ;;  %38 = vst.msk [vmem:[#allocation2 + $0x80] sm:$0xff] %vm20_vm0, %v5265_v0  ;;  %v140_v11 = vld [vmem:[%s8084_s0 + $0x50] sm:$0xff]  ;;  %v141_v12 = vld [vmem:[%s8084_s0 + $0x58] sm:$0xff]  ;;  %vm3338_vm9 = vcmask 261120   ;;  %vm3415_vm10 = vcmask 293888  }
   0x7   :  { %40 = vst.msk [vmem:[#allocation2 + $0x90] sm:$0xff] %vm20_vm0, %v5265_v0  ;;  %41 = vst.msk [vmem:[#allocation2 + $0x98] sm:$0xff] %vm20_vm0, %v5265_v0  ;;  %v142_v13 = vld [vmem:[%s8084_s0 + $0x60] sm:$0xff]  ;;  %v143_v14 = vld [vmem:[%s8084_s0 + $0x68] sm:$0xff] }
   0x8   :  { %43 = vst.msk [vmem:[#allocation2 + $0xa8] sm:$0xff] %vm20_vm0, %v5265_v0  ;;  %44 = vst.msk [vmem:[#allocation2 + $0xb0] sm:$0xff] %vm20_vm0, %v5265_v0  ;;  %v144_v15 = vld [vmem:[%s8084_s0 + $0x70] sm:$0xff]  ;;  %v145_v16 = vld [vmem:[%s8084_s0 + $0x78] sm:$0xff] }
   0x9   :  { %46 = vst.msk [vmem:[#allocation2 + $0xc0] sm:$0xff] %vm20_vm0, %v5265_v0  ;;  %47 = vst.msk [vmem:[#allocation2 + $0xc8] sm:$0xff] %vm20_vm0, %v5265_v0  ;;  %v146_v17 = vld [vmem:[%s8084_s0 + $0x80] sm:$0xff]  ;;  %v147_v18 = vld [vmem:[%s8084_s0 + $0x88] sm:$0xff] }
   0xa   :  { %49 = vst.msk [vmem:[#allocation2 + $0xd8] sm:$0xff] %vm20_vm0, %v5265_v0  ;;  %50 = vst.msk [vmem:[#allocation2 + $0xe0] sm:$0xff] %vm20_vm0, %v5265_v0  ;;  %v148_v19 = vld [vmem:[%s8084_s0 + $0x90] sm:$0xff]  ;;  %v149_v20 = vld [vmem:[%s8084_s0 + $0x98] sm:$0xff] }
   0xb   :  { %52 = vst.msk [vmem:[#allocation2 + $0xf0] sm:$0xff] %vm20_vm0, %v5265_v0  ;;  %53 = vst.msk [vmem:[#allocation2 + $0xf8] sm:$0xff] %vm20_vm0, %v5265_v0  ;;  %v150_v21 = vld [vmem:[%s8084_s0 + $0xa0] sm:$0xff]  ;;  %v151_v23 = vld [vmem:[%s8084_s0 + $0xa8] sm:$0xff] }
   0xc   :  { %55 = vst.msk [vmem:[#allocation2 + $0x108] sm:$0xff] %vm20_vm0, %v5265_v0  ;;  %56 = vst.msk [vmem:[#allocation2 + $0x110] sm:$0xff] %vm20_vm0, %v5265_v0  ;;  %v323_v22 = vld [vmem:[#allocation2 + $0x1] sm:$0xff]  ;;  %v152_v30 = vld [vmem:[%s8084_s0 + $0xb0] sm:$0xff] }
   0xd   :  { %58 = vst.msk [vmem:[#allocation2 + $0x120] sm:$0xff] %vm20_vm0, %v5265_v0  ;;  %59 = vst.msk [vmem:[#allocation2 + $0x128] sm:$0xff] %vm20_vm0, %v5265_v0  ;;  %900 = vrot.lane.b32.xlu0 %v323_v22, %s5266_s12  ;;  %v153_v31 = vld [vmem:[%s8084_s0 + $0xb8] sm:$0xff]  ;;  %v154_v32 = vld [vmem:[%s8084_s0 + $0xc0] sm:$0xff] }
   0xe   :  { %61 = vst.msk [vmem:[#allocation2 + $0x138] sm:$0xff] %vm20_vm0, %v5265_v0  ;;  %62 = vst.msk [vmem:[#allocation2 + $0x140] sm:$0xff] %vm20_vm0, %v5265_v0  ;;  %v155_v33 = vld [vmem:[%s8084_s0 + $0xc8] sm:$0xff]  ;;  %v156_v34 = vld [vmem:[%s8084_s0 + $0xd0] sm:$0xff] }
   0xf   :  { %64 = vst.msk [vmem:[#allocation2 + $0x150] sm:$0xff] %vm20_vm0, %v5265_v0  ;;  %65 = vst.msk [vmem:[#allocation2 + $0x158] sm:$0xff] %vm20_vm0, %v5265_v0  ;;  %v157_v35 = vld [vmem:[%s8084_s0 + $0xd8] sm:$0xff]  ;;  %v158_v36 = vld [vmem:[%s8084_s0 + $0xe0] sm:$0xff] }
  0x10   :  { %67 = vst.msk [vmem:[#allocation2 + $0x168] sm:$0xff] %vm20_vm0, %v5265_v0  ;;  %68 = vst.msk [vmem:[#allocation2 + $0x170] sm:$0xff] %vm20_vm0, %v5265_v0  ;;  %v159_v37 = vld [vmem:[%s8084_s0 + $0xe8] sm:$0xff]  ;;  %v162_v39 = vld [vmem:[%s8084_s0 + $0x100] sm:$0xff] }
  0x11   :  { %70 = vst.msk [vmem:[#allocation2 + $0x180] sm:$0xff] %vm20_vm0, %v5265_v0  ;;  %71 = vst.msk [vmem:[#allocation2 + $0x188] sm:$0xff] %vm20_vm0, %v5265_v0  ;;  %v163_v41 = vld [vmem:[%s8084_s0 + $0x108] sm:$0xff]  ;;  %v164_v42 = vld [vmem:[%s8084_s0 + $0x110] sm:$0xff] }
  0x12   :  { %73 = vst.msk [vmem:[#allocation2 + $0x198] sm:$0xff] %vm20_vm0, %v5265_v0  ;;  %74 = vst.msk [vmem:[#allocation2 + $0x1a0] sm:$0xff] %vm20_vm0, %v5265_v0  ;;  %v165_v43 = vld [vmem:[%s8084_s0 + $0x118] sm:$0xff]  ;;  %v166_v45 = vld [vmem:[%s8084_s0 + $0x120] sm:$0xff] }
  0x13   :  { %76 = vst.msk [vmem:[#allocation2 + $0x1b0] sm:$0xff] %vm20_vm0, %v5265_v0  ;;  %77 = vst.msk [vmem:[#allocation2 + $0x1b8] sm:$0xff] %vm20_vm0, %v5265_v0  ;;  %v167_v46 = vld [vmem:[%s8084_s0 + $0x128] sm:$0xff]  ;;  %v168_v47 = vld [vmem:[%s8084_s0 + $0x130] sm:$0xff] }
  0x14   :  { %79 = vst.msk [vmem:[#allocation2 + $0x1c8] sm:$0xff] %vm20_vm0, %v5265_v0  ;;  %80 = vst.msk [vmem:[#allocation2 + $0x1d0] sm:$0xff] %vm20_vm0, %v5265_v0  ;;  %v169_v48 = vld [vmem:[%s8084_s0 + $0x138] sm:$0xff]  ;;  %v170_v49 = vld [vmem:[%s8084_s0 + $0x140] sm:$0xff] }
  0x15   :  { %82 = vst.msk [vmem:[#allocation2 + $0x1e0] sm:$0xff] %vm20_vm0, %v5265_v0  ;;  %83 = vst.msk [vmem:[#allocation2 + $0x1e8] sm:$0xff] %vm20_vm0, %v5265_v0  ;;  %v171_v50 = vld [vmem:[%s8084_s0 + $0x148] sm:$0xff]  ;;  %v172_v51 = vld [vmem:[%s8084_s0 + $0x150] sm:$0xff] }
  0x16   :  { %85 = vst.msk [vmem:[#allocation2 + $0x1f8] sm:$0xff] %vm20_vm0, %v5265_v0  ;;  %86 = vst.msk [vmem:[#allocation2 + $0x200] sm:$0xff] %vm20_vm0, %v5265_v0  ;;  %v173_v52 = vld [vmem:[%s8084_s0 + $0x158] sm:$0xff]  ;;  %v174_v53 = vld [vmem:[%s8084_s0 + $0x160] sm:$0xff] }
  0x17   :  { %88 = vst.msk [vmem:[#allocation2 + $0x210] sm:$0xff] %vm20_vm0, %v5265_v0  ;;  %89 = vst.msk [vmem:[#allocation2 + $0x218] sm:$0xff] %vm20_vm0, %v5265_v0  ;;  %v175_v54 = vld [vmem:[%s8084_s0 + $0x168] sm:$0xff]  ;;  %v176_v57 = vld [vmem:[%s8084_s0 + $0x170] sm:$0xff] }
  0x18   :  { %91 = vst.msk [vmem:[#allocation2 + $0x228] sm:$0xff] %vm20_vm0, %v5265_v0  ;;  %92 = vst.msk [vmem:[#allocation2 + $0x230] sm:$0xff] %vm20_vm0, %v5265_v0  ;;  %v177_v58 = vld [vmem:[%s8084_s0 + $0x178] sm:$0xff]  ;;  %v178_v62 = vld [vmem:[%s8084_s0 + $0x180] sm:$0xff] }
  0x19   :  { %94 = vst.msk [vmem:[#allocation2 + $0x240] sm:$0xff] %vm20_vm0, %v5265_v0  ;;  %95 = vst.msk [vmem:[#allocation2 + $0x248] sm:$0xff] %vm20_vm0, %v5265_v0  ;;  %v179_v63 = vld [vmem:[%s8084_s0 + $0x188] sm:$0xff] }
  0x1a   :  { %97 = vst.msk [vmem:[#allocation2 + $0x258] sm:$0xff] %vm20_vm0, %v5265_v0  ;;  %98 = vst.msk [vmem:[#allocation2 + $0x260] sm:$0xff] %vm20_vm0, %v5265_v0 }
  0x1b   :  { %100 = vst.msk [vmem:[#allocation2 + $0x270] sm:$0xff] %vm20_vm0, %v5265_v0  ;;  %101 = vst.msk [vmem:[#allocation2 + $0x278] sm:$0xff] %vm20_vm0, %v5265_v0 }
  0x1c   :  { %103 = vst.msk [vmem:[#allocation2 + $0x288] sm:$0xff] %vm20_vm0, %v5265_v0  ;;  %104 = vst.msk [vmem:[#allocation2 + $0x290] sm:$0xff] %vm20_vm0, %v5265_v0 }
  0x1d   :  { %106 = vst.msk [vmem:[#allocation2 + $0x2a0] sm:$0xff] %vm20_vm0, %v5265_v0  ;;  %107 = vst.msk [vmem:[#allocation2 + $0x2a8] sm:$0xff] %vm20_vm0, %v5265_v0 }
  0x1e   :  { %109 = vst.msk [vmem:[#allocation2 + $0x2b8] sm:$0xff] %vm20_vm0, %v5265_v0  ;;  %110 = vst.msk [vmem:[#allocation2 + $0x2c0] sm:$0xff] %vm20_vm0, %v5265_v0 }
  0x1f   :  { %112 = vst.msk [vmem:[#allocation2 + $0x2d0] sm:$0xff] %vm20_vm0, %v5265_v0  ;;  %113 = vst.msk [vmem:[#allocation2 + $0x2d8] sm:$0xff] %vm20_vm0, %v5265_v0 }
  0x20   :  { %115 = vst.msk [vmem:[#allocation2 + $0x2e8] sm:$0xff] %vm20_vm0, %v5265_v0  ;;  %116 = vst.msk [vmem:[#allocation2 + $0x2f0] sm:$0xff] %vm20_vm0, %v5265_v0 }
  0x21   :  { %118 = vst.msk [vmem:[#allocation2 + $0x300] sm:$0xff] %vm20_vm0, %v5265_v0  ;;  %119 = vst.msk [vmem:[#allocation2 + $0x308] sm:$0xff] %vm20_vm0, %v5265_v0 }
  0x22   :  { %121 = vst.msk [vmem:[#allocation2 + $0x318] sm:$0xff] %vm20_vm0, %v5265_v0  ;;  %122 = vst.msk [vmem:[#allocation2 + $0x320] sm:$0xff] %vm20_vm0, %v5265_v0 }
  0x23   :  { %124 = vst.msk [vmem:[#allocation2 + $0x330] sm:$0xff] %vm20_vm0, %v5265_v0  ;;  %125 = vst.msk [vmem:[#allocation2 + $0x338] sm:$0xff] %vm20_vm0, %v5265_v0 }
  0x24   :  { %127 = vst.msk [vmem:[#allocation2 + $0x348] sm:$0xff] %vm20_vm0, %v5265_v0  ;;  %128 = vst.msk [vmem:[#allocation2 + $0x350] sm:$0xff] %vm20_vm0, %v5265_v0 }
  0x25   :  { %24 = vst.msk [vmem:[#allocation2 + $0x10] sm:$0x3] %vm23_vm1, %v5265_v0  ;;  %27 = vst.msk [vmem:[#allocation2 + $0x28] sm:$0x3] %vm23_vm1, %v5265_v0 }
  0x26   :  { %30 = vst.msk [vmem:[#allocation2 + $0x40] sm:$0x3] %vm23_vm1, %v5265_v0  ;;  %33 = vst.msk [vmem:[#allocation2 + $0x58] sm:$0x3] %vm23_vm1, %v5265_v0 }
  0x27   :  { %36 = vst.msk [vmem:[#allocation2 + $0x70] sm:$0x3] %vm23_vm1, %v5265_v0  ;;  %39 = vst.msk [vmem:[#allocation2 + $0x88] sm:$0x3] %vm23_vm1, %v5265_v0 }
  0x28   :  { %42 = vst.msk [vmem:[#allocation2 + $0xa0] sm:$0x3] %vm23_vm1, %v5265_v0  ;;  %45 = vst.msk [vmem:[#allocation2 + $0xb8] sm:$0x3] %vm23_vm1, %v5265_v0 }
  0x29   :  { %48 = vst.msk [vmem:[#allocation2 + $0xd0] sm:$0x3] %vm23_vm1, %v5265_v0  ;;  %51 = vst.msk [vmem:[#allocation2 + $0xe8] sm:$0x3] %vm23_vm1, %v5265_v0 }
  0x2a   :  { %54 = vst.msk [vmem:[#allocation2 + $0x100] sm:$0x3] %vm23_vm1, %v5265_v0  ;;  %57 = vst.msk [vmem:[#allocation2 + $0x118] sm:$0x3] %vm23_vm1, %v5265_v0 }
  0x2b   :  { %60 = vst.msk [vmem:[#allocation2 + $0x130] sm:$0x3] %vm23_vm1, %v5265_v0  ;;  %63 = vst.msk [vmem:[#allocation2 + $0x148] sm:$0x3] %vm23_vm1, %v5265_v0 }
  0x2c   :  { %66 = vst.msk [vmem:[#allocation2 + $0x160] sm:$0x3] %vm23_vm1, %v5265_v0  ;;  %69 = vst.msk [vmem:[#allocation2 + $0x178] sm:$0x3] %vm23_vm1, %v5265_v0  ;;  %v324_v25 = vld [vmem:[#allocation2 + $0x9] sm:$0xff] }
  0x2d   :  { %72 = vst.msk [vmem:[#allocation2 + $0x190] sm:$0x3] %vm23_vm1, %v5265_v0  ;;  %75 = vst.msk [vmem:[#allocation2 + $0x1a8] sm:$0x3] %vm23_vm1, %v5265_v0  ;;  %902 = vrot.lane.b32.xlu0 %v324_v25, %s5266_s12 }
  0x2e   :  { %78 = vst.msk [vmem:[#allocation2 + $0x1c0] sm:$0x3] %vm23_vm1, %v5265_v0  ;;  %81 = vst.msk [vmem:[#allocation2 + $0x1d8] sm:$0x3] %vm23_vm1, %v5265_v0 }
  0x2f   :  { %84 = vst.msk [vmem:[#allocation2 + $0x1f0] sm:$0x3] %vm23_vm1, %v5265_v0  ;;  %87 = vst.msk [vmem:[#allocation2 + $0x208] sm:$0x3] %vm23_vm1, %v5265_v0 }
  0x30   :  { %90 = vst.msk [vmem:[#allocation2 + $0x220] sm:$0x3] %vm23_vm1, %v5265_v0  ;;  %93 = vst.msk [vmem:[#allocation2 + $0x238] sm:$0x3] %vm23_vm1, %v5265_v0 }
  0x31   :  { %96 = vst.msk [vmem:[#allocation2 + $0x250] sm:$0x3] %vm23_vm1, %v5265_v0  ;;  %99 = vst.msk [vmem:[#allocation2 + $0x268] sm:$0x3] %vm23_vm1, %v5265_v0 }
  0x32   :  { %102 = vst.msk [vmem:[#allocation2 + $0x280] sm:$0x3] %vm23_vm1, %v5265_v0  ;;  %105 = vst.msk [vmem:[#allocation2 + $0x298] sm:$0x3] %vm23_vm1, %v5265_v0 }
  0x33   :  { %108 = vst.msk [vmem:[#allocation2 + $0x2b0] sm:$0x3] %vm23_vm1, %v5265_v0  ;;  %111 = vst.msk [vmem:[#allocation2 + $0x2c8] sm:$0x3] %vm23_vm1, %v5265_v0 }
  0x34   :  { %114 = vst.msk [vmem:[#allocation2 + $0x2e0] sm:$0x3] %vm23_vm1, %v5265_v0  ;;  %117 = vst.msk [vmem:[#allocation2 + $0x2f8] sm:$0x3] %vm23_vm1, %v5265_v0 }
  0x35   :  { %120 = vst.msk [vmem:[#allocation2 + $0x310] sm:$0x3] %vm23_vm1, %v5265_v0  ;;  %123 = vst.msk [vmem:[#allocation2 + $0x328] sm:$0x3] %vm23_vm1, %v5265_v0 }
  0x36   :  { %126 = vst.msk [vmem:[#allocation2 + $0x340] sm:$0x3] %vm23_vm1, %v5265_v0  ;;  %129 = vst.msk [vmem:[#allocation2 + $0x358] sm:$0x3] %vm23_vm1, %v5265_v0  ;;  %v180_v0 = vld [vmem:[%s8084_s0 + $0x190] sm:$0xff] }
  0x37   :  { %195 = vst.msk [vmem:[#allocation2 + $0x19] sm:$0xff] %vm20_vm0, %v130_v1  ;;  %196 = vst.msk [vmem:[#allocation2 + $0x21] sm:$0xff] %vm20_vm0, %v131_v2  ;;  %v181_v1 = vld [vmem:[%s8084_s0 + $0x198] sm:$0xff]  ;;  %v182_v2 = vld [vmem:[%s8084_s0 + $0x1a0] sm:$0xff] }
  0x38   :  { %197 = vst.msk [vmem:[#allocation2 + $0x31] sm:$0xff] %vm20_vm0, %v132_v3  ;;  %198 = vst.msk [vmem:[#allocation2 + $0x39] sm:$0xff] %vm20_vm0, %v133_v4  ;;  %v183_v3 = vld [vmem:[%s8084_s0 + $0x1a8] sm:$0xff]  ;;  %v184_v4 = vld [vmem:[%s8084_s0 + $0x1b0] sm:$0xff] }
  0x39   :  { %199 = vst.msk [vmem:[#allocation2 + $0x49] sm:$0xff] %vm20_vm0, %v134_v5  ;;  %200 = vst.msk [vmem:[#allocation2 + $0x51] sm:$0xff] %vm20_vm0, %v135_v6  ;;  %v185_v5 = vld [vmem:[%s8084_s0 + $0x1b8] sm:$0xff] }
  0x3a   :  { %201 = vst.msk [vmem:[#allocation2 + $0x61] sm:$0xff] %vm20_vm0, %v136_v7  ;;  %202 = vst.msk [vmem:[#allocation2 + $0x69] sm:$0xff] %vm20_vm0, %v137_v8  ;;  %v186_v7 = vld [vmem:[%s8084_s0 + $0x1c0] sm:$0xff]  ;;  %v187_v8 = vld [vmem:[%s8084_s0 + $0x1c8] sm:$0xff] }
  0x3b   :  { %203 = vst.msk [vmem:[#allocation2 + $0x79] sm:$0xff] %vm20_vm0, %v138_v9  ;;  %204 = vst.msk [vmem:[#allocation2 + $0x81] sm:$0xff] %vm20_vm0, %v139_v10  ;;  %v188_v9 = vld [vmem:[%s8084_s0 + $0x1d0] sm:$0xff] }
  0x3c   :  { %205 = vst.msk [vmem:[#allocation2 + $0x91] sm:$0xff] %vm20_vm0, %v140_v11  ;;  %206 = vst.msk [vmem:[#allocation2 + $0x99] sm:$0xff] %vm20_vm0, %v141_v12  ;;  %v189_v11 = vld [vmem:[%s8084_s0 + $0x1d8] sm:$0xff] }
  0x3d   :  { %207 = vst.msk [vmem:[#allocation2 + $0xa9] sm:$0xff] %vm20_vm0, %v142_v13  ;;  %208 = vst.msk [vmem:[#allocation2 + $0xb1] sm:$0xff] %vm20_vm0, %v143_v14  ;;  %v190_v13 = vld [vmem:[%s8084_s0 + $0x1e0] sm:$0xff]  ;;  %v191_v14 = vld [vmem:[%s8084_s0 + $0x1e8] sm:$0xff] }
  0x3e   :  { %209 = vst.msk [vmem:[#allocation2 + $0xc1] sm:$0xff] %vm20_vm0, %v144_v15  ;;  %210 = vst.msk [vmem:[#allocation2 + $0xc9] sm:$0xff] %vm20_vm0, %v145_v16  ;;  %v325_v24 = vld [vmem:[#allocation2 + $0x19] sm:$0xff]  ;;  %v326_v26 = vld [vmem:[#allocation2 + $0x21] sm:$0xff] }
  0x3f   :  { %211 = vst.msk [vmem:[#allocation2 + $0xd9] sm:$0xff] %vm20_vm0, %v146_v17  ;;  %212 = vst.msk [vmem:[#allocation2 + $0xe1] sm:$0xff] %vm20_vm0, %v147_v18  ;;  %904 = vrot.lane.b32.xlu1 %v325_v24, %s5266_s12  ;;  %v327_v27 = vld [vmem:[#allocation2 + $0x31] sm:$0xff]  ;;  %v328_v28 = vld [vmem:[#allocation2 + $0x39] sm:$0xff] }
  0x40   :  { %213 = vst.msk [vmem:[#allocation2 + $0xf1] sm:$0xff] %vm20_vm0, %v148_v19  ;;  %214 = vst.msk [vmem:[#allocation2 + $0xf9] sm:$0xff] %vm20_vm0, %v149_v20  ;;  %v329_v29 = vld [vmem:[#allocation2 + $0x49] sm:$0xff]  ;;  %908 = vrot.lane.b32.xlu0 %v327_v27, %s5266_s12  ;;  %v330_v38 = vld [vmem:[#allocation2 + $0x51] sm:$0xff] }
  0x41   :  { %215 = vst.msk [vmem:[#allocation2 + $0x109] sm:$0xff] %vm20_vm0, %v150_v21  ;;  %216 = vst.msk [vmem:[#allocation2 + $0x111] sm:$0xff] %vm20_vm0, %v151_v23  ;;  %v331_v40 = vld [vmem:[#allocation2 + $0x61] sm:$0xff]  ;;  %v332_v44 = vld [vmem:[#allocation2 + $0x69] sm:$0xff] }
  0x42   :  { %217 = vst.msk [vmem:[#allocation2 + $0x121] sm:$0xff] %vm20_vm0, %v152_v30  ;;  %218 = vst.msk [vmem:[#allocation2 + $0x129] sm:$0xff] %vm20_vm0, %v153_v31  ;;  %v333_v55 = vld [vmem:[#allocation2 + $0x79] sm:$0xff]  ;;  %v334_v56 = vld [vmem:[#allocation2 + $0x81] sm:$0xff] }
  0x43   :  { %906 = vrot.lane.b32.xlu1 %v326_v26, %s5266_s12  ;;  %219 = vst.msk [vmem:[#allocation2 + $0x139] sm:$0xff] %vm20_vm0, %v154_v32  ;;  %220 = vst.msk [vmem:[#allocation2 + $0x141] sm:$0xff] %vm20_vm0, %v155_v33  ;;  %v335_v59 = vld [vmem:[#allocation2 + $0x91] sm:$0xff]  ;;  %v336_v60 = vld [vmem:[#allocation2 + $0x99] sm:$0xff] }
  0x44   :  { %221 = vst.msk [vmem:[#allocation2 + $0x151] sm:$0xff] %vm20_vm0, %v156_v34  ;;  %222 = vst.msk [vmem:[#allocation2 + $0x159] sm:$0xff] %vm20_vm0, %v157_v35  ;;  %912 = vrot.lane.b32.xlu0 %v329_v29, %s5266_s12  ;;  %v337_v61 = vld [vmem:[#allocation2 + $0xa9] sm:$0xff]  ;;  %v338_v6 = vld [vmem:[#allocation2 + $0xb1] sm:$0xff] }
  0x45   :  { %223 = vst.msk [vmem:[#allocation2 + $0x169] sm:$0xff] %vm20_vm0, %v158_v36  ;;  %224 = vst.msk [vmem:[#allocation2 + $0x171] sm:$0xff] %vm20_vm0, %v159_v37  ;;  %v339_v10 = vld [vmem:[#allocation2 + $0xc1] sm:$0xff]  ;;  %v340_v12 = vld [vmem:[#allocation2 + $0xc9] sm:$0xff] }
  0x46   :  { %227 = vst.msk [vmem:[#allocation2 + $0x1c9] sm:$0xff] %vm20_vm0, %v162_v39  ;;  %228 = vst.msk [vmem:[#allocation2 + $0x1d1] sm:$0xff] %vm20_vm0, %v163_v41  ;;  %v341_v15 = vld [vmem:[#allocation2 + $0xd9] sm:$0xff]  ;;  %v342_v16 = vld [vmem:[#allocation2 + $0xe1] sm:$0xff] }
  0x47   :  { %910 = vrot.lane.b32.xlu1 %v328_v28, %s5266_s12  ;;  %229 = vst.msk [vmem:[#allocation2 + $0x1e1] sm:$0xff] %vm20_vm0, %v164_v42  ;;  %230 = vst.msk [vmem:[#allocation2 + $0x1e9] sm:$0xff] %vm20_vm0, %v165_v43  ;;  %v343_v17 = vld [vmem:[#allocation2 + $0xf1] sm:$0xff]  ;;  %v344_v18 = vld [vmem:[#allocation2 + $0xf9] sm:$0xff] }
  0x48   :  { %231 = vst.msk [vmem:[#allocation2 + $0x1f9] sm:$0xff] %vm20_vm0, %v166_v45  ;;  %232 = vst.msk [vmem:[#allocation2 + $0x201] sm:$0xff] %vm20_vm0, %v167_v46  ;;  %916 = vrot.lane.b32.xlu0 %v331_v40, %s5266_s12  ;;  %v345_v19 = vld [vmem:[#allocation2 + $0x109] sm:$0xff]  ;;  %v346_v20 = vld [vmem:[#allocation2 + $0x111] sm:$0xff] }
  0x49   :  { %233 = vst.msk [vmem:[#allocation2 + $0x211] sm:$0xff] %vm20_vm0, %v168_v47  ;;  %234 = vst.msk [vmem:[#allocation2 + $0x219] sm:$0xff] %vm20_vm0, %v169_v48  ;;  %v347_v21 = vld [vmem:[#allocation2 + $0x121] sm:$0xff]  ;;  %v348_v22 = vld [vmem:[#allocation2 + $0x129] sm:$0xff] }
  0x4a   :  { %235 = vst.msk [vmem:[#allocation2 + $0x229] sm:$0xff] %vm20_vm0, %v170_v49  ;;  %236 = vst.msk [vmem:[#allocation2 + $0x231] sm:$0xff] %vm20_vm0, %v171_v50  ;;  %v349_v23 = vld [vmem:[#allocation2 + $0x139] sm:$0xff]  ;;  %v350_v24 = vld [vmem:[#allocation2 + $0x141] sm:$0xff] }
  0x4b   :  { %914 = vrot.lane.b32.xlu1 %v330_v38, %s5266_s12  ;;  %237 = vst.msk [vmem:[#allocation2 + $0x241] sm:$0xff] %vm20_vm0, %v172_v51  ;;  %238 = vst.msk [vmem:[#allocation2 + $0x249] sm:$0xff] %vm20_vm0, %v173_v52  ;;  %v351_v25 = vld [vmem:[#allocation2 + $0x151] sm:$0xff]  ;;  %v352_v26 = vld [vmem:[#allocation2 + $0x159] sm:$0xff] }
  0x4c   :  { %239 = vst.msk [vmem:[#allocation2 + $0x259] sm:$0xff] %vm20_vm0, %v174_v53  ;;  %240 = vst.msk [vmem:[#allocation2 + $0x261] sm:$0xff] %vm20_vm0, %v175_v54  ;;  %920 = vrot.lane.b32.xlu0 %v333_v55, %s5266_s12  ;;  %v353_v27 = vld [vmem:[#allocation2 + $0x169] sm:$0xff]  ;;  %v354_v28 = vld [vmem:[#allocation2 + $0x171] sm:$0xff] }
  0x4d   :  { %241 = vst.msk [vmem:[#allocation2 + $0x271] sm:$0xff] %vm20_vm0, %v176_v57  ;;  %242 = vst.msk [vmem:[#allocation2 + $0x279] sm:$0xff] %vm20_vm0, %v177_v58  ;;  %v355_v29 = vld [vmem:[#allocation2 + $0x1b1] sm:$0xff]  ;;  %v356_v30 = vld [vmem:[#allocation2 + $0x1b9] sm:$0xff] }
  0x4e   :  { %243 = vst.msk [vmem:[#allocation2 + $0x289] sm:$0xff] %vm20_vm0, %v178_v62  ;;  %244 = vst.msk [vmem:[#allocation2 + $0x291] sm:$0xff] %vm20_vm0, %v179_v63  ;;  %v357_v31 = vld [vmem:[#allocation2 + $0x1c9] sm:$0xff]  ;;  %v358_v32 = vld [vmem:[#allocation2 + $0x1d1] sm:$0xff] }
  0x4f   :  { %918 = vrot.lane.b32.xlu1 %v332_v44, %s5266_s12  ;;  %245 = vst.msk [vmem:[#allocation2 + $0x2a1] sm:$0xff] %vm20_vm0, %v180_v0  ;;  %246 = vst.msk [vmem:[#allocation2 + $0x2a9] sm:$0xff] %vm20_vm0, %v181_v1  ;;  %v359_v33 = vld [vmem:[#allocation2 + $0x1e1] sm:$0xff]  ;;  %v360_v34 = vld [vmem:[#allocation2 + $0x1e9] sm:$0xff] }
  0x50   :  { %924 = vrot.lane.b32.xlu0 %v335_v59, %s5266_s12  ;;  %247 = vst.msk [vmem:[#allocation2 + $0x2b9] sm:$0xff] %vm20_vm0, %v182_v2  ;;  %248 = vst.msk [vmem:[#allocation2 + $0x2c1] sm:$0xff] %vm20_vm0, %v183_v3  ;;  %v361_v35 = vld [vmem:[#allocation2 + $0x1f9] sm:$0xff]  ;;  %v362_v36 = vld [vmem:[#allocation2 + $0x201] sm:$0xff] }
  0x51   :  { %249 = vst.msk [vmem:[#allocation2 + $0x2d1] sm:$0xff] %vm20_vm0, %v184_v4  ;;  %250 = vst.msk [vmem:[#allocation2 + $0x2d9] sm:$0xff] %vm20_vm0, %v185_v5  ;;  %v363_v37 = vld [vmem:[#allocation2 + $0x211] sm:$0xff]  ;;  %v364_v38 = vld [vmem:[#allocation2 + $0x219] sm:$0xff] }
  0x52   :  { %251 = vst.msk [vmem:[#allocation2 + $0x2e9] sm:$0xff] %vm20_vm0, %v186_v7  ;;  %252 = vst.msk [vmem:[#allocation2 + $0x2f1] sm:$0xff] %vm20_vm0, %v187_v8  ;;  %v365_v39 = vld [vmem:[#allocation2 + $0x229] sm:$0xff]  ;;  %v366_v40 = vld [vmem:[#allocation2 + $0x231] sm:$0xff] }
  0x53   :  { %922 = vrot.lane.b32.xlu1 %v334_v56, %s5266_s12  ;;  %253 = vst.msk [vmem:[#allocation2 + $0x301] sm:$0xff] %vm20_vm0, %v188_v9  ;;  %254 = vst.msk [vmem:[#allocation2 + $0x309] sm:$0xff] %vm20_vm0, %v189_v11  ;;  %v367_v41 = vld [vmem:[#allocation2 + $0x241] sm:$0xff]  ;;  %v368_v42 = vld [vmem:[#allocation2 + $0x249] sm:$0xff] }
  0x54   :  { %928 = vrot.lane.b32.xlu0 %v337_v61, %s5266_s12  ;;  %255 = vst.msk [vmem:[#allocation2 + $0x319] sm:$0xff] %vm20_vm0, %v190_v13  ;;  %256 = vst.msk [vmem:[#allocation2 + $0x321] sm:$0xff] %vm20_vm0, %v191_v14  ;;  %v369_v43 = vld [vmem:[#allocation2 + $0x259] sm:$0xff]  ;;  %v370_v44 = vld [vmem:[#allocation2 + $0x261] sm:$0xff] }
  0x55   :  { %v371_v45 = vld [vmem:[#allocation2 + $0x271] sm:$0xff]  ;;  %v372_v46 = vld [vmem:[#allocation2 + $0x279] sm:$0xff]  ;;  %v373_v47 = vld [vmem:[#allocation2 + $0x289] sm:$0xff] }
  0x56   :  { %v374_v48 = vld [vmem:[#allocation2 + $0x291] sm:$0xff]  ;;  %v375_v49 = vld [vmem:[#allocation2 + $0x2a1] sm:$0xff]  ;;  %v376_v50 = vld [vmem:[#allocation2 + $0x2a9] sm:$0xff] }
  0x57   :  { %926 = vrot.lane.b32.xlu1 %v336_v60, %s5266_s12  ;;  %v377_v51 = vld [vmem:[#allocation2 + $0x2b9] sm:$0xff]  ;;  %v378_v52 = vld [vmem:[#allocation2 + $0x2c1] sm:$0xff]  ;;  %v388_v5 = vld [vmem:[#allocation2 + $0xa] sm:$0xff] }
  0x58   :  { %932 = vrot.lane.b32.xlu0 %v339_v10, %s5266_s12  ;;  %v379_v53 = vld [vmem:[#allocation2 + $0x2d1] sm:$0xff]  ;;  %v380_v54 = vld [vmem:[#allocation2 + $0x2d9] sm:$0xff]  ;;  %v387_v3 = vld [vmem:[#allocation2 + $0x2] sm:$0xff] }
  0x59   :  { %v381_v55 = vld [vmem:[#allocation2 + $0x2e9] sm:$0xff]  ;;  %v382_v57 = vld [vmem:[#allocation2 + $0x2f1] sm:$0xff]  ;;  %v389_v7 = vld [vmem:[#allocation2 + $0x1a] sm:$0xff] }
  0x5a   :  { %v383_v59 = vld [vmem:[#allocation2 + $0x301] sm:$0xff]  ;;  %v384_v61 = vld [vmem:[#allocation2 + $0x309] sm:$0xff]  ;;  %v391_v11 = vld [vmem:[#allocation2 + $0x32] sm:$0xff] }
  0x5b   :  { %930 = vrot.lane.b32.xlu1 %v338_v6, %s5266_s12  ;;  %v385_v63 = vld [vmem:[#allocation2 + $0x319] sm:$0xff]  ;;  %v386_v1 = vld [vmem:[#allocation2 + $0x321] sm:$0xff] }
  0x5c   :  { %936 = vrot.lane.b32.xlu0 %v341_v15, %s5266_s12  ;;  %v390_v9 = vld [vmem:[#allocation2 + $0x22] sm:$0xff]  ;;  %v392_v13 = vld [vmem:[#allocation2 + $0x3a] sm:$0xff]  ;;  %v393_v15 = vld [vmem:[#allocation2 + $0x4a] sm:$0xff] }
  0x5f   :  { %934 = vrot.lane.b32.xlu1 %v340_v12, %s5266_s12 }
  0x60   :  { %940 = vrot.lane.b32.xlu0 %v343_v17, %s5266_s12  ;;  %v394_v17 = vld [vmem:[#allocation2 + $0x52] sm:$0xff] }
  0x63   :  { %938 = vrot.lane.b32.xlu1 %v342_v16, %s5266_s12 }
  0x64   :  { %944 = vrot.lane.b32.xlu0 %v345_v19, %s5266_s12  ;;  %v395_v19 = vld [vmem:[#allocation2 + $0x62] sm:$0xff] }
  0x67   :  { %942 = vrot.lane.b32.xlu1 %v344_v18, %s5266_s12 }
  0x68   :  { %948 = vrot.lane.b32.xlu0 %v347_v21, %s5266_s12  ;;  %v396_v21 = vld [vmem:[#allocation2 + $0x6a] sm:$0xff] }
  0x6b   :  { %946 = vrot.lane.b32.xlu1 %v346_v20, %s5266_s12 }
  0x6c   :  { %952 = vrot.lane.b32.xlu0 %v349_v23, %s5266_s12  ;;  %v397_v23 = vld [vmem:[#allocation2 + $0x7a] sm:$0xff] }
  0x6f   :  { %950 = vrot.lane.b32.xlu1 %v348_v22, %s5266_s12 }
  0x70   :  { %956 = vrot.lane.b32.xlu0 %v351_v25, %s5266_s12  ;;  %v398_v25 = vld [vmem:[#allocation2 + $0x82] sm:$0xff] }
  0x73   :  { %954 = vrot.lane.b32.xlu1 %v350_v24, %s5266_s12 }
  0x74   :  { %960 = vrot.lane.b32.xlu0 %v353_v27, %s5266_s12  ;;  %v399_v27 = vld [vmem:[#allocation2 + $0x92] sm:$0xff] }
  0x77   :  { %958 = vrot.lane.b32.xlu1 %v352_v26, %s5266_s12 }
  0x78   :  { %964 = vrot.lane.b32.xlu0 %v355_v29, %s5266_s12  ;;  %v400_v29 = vld [vmem:[#allocation2 + $0x9a] sm:$0xff] }
  0x7b   :  { %962 = vrot.lane.b32.xlu1 %v354_v28, %s5266_s12 }
  0x7c   :  { %968 = vrot.lane.b32.xlu0 %v357_v31, %s5266_s12  ;;  %v401_v31 = vld [vmem:[#allocation2 + $0xaa] sm:$0xff] }
  0x7f   :  { %966 = vrot.lane.b32.xlu1 %v356_v30, %s5266_s12  ;;  %v5818_v56 = vpop.permute.xlu0 %900 }
  0x80   :  { %972 = vrot.lane.b32.xlu0 %v359_v33, %s5266_s12  ;;  %v402_v33 = vld [vmem:[#allocation2 + $0xb2] sm:$0xff] }
  0x83   :  { %970 = vrot.lane.b32.xlu1 %v358_v32, %s5266_s12 }
  0x84   :  { %976 = vrot.lane.b32.xlu0 %v361_v35, %s5266_s12  ;;  %v403_v35 = vld [vmem:[#allocation2 + $0xc2] sm:$0xff] }
  0x87   :  { %974 = vrot.lane.b32.xlu1 %v360_v34, %s5266_s12 }
  0x88   :  { %980 = vrot.lane.b32.xlu0 %v363_v37, %s5266_s12  ;;  %v404_v37 = vld [vmem:[#allocation2 + $0xca] sm:$0xff] }
  0x8b   :  { %978 = vrot.lane.b32.xlu1 %v362_v36, %s5266_s12 }
  0x8c   :  { %984 = vrot.lane.b32.xlu0 %v365_v39, %s5266_s12  ;;  %v405_v39 = vld [vmem:[#allocation2 + $0xda] sm:$0xff] }
  0x8f   :  { %982 = vrot.lane.b32.xlu1 %v364_v38, %s5266_s12 }
  0x90   :  { %988 = vrot.lane.b32.xlu0 %v367_v41, %s5266_s12  ;;  %v406_v41 = vld [vmem:[#allocation2 + $0xe2] sm:$0xff] }
  0x93   :  { %986 = vrot.lane.b32.xlu1 %v366_v40, %s5266_s12 }
  0x94   :  { %992 = vrot.lane.b32.xlu0 %v369_v43, %s5266_s12  ;;  %v407_v43 = vld [vmem:[#allocation2 + $0xf2] sm:$0xff] }
  0x97   :  { %990 = vrot.lane.b32.xlu1 %v368_v42, %s5266_s12 }
  0x98   :  { %996 = vrot.lane.b32.xlu0 %v371_v45, %s5266_s12  ;;  %v408_v45 = vld [vmem:[#allocation2 + $0xfa] sm:$0xff] }
  0x9b   :  { %994 = vrot.lane.b32.xlu1 %v370_v44, %s5266_s12 }
  0x9c   :  { %1000 = vrot.lane.b32.xlu0 %v373_v47, %s5266_s12  ;;  %v409_v47 = vld [vmem:[#allocation2 + $0x10a] sm:$0xff] }
  0x9f   :  { %998 = vrot.lane.b32.xlu1 %v372_v46, %s5266_s12  ;;  %v5824_v60 = vpop.permute.xlu0 %902 }
  0xa0   :  { %1004 = vrot.lane.b32.xlu0 %v375_v49, %s5266_s12  ;;  %v410_v49 = vld [vmem:[#allocation2 + $0x112] sm:$0xff] }
  0xa3   :  { %1002 = vrot.lane.b32.xlu1 %v374_v48, %s5266_s12 }
  0xa4   :  { %1008 = vrot.lane.b32.xlu0 %v377_v51, %s5266_s12  ;;  %v411_v51 = vld [vmem:[#allocation2 + $0x122] sm:$0xff] }
  0xa7   :  { %1006 = vrot.lane.b32.xlu1 %v376_v50, %s5266_s12 }
  0xa8   :  { %1012 = vrot.lane.b32.xlu0 %v379_v53, %s5266_s12  ;;  %v412_v53 = vld [vmem:[#allocation2 + $0x12a] sm:$0xff] }
  0xab   :  { %1010 = vrot.lane.b32.xlu1 %v378_v52, %s5266_s12 }
  0xac   :  { %1016 = vrot.lane.b32.xlu0 %v381_v55, %s5266_s12  ;;  %v413_v55 = vld [vmem:[#allocation2 + $0x13a] sm:$0xff] }
  0xaf   :  { %1014 = vrot.lane.b32.xlu1 %v380_v54, %s5266_s12 }
  0xb0   :  { %1020 = vrot.lane.b32.xlu0 %v383_v59, %s5266_s12  ;;  %v414_v59 = vld [vmem:[#allocation2 + $0x142] sm:$0xff] }
  0xb1   :  { %v5820_v58 = vpop.permute.xlu1 %904 }
  0xb2   :  { %v5830_v0 = vpop.permute.xlu0 %908 }
  0xb3   :  { %1018 = vrot.lane.b32.xlu1 %v382_v57, %s5266_s12 }
  0xb4   :  { %1024 = vrot.lane.b32.xlu0 %v385_v63, %s5266_s12  ;;  %v160_v63 = vld [vmem:[%s8084_s0 + $0xf0] sm:$0xff] }
  0xb5   :  { %v5826_v62 = vpop.permute.xlu1 %906  ;;  %225 = vst.msk [vmem:[#allocation2 + $0x181] sm:$0xff] %vm20_vm0, %v160_v63  ;;  %v429_v63 = vld [vmem:[#allocation2 + $0x22a] sm:$0xff] }
  0xb6   :  { %v5836_v4 = vpop.permute.xlu0 %912 }
  0xb7   :  { %1022 = vrot.lane.b32.xlu1 %v384_v61, %s5266_s12 }
  0xb8   :  { %1156 = vrot.lane.b32.xlu0 %v387_v3, %s5267_s17  ;;  %v415_v3 = vld [vmem:[#allocation2 + $0x152] sm:$0xff] }
  0xb9   :  { %v5832_v2 = vpop.permute.xlu1 %910 }
  0xba   :  { %v5842_v8 = vpop.permute.xlu0 %916 }
  0xbb   :  { %1026 = vrot.lane.b32.xlu1 %v386_v1, %s5266_s12  ;;  %v161_v1 = vld [vmem:[%s8084_s0 + $0xf8] sm:$0xff] }
  0xbc   :  { %1160 = vrot.lane.b32.xlu0 %v389_v7, %s5267_s17  ;;  %226 = vst.msk [vmem:[#allocation2 + $0x189] sm:$0xff] %vm20_vm0, %v161_v1  ;;  %v416_v7 = vld [vmem:[#allocation2 + $0x15a] sm:$0xff] }
  0xbd   :  { %v5838_v6 = vpop.permute.xlu1 %914 }
  0xbe   :  { %v5848_v12 = vpop.permute.xlu0 %920 }
  0xbf   :  { %1158 = vrot.lane.b32.xlu1 %v388_v5, %s5267_s17  ;;  %8092 = vst [vmem:[#allocation3_spill] sm:$0xff] %v5848_v12 }
  0xc0   :  { %1164 = vrot.lane.b32.xlu0 %v391_v11, %s5267_s17  ;;  %v417_v11 = vld [vmem:[#allocation2 + $0x16a] sm:$0xff] }
  0xc1   :  { %v5844_v10 = vpop.permute.xlu1 %918 }
  0xc2   :  { %v5854_v16 = vpop.permute.xlu0 %924 }
  0xc3   :  { %1162 = vrot.lane.b32.xlu1 %v390_v9, %s5267_s17  ;;  %8094 = vst [vmem:[#allocation5_spill] sm:$0xff] %v5854_v16 }
  0xc4   :  { %1168 = vrot.lane.b32.xlu0 %v393_v15, %s5267_s17  ;;  %v418_v15 = vld [vmem:[#allocation2 + $0x172] sm:$0xff] }
  0xc5   :  { %v5850_v14 = vpop.permute.xlu1 %922 }
  0xc6   :  { %8093 = vst [vmem:[#allocation4_spill] sm:$0xff] %v5850_v14  ;;  %v5860_v20 = vpop.permute.xlu0 %928 }
  0xc7   :  { %1166 = vrot.lane.b32.xlu1 %v392_v13, %s5267_s17  ;;  %8096 = vst [vmem:[#allocation7_spill] sm:$0xff] %v5860_v20 }
  0xc8   :  { %1172 = vrot.lane.b32.xlu0 %v395_v19, %s5267_s17  ;;  %v419_v19 = vld [vmem:[#allocation2 + $0x1b2] sm:$0xff] }
  0xc9   :  { %v5856_v18 = vpop.permute.xlu1 %926 }
  0xca   :  { %8095 = vst [vmem:[#allocation6_spill] sm:$0xff] %v5856_v18  ;;  %v5866_v24 = vpop.permute.xlu0 %932  ;;  %v6360_v18 = vld [vmem:[#allocation2 + $0x111] sm:$0xff] }
  0xcb   :  { %1170 = vrot.lane.b32.xlu1 %v394_v17, %s5267_s17  ;;  %8098 = vst [vmem:[#allocation9_spill] sm:$0xff] %v5866_v24 }
  0xcc   :  { %1176 = vrot.lane.b32.xlu0 %v397_v23, %s5267_s17  ;;  %v420_v23 = vld [vmem:[#allocation2 + $0x1ba] sm:$0xff] }
  0xcd   :  { %v5862_v22 = vpop.permute.xlu1 %930 }
  0xce   :  { %8097 = vst [vmem:[#allocation8_spill] sm:$0xff] %v5862_v22  ;;  %v5872_v28 = vpop.permute.xlu0 %936  ;;  %v6324_v22 = vld [vmem:[#allocation2 + $0xc9] sm:$0xff] }
  0xcf   :  { %1174 = vrot.lane.b32.xlu1 %v396_v21, %s5267_s17  ;;  %8100 = vst [vmem:[#allocation11_spill] sm:$0xff] %v5872_v28 }
  0xd0   :  { %1180 = vrot.lane.b32.xlu0 %v399_v27, %s5267_s17  ;;  %v421_v27 = vld [vmem:[#allocation2 + $0x1ca] sm:$0xff] }
  0xd1   :  { %v5868_v26 = vpop.permute.xlu1 %934 }
  0xd2   :  { %8099 = vst [vmem:[#allocation10_spill] sm:$0xff] %v5868_v26  ;;  %v5878_v32 = vpop.permute.xlu0 %940 }
  0xd3   :  { %1178 = vrot.lane.b32.xlu1 %v398_v25, %s5267_s17  ;;  %8102 = vst [vmem:[#allocation13_spill] sm:$0xff] %v5878_v32 }
  0xd4   :  { %1184 = vrot.lane.b32.xlu0 %v401_v31, %s5267_s17  ;;  %v422_v31 = vld [vmem:[#allocation2 + $0x1d2] sm:$0xff] }
  0xd5   :  { %v5874_v30 = vpop.permute.xlu1 %938 }
  0xd6   :  { %8101 = vst [vmem:[#allocation12_spill] sm:$0xff] %v5874_v30  ;;  %v5884_v36 = vpop.permute.xlu0 %944 }
  0xd7   :  { %1182 = vrot.lane.b32.xlu1 %v400_v29, %s5267_s17  ;;  %8104 = vst [vmem:[#allocation15_spill] sm:$0xff] %v5884_v36 }
  0xd8   :  { %1188 = vrot.lane.b32.xlu0 %v403_v35, %s5267_s17  ;;  %v423_v35 = vld [vmem:[#allocation2 + $0x1e2] sm:$0xff] }
  0xd9   :  { %v5880_v34 = vpop.permute.xlu1 %942 }
  0xda   :  { %8103 = vst [vmem:[#allocation14_spill] sm:$0xff] %v5880_v34  ;;  %v5890_v40 = vpop.permute.xlu0 %948 }
  0xdb   :  { %1186 = vrot.lane.b32.xlu1 %v402_v33, %s5267_s17  ;;  %8106 = vst [vmem:[#allocation17_spill] sm:$0xff] %v5890_v40 }
  0xdc   :  { %1192 = vrot.lane.b32.xlu0 %v405_v39, %s5267_s17  ;;  %v424_v39 = vld [vmem:[#allocation2 + $0x1ea] sm:$0xff] }
  0xdd   :  { %v5886_v38 = vpop.permute.xlu1 %946 }
  0xde   :  { %8105 = vst [vmem:[#allocation16_spill] sm:$0xff] %v5886_v38  ;;  %v5896_v44 = vpop.permute.xlu0 %952 }
  0xdf   :  { %1190 = vrot.lane.b32.xlu1 %v404_v37, %s5267_s17  ;;  %8108 = vst [vmem:[#allocation19_spill] sm:$0xff] %v5896_v44  ;;  %v284_v44 = vld [vmem:[#allocation2 + $0x128] sm:$0xff] }
  0xe0   :  { %1196 = vrot.lane.b32.xlu0 %v407_v43, %s5267_s17  ;;  %v425_v43 = vld [vmem:[#allocation2 + $0x1fa] sm:$0xff] }
  0xe1   :  { %v5892_v42 = vpop.permute.xlu1 %950 }
  0xe2   :  { %8107 = vst [vmem:[#allocation18_spill] sm:$0xff] %v5892_v42  ;;  %v5902_v48 = vpop.permute.xlu0 %956 }
  0xe3   :  { %1194 = vrot.lane.b32.xlu1 %v406_v41, %s5267_s17  ;;  %8110 = vst [vmem:[#allocation21_spill] sm:$0xff] %v5902_v48  ;;  %v282_v48 = vld [vmem:[#allocation2 + $0x110] sm:$0xff] }
  0xe4   :  { %1200 = vrot.lane.b32.xlu0 %v409_v47, %s5267_s17  ;;  %v426_v47 = vld [vmem:[#allocation2 + $0x202] sm:$0xff] }
  0xe5   :  { %v5898_v46 = vpop.permute.xlu1 %954 }
  0xe6   :  { %8109 = vst [vmem:[#allocation20_spill] sm:$0xff] %v5898_v46  ;;  %v5908_v52 = vpop.permute.xlu0 %960 }
  0xe7   :  { %1198 = vrot.lane.b32.xlu1 %v408_v45, %s5267_s17  ;;  %8112 = vst [vmem:[#allocation23_spill] sm:$0xff] %v5908_v52  ;;  %v280_v52 = vld [vmem:[#allocation2 + $0xf8] sm:$0xff] }
  0xe8   :  { %1204 = vrot.lane.b32.xlu0 %v411_v51, %s5267_s17  ;;  %v427_v51 = vld [vmem:[#allocation2 + $0x212] sm:$0xff] }
  0xe9   :  { %v5904_v50 = vpop.permute.xlu1 %958 }
  0xea   :  { %8111 = vst [vmem:[#allocation22_spill] sm:$0xff] %v5904_v50  ;;  %v5914_v57 = vpop.permute.xlu0 %964 }
  0xeb   :  { %1202 = vrot.lane.b32.xlu1 %v410_v49, %s5267_s17  ;;  %8114 = vst [vmem:[#allocation25_spill] sm:$0xff] %v5914_v57  ;;  %v278_v57 = vld [vmem:[#allocation2 + $0xe0] sm:$0xff] }
  0xec   :  { %1208 = vrot.lane.b32.xlu0 %v413_v55, %s5267_s17  ;;  %v428_v55 = vld [vmem:[#allocation2 + $0x21a] sm:$0xff] }
  0xed   :  { %v5910_v54 = vpop.permute.xlu1 %962 }
  0xee   :  { %8113 = vst [vmem:[#allocation24_spill] sm:$0xff] %v5910_v54  ;;  %v5928_v5 = vpop.permute.xlu0 %968 }
  0xef   :  { %1206 = vrot.lane.b32.xlu1 %v412_v53, %s5267_s17  ;;  %8116 = vst [vmem:[#allocation27_spill] sm:$0xff] %v5928_v5  ;;  %v276_v5 = vld [vmem:[#allocation2 + $0xc8] sm:$0xff] }
  0xf0   :  { %1212 = vrot.lane.b32.xlu0 %v415_v3, %s5267_s17  ;;  %v430_v3 = vld [vmem:[#allocation2 + $0x232] sm:$0xff] }
  0xf1   :  { %v5916_v61 = vpop.permute.xlu1 %966 }
  0xf2   :  { %8115 = vst [vmem:[#allocation26_spill] sm:$0xff] %v5916_v61  ;;  %v5934_v13 = vpop.permute.xlu0 %972 }
  0xf3   :  { %1210 = vrot.lane.b32.xlu1 %v414_v59, %s5267_s17  ;;  %8118 = vst [vmem:[#allocation29_spill] sm:$0xff] %v5934_v13  ;;  %v274_v13 = vld [vmem:[#allocation2 + $0xb0] sm:$0xff] }
  0xf4   :  { %1216 = vrot.lane.b32.xlu0 %v417_v11, %s5267_s17  ;;  %v431_v11 = vld [vmem:[#allocation2 + $0x242] sm:$0xff] }
  0xf5   :  { %v5930_v9 = vpop.permute.xlu1 %970 }
  0xf6   :  { %8117 = vst [vmem:[#allocation28_spill] sm:$0xff] %v5930_v9  ;;  %v5940_v21 = vpop.permute.xlu0 %976 }
  0xf7   :  { %1214 = vrot.lane.b32.xlu1 %v416_v7, %s5267_s17  ;;  %8120 = vst [vmem:[#allocation31_spill] sm:$0xff] %v5940_v21  ;;  %v272_v21 = vld [vmem:[#allocation2 + $0x98] sm:$0xff] }
  0xf8   :  { %1220 = vrot.lane.b32.xlu0 %v419_v19, %s5267_s17  ;;  %v432_v19 = vld [vmem:[#allocation2 + $0x24a] sm:$0xff] }
  0xf9   :  { %v5936_v17 = vpop.permute.xlu1 %974 }
  0xfa   :  { %8119 = vst [vmem:[#allocation30_spill] sm:$0xff] %v5936_v17  ;;  %v5946_v29 = vpop.permute.xlu0 %980 }
  0xfb   :  { %1218 = vrot.lane.b32.xlu1 %v418_v15, %s5267_s17  ;;  %8122 = vst [vmem:[#allocation33_spill] sm:$0xff] %v5946_v29  ;;  %v270_v29 = vld [vmem:[#allocation2 + $0x80] sm:$0xff] }
  0xfc   :  { %1224 = vrot.lane.b32.xlu0 %v421_v27, %s5267_s17  ;;  %v433_v27 = vld [vmem:[#allocation2 + $0x25a] sm:$0xff] }
  0xfd   :  { %v5942_v25 = vpop.permute.xlu1 %978 }
  0xfe   :  { %8121 = vst [vmem:[#allocation32_spill] sm:$0xff] %v5942_v25  ;;  %v5952_v37 = vpop.permute.xlu0 %984 }
  0xff   :  { %1222 = vrot.lane.b32.xlu1 %v420_v23, %s5267_s17  ;;  %8124 = vst [vmem:[#allocation35_spill] sm:$0xff] %v5952_v37  ;;  %v268_v37 = vld [vmem:[#allocation2 + $0x68] sm:$0xff] }
 0x100   :  { %1228 = vrot.lane.b32.xlu0 %v423_v35, %s5267_s17  ;;  %v434_v35 = vld [vmem:[#allocation2 + $0x262] sm:$0xff] }
 0x101   :  { %v5948_v33 = vpop.permute.xlu1 %982 }
 0x102   :  { %8123 = vst [vmem:[#allocation34_spill] sm:$0xff] %v5948_v33  ;;  %v5958_v45 = vpop.permute.xlu0 %988 }
 0x103   :  { %1226 = vrot.lane.b32.xlu1 %v422_v31, %s5267_s17  ;;  %8126 = vst [vmem:[#allocation37_spill] sm:$0xff] %v5958_v45  ;;  %v267_v45 = vld [vmem:[#allocation2 + $0x60] sm:$0xff] }
 0x104   :  { %1232 = vrot.lane.b32.xlu0 %v425_v43, %s5267_s17  ;;  %v435_v43 = vld [vmem:[#allocation2 + $0x272] sm:$0xff] }
 0x105   :  { %v5954_v41 = vpop.permute.xlu1 %986 }
 0x106   :  { %8125 = vst [vmem:[#allocation36_spill] sm:$0xff] %v5954_v41  ;;  %v5964_v53 = vpop.permute.xlu0 %992 }
 0x107   :  { %1230 = vrot.lane.b32.xlu1 %v424_v39, %s5267_s17  ;;  %8128 = vst [vmem:[#allocation39_spill] sm:$0xff] %v5964_v53  ;;  %v266_v53 = vld [vmem:[#allocation2 + $0x50] sm:$0xff] }
 0x108   :  { %1236 = vrot.lane.b32.xlu0 %v427_v51, %s5267_s17  ;;  %v436_v51 = vld [vmem:[#allocation2 + $0x27a] sm:$0xff] }
 0x109   :  { %v5960_v49 = vpop.permute.xlu1 %990 }
 0x10a   :  { %8127 = vst [vmem:[#allocation38_spill] sm:$0xff] %v5960_v49  ;;  %v5970_v1 = vpop.permute.xlu0 %996 }
 0x10b   :  { %1234 = vrot.lane.b32.xlu1 %v426_v47, %s5267_s17  ;;  %8130 = vst [vmem:[#allocation41_spill] sm:$0xff] %v5970_v1  ;;  %v265_v1 = vld [vmem:[#allocation2 + $0x48] sm:$0xff] }
 0x10c   :  { %1240 = vrot.lane.b32.xlu0 %v429_v63, %s5267_s17  ;;  %v437_v63 = vld [vmem:[#allocation2 + $0x28a] sm:$0xff] }
 0x10d   :  { %v5966_v59 = vpop.permute.xlu1 %994 }
 0x10e   :  { %8129 = vst [vmem:[#allocation40_spill] sm:$0xff] %v5966_v59  ;;  %v5976_v15 = vpop.permute.xlu0 %1000 }
 0x10f   :  { %1238 = vrot.lane.b32.xlu1 %v428_v55, %s5267_s17  ;;  %8132 = vst [vmem:[#allocation43_spill] sm:$0xff] %v5976_v15  ;;  %v6050_v15 = vld [vmem:[#allocation2 + $0x20] sm:$0xff] }
 0x110   :  { %1244 = vrot.lane.b32.xlu0 %v431_v11, %s5267_s17  ;;  %v438_v11 = vld [vmem:[#allocation2 + $0x292] sm:$0xff] }
 0x111   :  { %v5972_v7 = vpop.permute.xlu1 %998 }
 0x112   :  { %8131 = vst [vmem:[#allocation42_spill] sm:$0xff] %v5972_v7  ;;  %v5982_v31 = vpop.permute.xlu0 %1004 }
 0x113   :  { %1242 = vrot.lane.b32.xlu1 %v430_v3, %s5267_s17  ;;  %8134 = vst [vmem:[#allocation45_spill] sm:$0xff] %v5982_v31 }
 0x114   :  { %1248 = vrot.lane.b32.xlu0 %v433_v27, %s5267_s17  ;;  %v439_v27 = vld [vmem:[#allocation2 + $0x2a2] sm:$0xff] }
 0x115   :  { %v5978_v23 = vpop.permute.xlu1 %1002 }
 0x116   :  { %8133 = vst [vmem:[#allocation44_spill] sm:$0xff] %v5978_v23  ;;  %v5988_v47 = vpop.permute.xlu0 %1008 }
 0x117   :  { %1246 = vrot.lane.b32.xlu1 %v432_v19, %s5267_s17  ;;  %8136 = vst [vmem:[#allocation47_spill] sm:$0xff] %v5988_v47  ;;  %v440_v47 = vld [vmem:[#allocation2 + $0x2aa] sm:$0xff] }
 0x118   :  { %1252 = vrot.lane.b32.xlu0 %v435_v43, %s5267_s17  ;;  %v441_v43 = vld [vmem:[#allocation2 + $0x2ba] sm:$0xff] }
 0x119   :  { %v5984_v39 = vpop.permute.xlu1 %1006 }
 0x11a   :  { %8135 = vst [vmem:[#allocation46_spill] sm:$0xff] %v5984_v39  ;;  %v5994_v3 = vpop.permute.xlu0 %1012 }
 0x11b   :  { %1250 = vrot.lane.b32.xlu1 %v434_v35, %s5267_s17  ;;  %8138 = vst [vmem:[#allocation49_spill] sm:$0xff] %v5994_v3  ;;  %v442_v3 = vld [vmem:[#allocation2 + $0x2c2] sm:$0xff] }
 0x11c   :  { %1256 = vrot.lane.b32.xlu0 %v437_v63, %s5267_s17  ;;  %v443_v63 = vld [vmem:[#allocation2 + $0x2d2] sm:$0xff] }
 0x11d   :  { %v5990_v55 = vpop.permute.xlu1 %1010 }
 0x11e   :  { %8137 = vst [vmem:[#allocation48_spill] sm:$0xff] %v5990_v55  ;;  %v6000_v35 = vpop.permute.xlu0 %1016 }
 0x11f   :  { %1254 = vrot.lane.b32.xlu1 %v436_v51, %s5267_s17  ;;  %8140 = vst [vmem:[#allocation51_spill] sm:$0xff] %v6000_v35  ;;  %v444_v35 = vld [vmem:[#allocation2 + $0x2da] sm:$0xff] }
 0x120   :  { %1260 = vrot.lane.b32.xlu0 %v439_v27, %s5267_s17 }
 0x121   :  { %v5996_v19 = vpop.permute.xlu1 %1014 }
 0x122   :  { %8139 = vst [vmem:[#allocation50_spill] sm:$0xff] %v5996_v19  ;;  %v6006_v51 = vpop.permute.xlu0 %1020 }
 0x123   :  { %1258 = vrot.lane.b32.xlu1 %v438_v11, %s5267_s17  ;;  %8142 = vst [vmem:[#allocation53_spill] sm:$0xff] %v6006_v51  ;;  %v446_v51 = vld [vmem:[#allocation2 + $0x2f2] sm:$0xff] }
 0x124   :  { %1264 = vrot.lane.b32.xlu0 %v441_v43, %s5267_s17  ;;  %v193_v43 = vld [vmem:[%s8084_s0 + $0x1f8] sm:$0xff] }
 0x125   :  { %v6002_v39 = vpop.permute.xlu1 %1018  ;;  %258 = vst.msk [vmem:[#allocation2 + $0x339] sm:$0xff] %vm20_vm0, %v193_v43  ;;  %v6046_v43 = vld [vmem:[#allocation2 + $0x18] sm:$0xff] }
 0x126   :  { %8141 = vst [vmem:[#allocation52_spill] sm:$0xff] %v6002_v39  ;;  %v6012_v11 = vpop.permute.xlu0 %1024 }
 0x127   :  { %1262 = vrot.lane.b32.xlu1 %v440_v47, %s5267_s17  ;;  %8144 = vst [vmem:[#allocation55_spill] sm:$0xff] %v6012_v11  ;;  %v445_v47 = vld [vmem:[#allocation2 + $0x2ea] sm:$0xff] }
 0x128   :  { %1268 = vrot.lane.b32.xlu0 %v443_v63, %s5267_s17 }
 0x129   :  { %v6008_v55 = vpop.permute.xlu1 %1022 }
 0x12a   :  { %8143 = vst [vmem:[#allocation54_spill] sm:$0xff] %v6008_v55  ;;  %v6018_v27 = vpop.permute.xlu0 %1156  ;;  %v450_v55 = vld [vmem:[#allocation2 + $0x322] sm:$0xff] }
 0x12b   :  { %1266 = vrot.lane.b32.xlu1 %v442_v3, %s5267_s17  ;;  %v192_v3 = vld [vmem:[%s8084_s0 + $0x1f0] sm:$0xff]  ;;  %s5268_s0 = smov 12  }
 0x12c   :  { %1272 = vrot.lane.b32.xlu0 %v445_v47, %s5267_s17  ;;  %257 = vst.msk [vmem:[#allocation2 + $0x331] sm:$0xff] %vm20_vm0, %v192_v3  ;;  %v449_v47 = vld [vmem:[#allocation2 + $0x31a] sm:$0xff] }
 0x12d   :  { %v6014_v19 = vpop.permute.xlu1 %1026 }
 0x12e   :  { %8145 = vst [vmem:[#allocation56_spill] sm:$0xff] %v6014_v19  ;;  %v6032_v63 = vpop.permute.xlu0 %1160  ;;  %v448_v19 = vld [vmem:[#allocation2 + $0x30a] sm:$0xff] }
 0x12f   :  { %1270 = vrot.lane.b32.xlu1 %v444_v35, %s5267_s17  ;;  %v447_v35 = vld [vmem:[#allocation2 + $0x302] sm:$0xff] }
 0x130   :  { %1276 = vrot.lane.b32.xlu0 %v447_v35, %s5267_s17  ;;  %v263_v35 = vld [vmem:[#allocation2 + $0x30] sm:$0xff] }
 0x131   :  { %v6020_v39 = vpop.permute.xlu1 %1158 }
 0x132   :  { %v6038_v3 = vpop.permute.xlu0 %1164 }
 0x133   :  { %1274 = vrot.lane.b32.xlu1 %v446_v51, %s5267_s17 }
 0x134   :  { %1280 = vrot.lane.b32.xlu0 %v449_v47, %s5267_s17 }
 0x135   :  { %v6034_v11 = vpop.permute.xlu1 %1162 }
 0x136   :  { %v6044_v51 = vpop.permute.xlu0 %1168 }
 0x137   :  { %1278 = vrot.lane.b32.xlu1 %v448_v19, %s5267_s17 }
 0x138   :  { %1412 = vrot.lane.b32.xlu0 %v6046_v43, %s5268_s0 }
 0x139   :  { %v6040_v31 = vpop.permute.xlu1 %1166 }
 0x13a   :  { %v6056_v19 = vpop.permute.xlu0 %1172 }
 0x13b   :  { %1282 = vrot.lane.b32.xlu1 %v450_v55, %s5267_s17  ;;  %v264_v55 = vld [vmem:[#allocation2 + $0x38] sm:$0xff] }
 0x13c   :  { %1416 = vrot.lane.b32.xlu0 %v263_v35, %s5268_s0 }
 0x13d   :  { %v6048_v23 = vpop.permute.xlu1 %1170 }
 0x13e   :  { %v6062_v7 = vpop.permute.xlu0 %1176 }
 0x13f   :  { %1414 = vrot.lane.b32.xlu1 %v6050_v15, %s5268_s0  ;;  %8146 = vst [vmem:[#allocation57_spill] sm:$0xff] %v6062_v7  ;;  %v579_v7 = vld [vmem:[#allocation2 + $0x1a] sm:$0xff] }
 0x140   :  { %1420 = vrot.lane.b32.xlu0 %v265_v1, %s5268_s0  ;;  %v271_v1 = vld [vmem:[#allocation2 + $0x90] sm:$0xff] }
 0x141   :  { %v6058_v47 = vpop.permute.xlu1 %1174 }
 0x142   :  { %v6068_v49 = vpop.permute.xlu0 %1180 }
 0x143   :  { %1418 = vrot.lane.b32.xlu1 %v264_v55, %s5268_s0  ;;  %8148 = vst [vmem:[#allocation59_spill] sm:$0xff] %v6068_v49  ;;  %v269_v55 = vld [vmem:[#allocation2 + $0x78] sm:$0xff]  ;;  %v6372_v49 = vld [vmem:[#allocation2 + $0x129] sm:$0xff] }
 0x144   :  { %1424 = vrot.lane.b32.xlu0 %v267_v45, %s5268_s0  ;;  %v273_v45 = vld [vmem:[#allocation2 + $0xa8] sm:$0xff] }
 0x145   :  { %v6064_v59 = vpop.permute.xlu1 %1178 }
 0x146   :  { %8147 = vst [vmem:[#allocation58_spill] sm:$0xff] %v6064_v59  ;;  %v6074_v35 = vpop.permute.xlu0 %1184 }
 0x147   :  { %1422 = vrot.lane.b32.xlu1 %v266_v53, %s5268_s0  ;;  %8150 = vst [vmem:[#allocation61_spill] sm:$0xff] %v6074_v35  ;;  %v6336_v35 = vld [vmem:[#allocation2 + $0xe1] sm:$0xff] }
 0x148   :  { %1428 = vrot.lane.b32.xlu0 %v269_v55, %s5268_s0  ;;  %v275_v55 = vld [vmem:[#allocation2 + $0xc0] sm:$0xff] }
 0x149   :  { %v6070_v41 = vpop.permute.xlu1 %1182 }
 0x14a   :  { %8149 = vst [vmem:[#allocation60_spill] sm:$0xff] %v6070_v41  ;;  %v6080_v53 = vpop.permute.xlu0 %1188 }
 0x14b   :  { %1426 = vrot.lane.b32.xlu1 %v268_v37, %s5268_s0  ;;  %8152 = vst [vmem:[#allocation63_spill] sm:$0xff] %v6080_v53  ;;  %v6308_v53 = vld [vmem:[#allocation2 + $0xa9] sm:$0xff] }
 0x14c   :  { %1432 = vrot.lane.b32.xlu0 %v271_v1, %s5268_s0  ;;  %v277_v1 = vld [vmem:[#allocation2 + $0xd8] sm:$0xff] }
 0x14d   :  { %v6076_v33 = vpop.permute.xlu1 %1186 }
 0x14e   :  { %8151 = vst [vmem:[#allocation62_spill] sm:$0xff] %v6076_v33  ;;  %v6086_v37 = vpop.permute.xlu0 %1192 }
 0x14f   :  { %1430 = vrot.lane.b32.xlu1 %v270_v29, %s5268_s0  ;;  %8154 = vst [vmem:[#allocation65_spill] sm:$0xff] %v6086_v37  ;;  %v6296_v37 = vld [vmem:[#allocation2 + $0x91] sm:$0xff] }
 0x150   :  { %1436 = vrot.lane.b32.xlu0 %v273_v45, %s5268_s0  ;;  %v279_v45 = vld [vmem:[#allocation2 + $0xf0] sm:$0xff] }
 0x151   :  { %v6082_v25 = vpop.permute.xlu1 %1190 }
 0x152   :  { %8153 = vst [vmem:[#allocation64_spill] sm:$0xff] %v6082_v25  ;;  %v6092_v29 = vpop.permute.xlu0 %1196  ;;  %v6300_v25 = vld [vmem:[#allocation2 + $0x99] sm:$0xff] }
 0x153   :  { %1434 = vrot.lane.b32.xlu1 %v272_v21, %s5268_s0  ;;  %8156 = vst [vmem:[#allocation67_spill] sm:$0xff] %v6092_v29  ;;  %v6284_v29 = vld [vmem:[#allocation2 + $0x79] sm:$0xff] }
 0x154   :  { %1440 = vrot.lane.b32.xlu0 %v275_v55, %s5268_s0  ;;  %v281_v55 = vld [vmem:[#allocation2 + $0x108] sm:$0xff] }
 0x155   :  { %v6088_v17 = vpop.permute.xlu1 %1194 }
 0x156   :  { %8155 = vst [vmem:[#allocation66_spill] sm:$0xff] %v6088_v17  ;;  %v6098_v21 = vpop.permute.xlu0 %1200  ;;  %v6288_v17 = vld [vmem:[#allocation2 + $0x81] sm:$0xff] }
 0x157   :  { %1438 = vrot.lane.b32.xlu1 %v274_v13, %s5268_s0  ;;  %8158 = vst [vmem:[#allocation69_spill] sm:$0xff] %v6098_v21  ;;  %v6272_v21 = vld [vmem:[#allocation2 + $0x61] sm:$0xff] }
 0x158   :  { %1444 = vrot.lane.b32.xlu0 %v277_v1, %s5268_s0  ;;  %v283_v1 = vld [vmem:[#allocation2 + $0x120] sm:$0xff] }
 0x159   :  { %v6094_v9 = vpop.permute.xlu1 %1198 }
 0x15a   :  { %8157 = vst [vmem:[#allocation68_spill] sm:$0xff] %v6094_v9  ;;  %v6104_v13 = vpop.permute.xlu0 %1204  ;;  %v6276_v9 = vld [vmem:[#allocation2 + $0x69] sm:$0xff] }
 0x15b   :  { %1442 = vrot.lane.b32.xlu1 %v276_v5, %s5268_s0  ;;  %8160 = vst [vmem:[#allocation71_spill] sm:$0xff] %v6104_v13  ;;  %v516_v13 = vld [vmem:[#allocation2 + $0x21] sm:$0xff] }
 0x15c   :  { %1448 = vrot.lane.b32.xlu0 %v279_v45, %s5268_s0  ;;  %v285_v45 = vld [vmem:[#allocation2 + $0x138] sm:$0xff] }
 0x15d   :  { %v6100_v61 = vpop.permute.xlu1 %1202 }
 0x15e   :  { %8159 = vst [vmem:[#allocation70_spill] sm:$0xff] %v6100_v61  ;;  %v6110_v5 = vpop.permute.xlu0 %1208  ;;  %v6252_v61 = vld [vmem:[#allocation2 + $0x39] sm:$0xff] }
 0x15f   :  { %1446 = vrot.lane.b32.xlu1 %v278_v57, %s5268_s0  ;;  %8162 = vst [vmem:[#allocation73_spill] sm:$0xff] %v6110_v5 }
 0x160   :  { %1452 = vrot.lane.b32.xlu0 %v281_v55, %s5268_s0  ;;  %v287_v55 = vld [vmem:[#allocation2 + $0x150] sm:$0xff] }
 0x161   :  { %v6106_v54 = vpop.permute.xlu1 %1206 }
 0x162   :  { %8161 = vst [vmem:[#allocation72_spill] sm:$0xff] %v6106_v54  ;;  %v6116_v57 = vpop.permute.xlu0 %1212  ;;  %v514_v54 = vld [vmem:[#allocation2 + $0x338] sm:$0xff] }
 0x163   :  { %1450 = vrot.lane.b32.xlu1 %v280_v52, %s5268_s0  ;;  %8164 = vst [vmem:[#allocation75_spill] sm:$0xff] %v6116_v57 }
 0x164   :  { %1456 = vrot.lane.b32.xlu0 %v283_v1, %s5268_s0  ;;  %v289_v1 = vld [vmem:[#allocation2 + $0x168] sm:$0xff] }
 0x165   :  { %v6112_v50 = vpop.permute.xlu1 %1210 }
 0x166   :  { %8163 = vst [vmem:[#allocation74_spill] sm:$0xff] %v6112_v50  ;;  %v6122_v52 = vpop.permute.xlu0 %1216  ;;  %v286_v50 = vld [vmem:[#allocation2 + $0x140] sm:$0xff] }
 0x167   :  { %1454 = vrot.lane.b32.xlu1 %v282_v48, %s5268_s0  ;;  %8166 = vst [vmem:[#allocation77_spill] sm:$0xff] %v6122_v52 }
 0x168   :  { %1460 = vrot.lane.b32.xlu0 %v285_v45, %s5268_s0 }
 0x169   :  { %v6118_v46 = vpop.permute.xlu1 %1214 }
 0x16a   :  { %8165 = vst [vmem:[#allocation76_spill] sm:$0xff] %v6118_v46  ;;  %v6128_v48 = vpop.permute.xlu0 %1220  ;;  %v288_v46 = vld [vmem:[#allocation2 + $0x158] sm:$0xff] }
 0x16b   :  { %1458 = vrot.lane.b32.xlu1 %v284_v44, %s5268_s0  ;;  %8168 = vst [vmem:[#allocation79_spill] sm:$0xff] %v6128_v48  ;;  %v482_v48 = vld [vmem:[#allocation2 + $0x188] sm:$0xff] }
 0x16c   :  { %1464 = vrot.lane.b32.xlu0 %v287_v55, %s5268_s0  ;;  %v293_v55 = vld [vmem:[#allocation2 + $0x1c8] sm:$0xff] }
 0x16d   :  { %v6124_v5 = vpop.permute.xlu1 %1218 }
 0x16e   :  { %8167 = vst [vmem:[#allocation78_spill] sm:$0xff] %v6124_v5  ;;  %v6134_v44 = vpop.permute.xlu0 %1224  ;;  %v290_v5 = vld [vmem:[#allocation2 + $0x170] sm:$0xff] }
 0x16f   :  { %1462 = vrot.lane.b32.xlu1 %v286_v50, %s5268_s0  ;;  %8170 = vst [vmem:[#allocation81_spill] sm:$0xff] %v6134_v44  ;;  %v481_v50 = vld [vmem:[#allocation2 + $0x180] sm:$0xff] }
 0x170   :  { %1468 = vrot.lane.b32.xlu0 %v289_v1, %s5268_s0  ;;  %v295_v1 = vld [vmem:[#allocation2 + $0x1e0] sm:$0xff] }
 0x171   :  { %v6130_v57 = vpop.permute.xlu1 %1222 }
 0x172   :  { %8169 = vst [vmem:[#allocation80_spill] sm:$0xff] %v6130_v57  ;;  %v6140_v45 = vpop.permute.xlu0 %1228 }
 0x173   :  { %1466 = vrot.lane.b32.xlu1 %v288_v46, %s5268_s0  ;;  %8172 = vst [vmem:[#allocation83_spill] sm:$0xff] %v6140_v45 }
 0x174   :  { %1472 = vrot.lane.b32.xlu0 %v481_v50, %s5268_s0  ;;  %v297_v50 = vld [vmem:[#allocation2 + $0x1f8] sm:$0xff] }
 0x175   :  { %v6136_v52 = vpop.permute.xlu1 %1226 }
 0x176   :  { %8171 = vst [vmem:[#allocation82_spill] sm:$0xff] %v6136_v52  ;;  %v6146_v46 = vpop.permute.xlu0 %1232  ;;  %v294_v52 = vld [vmem:[#allocation2 + $0x1d0] sm:$0xff] }
 0x177   :  { %1470 = vrot.lane.b32.xlu1 %v290_v5, %s5268_s0  ;;  %8174 = vst [vmem:[#allocation85_spill] sm:$0xff] %v6146_v46 }
 0x178   :  { %1476 = vrot.lane.b32.xlu0 %v293_v55, %s5268_s0  ;;  %v299_v55 = vld [vmem:[#allocation2 + $0x210] sm:$0xff] }
 0x179   :  { %v6142_v57 = vpop.permute.xlu1 %1230 }
 0x17a   :  { %8173 = vst [vmem:[#allocation84_spill] sm:$0xff] %v6142_v57  ;;  %v6152_v5 = vpop.permute.xlu0 %1236  ;;  %v296_v57 = vld [vmem:[#allocation2 + $0x1e8] sm:$0xff] }
 0x17b   :  { %1474 = vrot.lane.b32.xlu1 %v482_v48, %s5268_s0  ;;  %8176 = vst [vmem:[#allocation87_spill] sm:$0xff] %v6152_v5 }
 0x17c   :  { %1480 = vrot.lane.b32.xlu0 %v295_v1, %s5268_s0  ;;  %v301_v1 = vld [vmem:[#allocation2 + $0x228] sm:$0xff] }
 0x17d   :  { %v6148_v44 = vpop.permute.xlu1 %1234 }
 0x17e   :  { %8175 = vst [vmem:[#allocation86_spill] sm:$0xff] %v6148_v44  ;;  %v6158_v48 = vpop.permute.xlu0 %1240  ;;  %v298_v44 = vld [vmem:[#allocation2 + $0x200] sm:$0xff] }
 0x17f   :  { %1478 = vrot.lane.b32.xlu1 %v294_v52, %s5268_s0  ;;  %8178 = vst [vmem:[#allocation89_spill] sm:$0xff] %v6158_v48 }
 0x180   :  { %1484 = vrot.lane.b32.xlu0 %v297_v50, %s5268_s0  ;;  %v303_v50 = vld [vmem:[#allocation2 + $0x240] sm:$0xff] }
 0x181   :  { %v6154_v45 = vpop.permute.xlu1 %1238 }
 0x182   :  { %8177 = vst [vmem:[#allocation88_spill] sm:$0xff] %v6154_v45  ;;  %v6164_v52 = vpop.permute.xlu0 %1244  ;;  %v300_v45 = vld [vmem:[#allocation2 + $0x218] sm:$0xff] }
 0x183   :  { %1482 = vrot.lane.b32.xlu1 %v296_v57, %s5268_s0  ;;  %8180 = vst [vmem:[#allocation91_spill] sm:$0xff] %v6164_v52 }
 0x184   :  { %1488 = vrot.lane.b32.xlu0 %v299_v55, %s5268_s0  ;;  %v305_v55 = vld [vmem:[#allocation2 + $0x258] sm:$0xff] }
 0x185   :  { %v6160_v46 = vpop.permute.xlu1 %1242 }
 0x186   :  { %8179 = vst [vmem:[#allocation90_spill] sm:$0xff] %v6160_v46  ;;  %v6170_v57 = vpop.permute.xlu0 %1248  ;;  %v302_v46 = vld [vmem:[#allocation2 + $0x230] sm:$0xff] }
 0x187   :  { %1486 = vrot.lane.b32.xlu1 %v298_v44, %s5268_s0  ;;  %8182 = vst [vmem:[#allocation93_spill] sm:$0xff] %v6170_v57 }
 0x188   :  { %1492 = vrot.lane.b32.xlu0 %v301_v1, %s5268_s0  ;;  %v307_v1 = vld [vmem:[#allocation2 + $0x270] sm:$0xff] }
 0x189   :  { %v6166_v5 = vpop.permute.xlu1 %1246 }
 0x18a   :  { %8181 = vst [vmem:[#allocation92_spill] sm:$0xff] %v6166_v5  ;;  %v6176_v44 = vpop.permute.xlu0 %1252  ;;  %v304_v5 = vld [vmem:[#allocation2 + $0x248] sm:$0xff] }
 0x18b   :  { %1490 = vrot.lane.b32.xlu1 %v300_v45, %s5268_s0  ;;  %8184 = vst [vmem:[#allocation95_spill] sm:$0xff] %v6176_v44 }
 0x18c   :  { %1496 = vrot.lane.b32.xlu0 %v303_v50, %s5268_s0  ;;  %v309_v50 = vld [vmem:[#allocation2 + $0x288] sm:$0xff] }
 0x18d   :  { %v6172_v48 = vpop.permute.xlu1 %1250 }
 0x18e   :  { %8183 = vst [vmem:[#allocation94_spill] sm:$0xff] %v6172_v48  ;;  %v6182_v45 = vpop.permute.xlu0 %1256  ;;  %v306_v48 = vld [vmem:[#allocation2 + $0x260] sm:$0xff] }
 0x18f   :  { %1494 = vrot.lane.b32.xlu1 %v302_v46, %s5268_s0  ;;  %8186 = vst [vmem:[#allocation97_spill] sm:$0xff] %v6182_v45 }
 0x190   :  { %1500 = vrot.lane.b32.xlu0 %v305_v55, %s5268_s0  ;;  %v311_v55 = vld [vmem:[#allocation2 + $0x2a0] sm:$0xff] }
 0x191   :  { %v6178_v52 = vpop.permute.xlu1 %1254 }
 0x192   :  { %8185 = vst [vmem:[#allocation96_spill] sm:$0xff] %v6178_v52  ;;  %v6188_v46 = vpop.permute.xlu0 %1260  ;;  %v308_v52 = vld [vmem:[#allocation2 + $0x278] sm:$0xff] }
 0x193   :  { %1498 = vrot.lane.b32.xlu1 %v304_v5, %s5268_s0  ;;  %8188 = vst [vmem:[#allocation99_spill] sm:$0xff] %v6188_v46 }
 0x194   :  { %1504 = vrot.lane.b32.xlu0 %v307_v1, %s5268_s0  ;;  %v313_v1 = vld [vmem:[#allocation2 + $0x2b8] sm:$0xff] }
 0x195   :  { %v6184_v57 = vpop.permute.xlu1 %1258 }
 0x196   :  { %8187 = vst [vmem:[#allocation98_spill] sm:$0xff] %v6184_v57  ;;  %v6194_v5 = vpop.permute.xlu0 %1264  ;;  %v310_v57 = vld [vmem:[#allocation2 + $0x290] sm:$0xff] }
 0x197   :  { %1502 = vrot.lane.b32.xlu1 %v306_v48, %s5268_s0  ;;  %8190 = vst [vmem:[#allocation101_spill] sm:$0xff] %v6194_v5 }
 0x198   :  { %1508 = vrot.lane.b32.xlu0 %v309_v50, %s5268_s0  ;;  %v315_v50 = vld [vmem:[#allocation2 + $0x2d0] sm:$0xff] }
 0x199   :  { %v6190_v44 = vpop.permute.xlu1 %1262 }
 0x19a   :  { %8189 = vst [vmem:[#allocation100_spill] sm:$0xff] %v6190_v44  ;;  %v6200_v48 = vpop.permute.xlu0 %1268  ;;  %v312_v44 = vld [vmem:[#allocation2 + $0x2a8] sm:$0xff] }
 0x19b   :  { %1506 = vrot.lane.b32.xlu1 %v308_v52, %s5268_s0  ;;  %8192 = vst [vmem:[#allocation103_spill] sm:$0xff] %v6200_v48 }
 0x19c   :  { %1512 = vrot.lane.b32.xlu0 %v311_v55, %s5268_s0  ;;  %v317_v55 = vld [vmem:[#allocation2 + $0x2e8] sm:$0xff] }
 0x19d   :  { %v6196_v45 = vpop.permute.xlu1 %1266 }
 0x19e   :  { %8191 = vst [vmem:[#allocation102_spill] sm:$0xff] %v6196_v45  ;;  %v6206_v52 = vpop.permute.xlu0 %1272  ;;  %v314_v45 = vld [vmem:[#allocation2 + $0x2c0] sm:$0xff] }
 0x19f   :  { %1510 = vrot.lane.b32.xlu1 %v310_v57, %s5268_s0  ;;  %8194 = vst [vmem:[#allocation105_spill] sm:$0xff] %v6206_v52 }
 0x1a0   :  { %1516 = vrot.lane.b32.xlu0 %v313_v1, %s5268_s0  ;;  %v319_v1 = vld [vmem:[#allocation2 + $0x300] sm:$0xff] }
 0x1a1   :  { %v6202_v46 = vpop.permute.xlu1 %1270 }
 0x1a2   :  { %8193 = vst [vmem:[#allocation104_spill] sm:$0xff] %v6202_v46  ;;  %v6212_v57 = vpop.permute.xlu0 %1276  ;;  %v316_v46 = vld [vmem:[#allocation2 + $0x2d8] sm:$0xff] }
 0x1a3   :  { %1514 = vrot.lane.b32.xlu1 %v312_v44, %s5268_s0  ;;  %8196 = vst [vmem:[#allocation107_spill] sm:$0xff] %v6212_v57 }
 0x1a4   :  { %1520 = vrot.lane.b32.xlu0 %v315_v50, %s5268_s0  ;;  %v321_v50 = vld [vmem:[#allocation2 + $0x318] sm:$0xff] }
 0x1a5   :  { %v6208_v5 = vpop.permute.xlu1 %1274 }
 0x1a6   :  { %8195 = vst [vmem:[#allocation106_spill] sm:$0xff] %v6208_v5  ;;  %v6218_v44 = vpop.permute.xlu0 %1280  ;;  %v318_v5 = vld [vmem:[#allocation2 + $0x2f0] sm:$0xff] }
 0x1a7   :  { %1518 = vrot.lane.b32.xlu1 %v314_v45, %s5268_s0  ;;  %8198 = vst [vmem:[#allocation109_spill] sm:$0xff] %v6218_v44 }
 0x1a8   :  { %1524 = vrot.lane.b32.xlu0 %v317_v55, %s5268_s0 }
 0x1a9   :  { %v6214_v48 = vpop.permute.xlu1 %1278 }
 0x1aa   :  { %8197 = vst [vmem:[#allocation108_spill] sm:$0xff] %v6214_v48  ;;  %v6224_v45 = vpop.permute.xlu0 %1412  ;;  %v320_v48 = vld [vmem:[#allocation2 + $0x308] sm:$0xff] }
 0x1ab   :  { %1522 = vrot.lane.b32.xlu1 %v316_v46, %s5268_s0 }
 0x1ac   :  { %1528 = vrot.lane.b32.xlu0 %v319_v1, %s5268_s0 }
 0x1ad   :  { %v6220_v52 = vpop.permute.xlu1 %1282 }
 0x1ae   :  { %8199 = vst [vmem:[#allocation110_spill] sm:$0xff] %v6220_v52  ;;  %v6230_v46 = vpop.permute.xlu0 %1416  ;;  %v322_v52 = vld [vmem:[#allocation2 + $0x320] sm:$0xff] }
 0x1af   :  { %1526 = vrot.lane.b32.xlu1 %v318_v5, %s5268_s0  ;;  %v513_v5 = vld [vmem:[#allocation2 + $0x330] sm:$0xff] }
 0x1b0   :  { %1532 = vrot.lane.b32.xlu0 %v321_v50, %s5268_s0 }
 0x1b1   :  { %v6226_v57 = vpop.permute.xlu1 %1414 }
 0x1b2   :  { %v6236_v55 = vpop.permute.xlu0 %1420 }
 0x1b3   :  { %1530 = vrot.lane.b32.xlu1 %v320_v48, %s5268_s0  ;;  %v515_v48 = vld [vmem:[#allocation2 + $0x19] sm:$0xff] }
 0x1b4   :  { %1536 = vrot.lane.b32.xlu0 %v513_v5, %s5268_s0 }
 0x1b5   :  { %v6232_v44 = vpop.permute.xlu1 %1418 }
 0x1b6   :  { %v6242_v1 = vpop.permute.xlu0 %1424 }
 0x1b7   :  { %1534 = vrot.lane.b32.xlu1 %v322_v52, %s5268_s0  ;;  %v6248_v52 = vld [vmem:[#allocation2 + $0x31] sm:$0xff] }
 0x1b8   :  { %1668 = vrot.lane.b32.xlu0 %v515_v48, %s5269_s25  ;;  %v6264_v48 = vld [vmem:[#allocation2 + $0x51] sm:$0xff] }
 0x1b9   :  { %v6238_v42 = vpop.permute.xlu1 %1422 }
 0x1ba   :  { %v6250_v50 = vpop.permute.xlu0 %1428 }
 0x1bb   :  { %1538 = vrot.lane.b32.xlu1 %v514_v54, %s5268_s0  ;;  %v6260_v54 = vld [vmem:[#allocation2 + $0x49] sm:$0xff] }
 0x1bc   :  { %1672 = vrot.lane.b32.xlu0 %v6248_v52, %s5269_s25 }
 0x1bd   :  { %v6244_v40 = vpop.permute.xlu1 %1426 }
 0x1be   :  { %v6262_v38 = vpop.permute.xlu0 %1432 }
 0x1bf   :  { %1670 = vrot.lane.b32.xlu1 %v516_v13, %s5269_s25  ;;  %8200 = vst [vmem:[#allocation111_spill] sm:$0xff] %v6262_v38 }
 0x1c0   :  { %1676 = vrot.lane.b32.xlu0 %v6260_v54, %s5269_s25 }
 0x1c1   :  { %v6254_v5 = vpop.permute.xlu1 %1430 }
 0x1c2   :  { %v6274_v36 = vpop.permute.xlu0 %1436 }
 0x1c3   :  { %1674 = vrot.lane.b32.xlu1 %v6252_v61, %s5269_s25  ;;  %8202 = vst [vmem:[#allocation113_spill] sm:$0xff] %v6274_v36 }
 0x1c4   :  { %1680 = vrot.lane.b32.xlu0 %v6272_v21, %s5269_s25 }
 0x1c5   :  { %v6266_v13 = vpop.permute.xlu1 %1434 }
 0x1c6   :  { %8201 = vst [vmem:[#allocation112_spill] sm:$0xff] %v6266_v13  ;;  %v6286_v32 = vpop.permute.xlu0 %1440  ;;  %v6384_v13 = vld [vmem:[#allocation2 + $0x141] sm:$0xff] }
 0x1c7   :  { %1678 = vrot.lane.b32.xlu1 %v6264_v48, %s5269_s25  ;;  %8204 = vst [vmem:[#allocation115_spill] sm:$0xff] %v6286_v32 }
 0x1c8   :  { %1684 = vrot.lane.b32.xlu0 %v6284_v29, %s5269_s25 }
 0x1c9   :  { %v6278_v34 = vpop.permute.xlu1 %1438 }
 0x1ca   :  { %8203 = vst [vmem:[#allocation114_spill] sm:$0xff] %v6278_v34  ;;  %v6298_v28 = vpop.permute.xlu0 %1444  ;;  %v6348_v34 = vld [vmem:[#allocation2 + $0xf9] sm:$0xff] }
 0x1cb   :  { %1682 = vrot.lane.b32.xlu1 %v6276_v9, %s5269_s25  ;;  %8206 = vst [vmem:[#allocation117_spill] sm:$0xff] %v6298_v28 }
 0x1cc   :  { %1688 = vrot.lane.b32.xlu0 %v6296_v37, %s5269_s25 }
 0x1cd   :  { %v6290_v30 = vpop.permute.xlu1 %1442 }
 0x1ce   :  { %8205 = vst [vmem:[#allocation116_spill] sm:$0xff] %v6290_v30  ;;  %v6310_v24 = vpop.permute.xlu0 %1448  ;;  %v6312_v30 = vld [vmem:[#allocation2 + $0xb1] sm:$0xff] }
 0x1cf   :  { %1686 = vrot.lane.b32.xlu1 %v6288_v17, %s5269_s25  ;;  %8208 = vst [vmem:[#allocation119_spill] sm:$0xff] %v6310_v24 }
 0x1d0   :  { %1692 = vrot.lane.b32.xlu0 %v6308_v53, %s5269_s25 }
 0x1d1   :  { %v6302_v26 = vpop.permute.xlu1 %1446 }
 0x1d2   :  { %8207 = vst [vmem:[#allocation118_spill] sm:$0xff] %v6302_v26  ;;  %v6320_v26 = vld [vmem:[#allocation2 + $0xc1] sm:$0xff]  ;;  %v6322_v28 = vpop.permute.xlu0 %1452 }
 0x1d3   :  { %1690 = vrot.lane.b32.xlu1 %v6300_v25, %s5269_s25  ;;  %8210 = vst [vmem:[#allocation121_spill] sm:$0xff] %v6322_v28 }
 0x1d4   :  { %1696 = vrot.lane.b32.xlu0 %v6320_v26, %s5269_s25 }
 0x1d5   :  { %v6314_v33 = vpop.permute.xlu1 %1450 }
 0x1d6   :  { %8209 = vst [vmem:[#allocation120_spill] sm:$0xff] %v6314_v33  ;;  %v6332_v33 = vld [vmem:[#allocation2 + $0xd9] sm:$0xff]  ;;  %v6334_v24 = vpop.permute.xlu0 %1456 }
 0x1d7   :  { %1694 = vrot.lane.b32.xlu1 %v6312_v30, %s5269_s25  ;;  %8212 = vst [vmem:[#allocation123_spill] sm:$0xff] %v6334_v24 }
 0x1d8   :  { %1700 = vrot.lane.b32.xlu0 %v6332_v33, %s5269_s25 }
 0x1d9   :  { %v6326_v32 = vpop.permute.xlu1 %1454 }
 0x1da   :  { %8211 = vst [vmem:[#allocation122_spill] sm:$0xff] %v6326_v32  ;;  %v6344_v32 = vld [vmem:[#allocation2 + $0xf1] sm:$0xff]  ;;  %v6346_v28 = vpop.permute.xlu0 %1460 }
 0x1db   :  { %1698 = vrot.lane.b32.xlu1 %v6324_v22, %s5269_s25  ;;  %8214 = vst [vmem:[#allocation125_spill] sm:$0xff] %v6346_v28 }
 0x1dc   :  { %1704 = vrot.lane.b32.xlu0 %v6344_v32, %s5269_s25 }
 0x1dd   :  { %v6338_v20 = vpop.permute.xlu1 %1458 }
 0x1de   :  { %8213 = vst [vmem:[#allocation124_spill] sm:$0xff] %v6338_v20  ;;  %v6356_v20 = vld [vmem:[#allocation2 + $0x109] sm:$0xff]  ;;  %v6358_v24 = vpop.permute.xlu0 %1464 }
 0x1df   :  { %1702 = vrot.lane.b32.xlu1 %v6336_v35, %s5269_s25  ;;  %8216 = vst [vmem:[#allocation127_spill] sm:$0xff] %v6358_v24 }
 0x1e0   :  { %1708 = vrot.lane.b32.xlu0 %v6356_v20, %s5269_s25 }
 0x1e1   :  { %v6350_v41 = vpop.permute.xlu1 %1462 }
 0x1e2   :  { %8215 = vst [vmem:[#allocation126_spill] sm:$0xff] %v6350_v41  ;;  %v6368_v41 = vld [vmem:[#allocation2 + $0x121] sm:$0xff]  ;;  %v6370_v28 = vpop.permute.xlu0 %1468 }
 0x1e3   :  { %1706 = vrot.lane.b32.xlu1 %v6348_v34, %s5269_s25  ;;  %8218 = vst [vmem:[#allocation129_spill] sm:$0xff] %v6370_v28  ;;  %v3407_v28 = vld [vmem:[%s8085_s1 + $0x20] sm:$0xf] }
 0x1e4   :  { %1712 = vrot.lane.b32.xlu0 %v6368_v41, %s5269_s25  ;;  %4985 = vmatprep.subr.msk.mxu0 %vm3608_vm2, %v3407_v28 }
 0x1e5   :  { %v6362_v36 = vpop.permute.xlu1 %1466  ;;  %4986 = vmatpush3.msk.msra.mxu0 %vm3608_vm2, %v3407_v28  ;;  %v580_v28 = vld [vmem:[#allocation2 + $0x22] sm:$0xff] }
 0x1e6   :  { %8217 = vst [vmem:[#allocation128_spill] sm:$0xff] %v6362_v36  ;;  %v6380_v36 = vld [vmem:[#allocation2 + $0x139] sm:$0xff]  ;;  %v6382_v24 = vpop.permute.xlu0 %1472 }
 0x1e7   :  { %1710 = vrot.lane.b32.xlu1 %v6360_v18, %s5269_s25  ;;  %8220 = vst [vmem:[#allocation131_spill] sm:$0xff] %v6382_v24  ;;  %v6399_v24 = vld [vmem:[#allocation2 + $0x159] sm:$0xff] }
 0x1e8   :  { %1716 = vrot.lane.b32.xlu0 %v6380_v36, %s5269_s25  ;;  %8224 = vst [vmem:[#allocation135_spill] sm:$0xff] %v6399_v24 }
 0x1e9   :  { %v6374_v16 = vpop.permute.xlu1 %1470 }
 0x1ea   :  { %8219 = vst [vmem:[#allocation130_spill] sm:$0xff] %v6374_v16  ;;  %v6392_v16 = vld [vmem:[#allocation2 + $0x151] sm:$0xff]  ;;  %v6397_v14 = vpop.permute.xlu0 %1476 }
 0x1eb   :  { %1714 = vrot.lane.b32.xlu1 %v6372_v49, %s5269_s25  ;;  %8222 = vst [vmem:[#allocation133_spill] sm:$0xff] %v6392_v16  ;;  %8223 = vst [vmem:[#allocation134_spill] sm:$0xff] %v6397_v14  ;;  %v3405_v14 = vld [vmem:[%s8085_s1 + $0x10] sm:$0xff] }
 0x1ec   :  { %1720 = vrot.lane.b32.xlu0 %v6392_v16, %s5269_s25  ;;  %v3404_v16 = vld [vmem:[%s8085_s1 + $0x8] sm:$0xff] }
 0x1ed   :  { %v6386_v59 = vpop.permute.xlu1 %1474 }
 0x1ee   :  { %8221 = vst [vmem:[#allocation132_spill] sm:$0xff] %v6386_v59  ;;  %v3406_v59 = vld [vmem:[%s8085_s1 + $0x18] sm:$0xff]  ;;  %v6413_v12 = vpop.permute.xlu0 %1480 }
 0x1ef   :  { %1718 = vrot.lane.b32.xlu1 %v6384_v13, %s5269_s25  ;;  %4987 = vmatprep.subr.mxu0 %v3406_v59  ;;  %8226 = vst [vmem:[#allocation137_spill] sm:$0xff] %v6413_v12  ;;  %v3403_v12 = vld [vmem:[%s8085_s1] sm:$0xff]  ;;  %s5273_s1 = smov 32  }
 0x1f0   :  { %4988 = vmatpush3.msra.mxu0 %v3406_v59  ;;  %1924 = vrot.lane.b32.xlu0 %v579_v7, %s5270_s9  ;;  %v644_v59 = vld [vmem:[#allocation2 + $0x30] sm:$0xff] }
 0x1f1   :  { %v6401_v38 = vpop.permute.xlu1 %1478  ;;  %4989 = vmatprep.subr.mxu0 %v3405_v14 }
 0x1f2   :  { %8225 = vst [vmem:[#allocation136_spill] sm:$0xff] %v6401_v38  ;;  %4990 = vmatpush3.msra.mxu0 %v3405_v14 }
 0x1f3   :  { %1722 = vrot.lane.b32.xlu1 %v6399_v24, %s5269_s25  ;;  %4991 = vmatprep.subr.mxu0 %v3404_v16  ;;  %v6425_v24 = vpop.permute.xlu0 %1484 }
 0x1f4   :  { %4992 = vmatpush3.msra.mxu0 %v3404_v16  ;;  %8228 = vst [vmem:[#allocation139_spill] sm:$0xff] %v6425_v24  ;;  %2180 = vrot.lane.b32.xlu0 %v644_v59, %s5271_s13  ;;  %v772_v16 = vld [vmem:[#allocation2 + $0x32] sm:$0xff] }
 0x1f5   :  { %v6415_v38 = vpop.permute.xlu1 %1482  ;;  %4993 = vmatprep.subr.mxu0 %v3403_v12 }
 0x1f6   :  { %8227 = vst [vmem:[#allocation138_spill] sm:$0xff] %v6415_v38  ;;  %v645_v38 = vld [vmem:[#allocation2 + $0x38] sm:$0xff]  ;;  %4994 = vmatpush3.msra.mxu0 %v3403_v12 }
 0x1f7   :  { %1926 = vrot.lane.b32.xlu1 %v580_v28, %s5270_s9  ;;  %v6431_v7 = vpop.permute.xlu0 %1488 }
 0x1f8   :  { %8230 = vst [vmem:[#allocation141_spill] sm:$0xff] %v6431_v7  ;;  %2436 = vrot.lane.b32.xlu0 %v6248_v52, %s5272_s14 }
 0x1f9   :  { %v6427_v14 = vpop.permute.xlu1 %1486 }
 0x1fa   :  { %8229 = vst [vmem:[#allocation140_spill] sm:$0xff] %v6427_v14 }
 0x1fb   :  { %2182 = vrot.lane.b32.xlu1 %v645_v38, %s5271_s13  ;;  %v6439_v24 = vpop.permute.xlu0 %1492  ;;  %v773_v38 = vld [vmem:[#allocation2 + $0x3a] sm:$0xff] }
 0x1fc   :  { %8232 = vst [vmem:[#allocation143_spill] sm:$0xff] %v6439_v24  ;;  %2692 = vrot.lane.b32.xlu0 %v772_v16, %s5273_s1  ;;  %v647_v24 = vld [vmem:[#allocation2 + $0x50] sm:$0xff] }
 0x1fd   :  { %v6433_v28 = vpop.permute.xlu1 %1490 }
 0x1fe   :  { %8231 = vst [vmem:[#allocation142_spill] sm:$0xff] %v6433_v28 }
 0x1ff   :  { %2438 = vrot.lane.b32.xlu1 %v6252_v61, %s5272_s14  ;;  %v6445_v59 = vpop.permute.xlu0 %1496  ;;  %v646_v61 = vld [vmem:[#allocation2 + $0x48] sm:$0xff] }
 0x200   :  { %8234 = vst [vmem:[#allocation145_spill] sm:$0xff] %v6445_v59  ;;  %2694 = vrot.lane.b32.xlu0 %v773_v38, %s5273_s1  ;;  %v655_v59 = vld [vmem:[#allocation2 + $0xb0] sm:$0xff] }
 0x201   :  { %v6441_v12 = vpop.permute.xlu1 %1494 }
 0x202   :  { %8233 = vst [vmem:[#allocation144_spill] sm:$0xff] %v6441_v12 }
 0x203   :  { %1928 = vrot.lane.b32.xlu1 %v772_v16, %s5270_s9  ;;  %v6451_v52 = vpop.permute.xlu0 %1500 }
 0x204   :  { %8236 = vst [vmem:[#allocation147_spill] sm:$0xff] %v6451_v52  ;;  %2184 = vrot.lane.b32.xlu0 %v646_v61, %s5271_s13 }
 0x205   :  { %v6447_v28 = vpop.permute.xlu1 %1498 }
 0x206   :  { %8235 = vst [vmem:[#allocation146_spill] sm:$0xff] %v6447_v28 }
 0x207   :  { %1930 = vrot.lane.b32.xlu1 %v773_v38, %s5270_s9  ;;  %v6457_v16 = vpop.permute.xlu0 %1504  ;;  %v774_v38 = vld [vmem:[#allocation2 + $0x4a] sm:$0xff] }
 0x208   :  { %8238 = vst [vmem:[#allocation149_spill] sm:$0xff] %v6457_v16  ;;  %2440 = vrot.lane.b32.xlu0 %v6260_v54, %s5272_s14  ;;  %v648_v54 = vld [vmem:[#allocation2 + $0x60] sm:$0xff] }
 0x209   :  { %v6453_v7 = vpop.permute.xlu1 %1502 }
 0x20a   :  { %8237 = vst [vmem:[#allocation148_spill] sm:$0xff] %v6453_v7 }
 0x20b   :  { %2186 = vrot.lane.b32.xlu1 %v647_v24, %s5271_s13  ;;  %v6465_v28 = vpop.permute.xlu0 %1508  ;;  %v775_v24 = vld [vmem:[#allocation2 + $0x52] sm:$0xff] }
 0x20c   :  { %8240 = vst [vmem:[#allocation151_spill] sm:$0xff] %v6465_v28  ;;  %2696 = vrot.lane.b32.xlu0 %v774_v38, %s5273_s1 }
 0x20d   :  { %v6459_v12 = vpop.permute.xlu1 %1506 }
 0x20e   :  { %8239 = vst [vmem:[#allocation150_spill] sm:$0xff] %v6459_v12  ;;  %v649_v12 = vld [vmem:[#allocation2 + $0x68] sm:$0xff] }
 0x20f   :  { %2442 = vrot.lane.b32.xlu1 %v6264_v48, %s5272_s14  ;;  %v6471_v61 = vpop.permute.xlu0 %1512 }
 0x210   :  { %8242 = vst [vmem:[#allocation153_spill] sm:$0xff] %v6471_v61  ;;  %2698 = vrot.lane.b32.xlu0 %v775_v24, %s5273_s1 }
 0x211   :  { %v6467_v52 = vpop.permute.xlu1 %1510 }
 0x212   :  { %8241 = vst [vmem:[#allocation152_spill] sm:$0xff] %v6467_v52 }
 0x213   :  { %1932 = vrot.lane.b32.xlu1 %v774_v38, %s5270_s9  ;;  %v6477_v48 = vpop.permute.xlu0 %1516 }
 0x214   :  { %8244 = vst [vmem:[#allocation155_spill] sm:$0xff] %v6477_v48  ;;  %2188 = vrot.lane.b32.xlu0 %v648_v54, %s5271_s13 }
 0x215   :  { %v6473_v16 = vpop.permute.xlu1 %1514 }
 0x216   :  { %8243 = vst [vmem:[#allocation154_spill] sm:$0xff] %v6473_v16 }
 0x217   :  { %1934 = vrot.lane.b32.xlu1 %v775_v24, %s5270_s9  ;;  %v6483_v38 = vpop.permute.xlu0 %1520  ;;  %v776_v24 = vld [vmem:[#allocation2 + $0x62] sm:$0xff] }
 0x218   :  { %8246 = vst [vmem:[#allocation157_spill] sm:$0xff] %v6483_v38  ;;  %2444 = vrot.lane.b32.xlu0 %v6272_v21, %s5272_s14  ;;  %v650_v21 = vld [vmem:[#allocation2 + $0x78] sm:$0xff] }
 0x219   :  { %v6479_v28 = vpop.permute.xlu1 %1518 }
 0x21a   :  { %8245 = vst [vmem:[#allocation156_spill] sm:$0xff] %v6479_v28 }
 0x21b   :  { %2190 = vrot.lane.b32.xlu1 %v649_v12, %s5271_s13  ;;  %v6491_v16 = vpop.permute.xlu0 %1524  ;;  %v777_v12 = vld [vmem:[#allocation2 + $0x6a] sm:$0xff] }
 0x21c   :  { %8248 = vst [vmem:[#allocation159_spill] sm:$0xff] %v6491_v16  ;;  %2700 = vrot.lane.b32.xlu0 %v776_v24, %s5273_s1 }
 0x21d   :  { %v6485_v52 = vpop.permute.xlu1 %1522 }
 0x21e   :  { %8247 = vst [vmem:[#allocation158_spill] sm:$0xff] %v6485_v52  ;;  %v651_v52 = vld [vmem:[#allocation2 + $0x80] sm:$0xff] }
 0x21f   :  { %2446 = vrot.lane.b32.xlu1 %v6276_v9, %s5272_s14  ;;  %v6497_v54 = vpop.permute.xlu0 %1528 }
 0x220   :  { %8250 = vst [vmem:[#allocation161_spill] sm:$0xff] %v6497_v54  ;;  %2702 = vrot.lane.b32.xlu0 %v777_v12, %s5273_s1 }
 0x221   :  { %v6493_v48 = vpop.permute.xlu1 %1526 }
 0x222   :  { %8249 = vst [vmem:[#allocation160_spill] sm:$0xff] %v6493_v48 }
 0x223   :  { %1936 = vrot.lane.b32.xlu1 %v776_v24, %s5270_s9  ;;  %v6503_v9 = vpop.permute.xlu0 %1532 }
 0x224   :  { %8252 = vst [vmem:[#allocation163_spill] sm:$0xff] %v6503_v9  ;;  %2192 = vrot.lane.b32.xlu0 %v650_v21, %s5271_s13 }
 0x225   :  { %v6499_v38 = vpop.permute.xlu1 %1530 }
 0x226   :  { %8251 = vst [vmem:[#allocation162_spill] sm:$0xff] %v6499_v38 }
 0x227   :  { %1938 = vrot.lane.b32.xlu1 %v777_v12, %s5270_s9  ;;  %v6509_v24 = vpop.permute.xlu0 %1536  ;;  %v778_v12 = vld [vmem:[#allocation2 + $0x7a] sm:$0xff] }
 0x228   :  { %8254 = vst [vmem:[#allocation165_spill] sm:$0xff] %v6509_v24  ;;  %2448 = vrot.lane.b32.xlu0 %v6284_v29, %s5272_s14  ;;  %v652_v29 = vld [vmem:[#allocation2 + $0x90] sm:$0xff] }
 0x229   :  { %v6505_v16 = vpop.permute.xlu1 %1534 }
 0x22a   :  { %8253 = vst [vmem:[#allocation164_spill] sm:$0xff] %v6505_v16 }
 0x22b   :  { %2194 = vrot.lane.b32.xlu1 %v651_v52, %s5271_s13  ;;  %v6517_v38 = vpop.permute.xlu0 %1668  ;;  %v779_v52 = vld [vmem:[#allocation2 + $0x82] sm:$0xff] }
 0x22c   :  { %2704 = vrot.lane.b32.xlu0 %v778_v12, %s5273_s1 }
 0x22d   :  { %v6511_v48 = vpop.permute.xlu1 %1538 }
 0x22e   :  { %8255 = vst [vmem:[#allocation166_spill] sm:$0xff] %v6511_v48  ;;  %v653_v48 = vld [vmem:[#allocation2 + $0x98] sm:$0xff] }
 0x22f   :  { %2450 = vrot.lane.b32.xlu1 %v6288_v17, %s5272_s14  ;;  %v6523_v21 = vpop.permute.xlu0 %1672 }
 0x230   :  { %2706 = vrot.lane.b32.xlu0 %v779_v52, %s5273_s1 }
 0x231   :  { %v6519_v9 = vpop.permute.xlu1 %1670 }
 0x233   :  { %1940 = vrot.lane.b32.xlu1 %v778_v12, %s5270_s9  ;;  %v6529_v17 = vpop.permute.xlu0 %1676 }
 0x234   :  { %2196 = vrot.lane.b32.xlu0 %v652_v29, %s5271_s13 }
 0x235   :  { %v6525_v24 = vpop.permute.xlu1 %1674 }
 0x237   :  { %1942 = vrot.lane.b32.xlu1 %v779_v52, %s5270_s9  ;;  %v6535_v12 = vpop.permute.xlu0 %1680  ;;  %v780_v52 = vld [vmem:[#allocation2 + $0x92] sm:$0xff] }
 0x238   :  { %2452 = vrot.lane.b32.xlu0 %v6296_v37, %s5272_s14  ;;  %v654_v37 = vld [vmem:[#allocation2 + $0xa8] sm:$0xff] }
 0x239   :  { %v6531_v16 = vpop.permute.xlu1 %1678 }
 0x23b   :  { %2198 = vrot.lane.b32.xlu1 %v653_v48, %s5271_s13  ;;  %v6543_v28 = vpop.permute.xlu0 %1684  ;;  %v781_v48 = vld [vmem:[#allocation2 + $0x9a] sm:$0xff] }
 0x23c   :  { %2708 = vrot.lane.b32.xlu0 %v780_v52, %s5273_s1 }
 0x23d   :  { %v6537_v54 = vpop.permute.xlu1 %1682 }
 0x23f   :  { %2454 = vrot.lane.b32.xlu1 %v6300_v25, %s5272_s14  ;;  %v6549_v29 = vpop.permute.xlu0 %1688 }
 0x240   :  { %2710 = vrot.lane.b32.xlu0 %v781_v48, %s5273_s1 }
 0x241   :  { %v6545_v61 = vpop.permute.xlu1 %1686 }
 0x242   :  { %8256 = vst [vmem:[#allocation167_spill] sm:$0xff] %v6545_v61 }
 0x243   :  { %1944 = vrot.lane.b32.xlu1 %v780_v52, %s5270_s9  ;;  %v6555_v25 = vpop.permute.xlu0 %1692 }
 0x244   :  { %8258 = vst [vmem:[#allocation169_spill] sm:$0xff] %v6555_v25  ;;  %2200 = vrot.lane.b32.xlu0 %v654_v37, %s5271_s13 }
 0x245   :  { %v6551_v7 = vpop.permute.xlu1 %1690 }
 0x246   :  { %8257 = vst [vmem:[#allocation168_spill] sm:$0xff] %v6551_v7 }
 0x247   :  { %1946 = vrot.lane.b32.xlu1 %v781_v48, %s5270_s9  ;;  %v6561_v52 = vpop.permute.xlu0 %1696  ;;  %v782_v48 = vld [vmem:[#allocation2 + $0xaa] sm:$0xff] }
 0x248   :  { %8259 = vst [vmem:[#allocation170_spill] sm:$0xff] %v6561_v52  ;;  %2456 = vrot.lane.b32.xlu0 %v6308_v53, %s5272_s14  ;;  %v656_v53 = vld [vmem:[#allocation2 + $0xc0] sm:$0xff] }
 0x249   :  { %v6557_v14 = vpop.permute.xlu1 %1694 }
 0x24b   :  { %2202 = vrot.lane.b32.xlu1 %v655_v59, %s5271_s13  ;;  %v6569_v7 = vpop.permute.xlu0 %1700  ;;  %v783_v59 = vld [vmem:[#allocation2 + $0xb2] sm:$0xff] }
 0x24c   :  { %8261 = vst [vmem:[#allocation172_spill] sm:$0xff] %v6569_v7  ;;  %2712 = vrot.lane.b32.xlu0 %v782_v48, %s5273_s1 }
 0x24d   :  { %v6563_v61 = vpop.permute.xlu1 %1698 }
 0x24e   :  { %8260 = vst [vmem:[#allocation171_spill] sm:$0xff] %v6563_v61  ;;  %v657_v61 = vld [vmem:[#allocation2 + $0xc8] sm:$0xff] }
 0x24f   :  { %2458 = vrot.lane.b32.xlu1 %v6312_v30, %s5272_s14  ;;  %v6575_v37 = vpop.permute.xlu0 %1704 }
 0x250   :  { %8263 = vst [vmem:[#allocation174_spill] sm:$0xff] %v6575_v37  ;;  %2714 = vrot.lane.b32.xlu0 %v783_v59, %s5273_s1 }
 0x251   :  { %v6571_v25 = vpop.permute.xlu1 %1702 }
 0x252   :  { %8262 = vst [vmem:[#allocation173_spill] sm:$0xff] %v6571_v25 }
 0x253   :  { %1948 = vrot.lane.b32.xlu1 %v782_v48, %s5270_s9  ;;  %v6581_v30 = vpop.permute.xlu0 %1708 }
 0x254   :  { %8265 = vst [vmem:[#allocation176_spill] sm:$0xff] %v6581_v30  ;;  %2204 = vrot.lane.b32.xlu0 %v656_v53, %s5271_s13 }
 0x255   :  { %v6577_v52 = vpop.permute.xlu1 %1706 }
 0x256   :  { %8264 = vst [vmem:[#allocation175_spill] sm:$0xff] %v6577_v52 }
 0x257   :  { %1950 = vrot.lane.b32.xlu1 %v783_v59, %s5270_s9  ;;  %v6587_v48 = vpop.permute.xlu0 %1712  ;;  %v784_v59 = vld [vmem:[#allocation2 + $0xc2] sm:$0xff] }
 0x258   :  { %8267 = vst [vmem:[#allocation178_spill] sm:$0xff] %v6587_v48  ;;  %2460 = vrot.lane.b32.xlu0 %v6320_v26, %s5272_s14  ;;  %v658_v26 = vld [vmem:[#allocation2 + $0xd8] sm:$0xff] }
 0x259   :  { %v6583_v7 = vpop.permute.xlu1 %1710 }
 0x25a   :  { %8266 = vst [vmem:[#allocation177_spill] sm:$0xff] %v6583_v7 }
 0x25b   :  { %2206 = vrot.lane.b32.xlu1 %v657_v61, %s5271_s13  ;;  %v6595_v52 = vpop.permute.xlu0 %1716  ;;  %v785_v61 = vld [vmem:[#allocation2 + $0xca] sm:$0xff] }
 0x25c   :  { %8269 = vst [vmem:[#allocation180_spill] sm:$0xff] %v6595_v52  ;;  %2716 = vrot.lane.b32.xlu0 %v784_v59, %s5273_s1 }
 0x25d   :  { %v6589_v25 = vpop.permute.xlu1 %1714 }
 0x25e   :  { %8268 = vst [vmem:[#allocation179_spill] sm:$0xff] %v6589_v25  ;;  %v659_v25 = vld [vmem:[#allocation2 + $0xe0] sm:$0xff] }
 0x25f   :  { %2462 = vrot.lane.b32.xlu1 %v6324_v22, %s5272_s14  ;;  %v6601_v53 = vpop.permute.xlu0 %1720 }
 0x260   :  { %8271 = vst [vmem:[#allocation182_spill] sm:$0xff] %v6601_v53  ;;  %2718 = vrot.lane.b32.xlu0 %v785_v61, %s5273_s1 }
 0x261   :  { %v6597_v30 = vpop.permute.xlu1 %1718 }
 0x262   :  { %8270 = vst [vmem:[#allocation181_spill] sm:$0xff] %v6597_v30  ;;  %v259_v30 = vld [vmem:[#allocation2] sm:$0xff] }
 0x263   :  { %1952 = vrot.lane.b32.xlu1 %v784_v59, %s5270_s9  ;;  %v1925_v22 = vpop.permute.xlu0 %1924 }
 0x264   :  { %2208 = vrot.lane.b32.xlu0 %v658_v26, %s5271_s13 }
 0x265   :  { %v6603_v48 = vpop.permute.xlu1 %1722 }
 0x266   :  { %8272 = vst [vmem:[#allocation183_spill] sm:$0xff] %v6603_v48  ;;  %v2884_v48 = vsel %vm20_vm0, %v259_v30, %v5818_v56 }
 0x267   :  { %1954 = vrot.lane.b32.xlu1 %v785_v61, %s5270_s9  ;;  %v2181_v59 = vpop.permute.xlu0 %2180  ;;  %v260_v61 = vld [vmem:[#allocation2 + $0x8] sm:$0xff]  ;;  %v2949_v53 = vsel %vm2948_vm3, %v2884_v48, %v6018_v27 }
 0x268   :  { %2464 = vrot.lane.b32.xlu0 %v6332_v33, %s5272_s14  ;;  %v3014_v26 = vsel %vm3013_vm4, %v2949_v53, %v6224_v45  ;;  %v2885_v33 = vsel %vm20_vm0, %v260_v61, %v5824_v60  ;;  %v787_v48 = vld [vmem:[#allocation2 + $0xe2] sm:$0xff] }
 0x269   :  { %v1927_v7 = vpop.permute.xlu1 %1926  ;;  %v3079_v56 = vsel %vm3078_vm5, %v3014_v26, %v6517_v38 }
 0x26a   :  { %v3144_v27 = vsel %vm3143_vm6, %v3079_v56, %v1925_v22  ;;  %v661_v56 = vld [vmem:[#allocation2 + $0xf8] sm:$0xff] }
 0x26b   :  { %2210 = vrot.lane.b32.xlu1 %v659_v25, %s5271_s13  ;;  %v786_v25 = vld [vmem:[#allocation2 + $0xda] sm:$0xff]  ;;  %v2437_v37 = vpop.permute.xlu0 %2436  ;;  %v3209_v45 = vsel %vm3208_vm7, %v3144_v27, %v2181_v59 }
 0x26c   :  { %2720 = vrot.lane.b32.xlu0 %v786_v25, %s5273_s1  ;;  %v3274_v53 = vsel %vm3273_vm8, %v3209_v45, %v2437_v37 }
 0x26d   :  { %v2183_v52 = vpop.permute.xlu1 %2182 }
 0x26f   :  { %2466 = vrot.lane.b32.xlu1 %v6336_v35, %s5272_s14  ;;  %v2950_v35 = vsel %vm2948_vm3, %v2885_v33, %v6020_v39  ;;  %v2693_v60 = vpop.permute.xlu0 %2692 }
 0x270   :  { %v3015_v38 = vsel %vm3013_vm4, %v2950_v35, %v6226_v57  ;;  %v3339_v26 = vsel %vm3338_vm9, %v3274_v53, %v2693_v60  ;;  %2722 = vrot.lane.b32.xlu0 %v787_v48, %s5273_s1  ;;  %v660_v57 = vld [vmem:[#allocation2 + $0xf0] sm:$0xff] }
 0x271   :  { %v2439_v30 = vpop.permute.xlu1 %2438  ;;  %v3080_v22 = vsel %vm3078_vm5, %v3015_v38, %v6519_v9  ;;  %4995 = vmatprep.mubr.msk.f32.mxu0 %vm3415_vm10, %v3339_v26  ;;  %v788_v35 = vld [vmem:[#allocation2 + $0xf2] sm:$0xff] }
 0x272   :  { %v3145_v39 = vsel %vm3143_vm6, %v3080_v22, %v1927_v7 }
 0x273   :  { %1956 = vrot.lane.b32.xlu1 %v786_v25, %s5270_s9  ;;  %v3210_v59 = vsel %vm3208_vm7, %v3145_v39, %v2183_v52  ;;  %v2695_v25 = vpop.permute.xlu0 %2694  ;;  %v2886_v52 = vsel %vm20_vm0, %v6046_v43, %v5820_v58  ;;  %v2887_v58 = vsel %vm20_vm0, %v6050_v15, %v5826_v62  ;;  %v789_v43 = vld [vmem:[#allocation2 + $0xfa] sm:$0xff] }
 0x274   :  { %v3275_v37 = vsel %vm3273_vm8, %v3210_v59, %v2439_v30  ;;  %2212 = vrot.lane.b32.xlu0 %v660_v57, %s5271_s13  ;;  %v2951_v30 = vsel %vm2948_vm3, %v2886_v52, %v6032_v63  ;;  %v663_v59 = vld [vmem:[#allocation2 + $0x110] sm:$0xff] }
 0x275   :  { %v1929_v61 = vpop.permute.xlu1 %1928  ;;  %v3340_v9 = vsel %vm3338_vm9, %v3275_v37, %v2695_v25  ;;  %v3016_v45 = vsel %vm3013_vm4, %v2951_v30, %v6230_v46 }
 0x276   :  { %4996 = vmatmul.mubr.msk.f32.vlgmr.msra.gmra.mxu0 %vm3415_vm10, %v3340_v9  ;;  %v3081_v38 = vsel %vm3078_vm5, %v3016_v45, %v6523_v21  ;;  %v5205_v45 = vld [vmem:[#allocation2 + $0x38] sm:$0xff] }
 0x277   :  { %1958 = vrot.lane.b32.xlu1 %v787_v48, %s5270_s9  ;;  %v2185_v7 = vpop.permute.xlu0 %2184 }
 0x278   :  { %2468 = vrot.lane.b32.xlu0 %v6344_v32, %s5272_s14  ;;  %v3146_v32 = vsel %vm3143_vm6, %v3081_v38, %v1929_v61 }
 0x279   :  { %v1931_v33 = vpop.permute.xlu1 %1930  ;;  %v3211_v63 = vsel %vm3208_vm7, %v3146_v32, %v2185_v7  ;;  %v790_v7 = vld [vmem:[#allocation2 + $0x10a] sm:$0xff] }
 0x27b   :  { %2214 = vrot.lane.b32.xlu1 %v661_v56, %s5271_s13  ;;  %v2441_v48 = vpop.permute.xlu0 %2440  ;;  %v5204_v56 = vld [vmem:[#allocation2 + $0x30] sm:$0xff] }
 0x27c   :  { %2724 = vrot.lane.b32.xlu0 %v788_v35, %s5273_s1  ;;  %v3276_v21 = vsel %vm3273_vm8, %v3211_v63, %v2441_v48  ;;  %v2888_v9 = vsel %vm20_vm0, %v5204_v56, %v5830_v0  ;;  %v2889_v0 = vsel %vm20_vm0, %v5205_v45, %v5832_v2 }
 0x27d   :  { %v2187_v27 = vpop.permute.xlu1 %2186 }
 0x27f   :  { %2470 = vrot.lane.b32.xlu1 %v6348_v34, %s5272_s14  ;;  %v2952_v34 = vsel %vm2948_vm3, %v2887_v58, %v6034_v11  ;;  %v2697_v60 = vpop.permute.xlu0 %2696 }
 0x280   :  { %v3017_v46 = vsel %vm3013_vm4, %v2952_v34, %v6232_v44  ;;  %v3341_v15 = vsel %vm3338_vm9, %v3276_v21, %v2697_v60  ;;  %2726 = vrot.lane.b32.xlu0 %v789_v43, %s5273_s1  ;;  %v662_v44 = vld [vmem:[#allocation2 + $0x108] sm:$0xff] }
 0x281   :  { %v2443_v53 = vpop.permute.xlu1 %2442  ;;  %v3082_v62 = vsel %vm3078_vm5, %v3017_v46, %v6525_v24  ;;  %4998 = vmatprep.mubr.msk.f32.mxu0 %vm3415_vm10, %v3341_v15 }
 0x282   :  { %v3147_v61 = vsel %vm3143_vm6, %v3082_v62, %v1931_v33  ;;  %v2953_v33 = vsel %vm2948_vm3, %v2888_v9, %v6038_v3  ;;  %v5206_v62 = vld [vmem:[#allocation2 + $0x48] sm:$0xff] }
 0x283   :  { %1960 = vrot.lane.b32.xlu1 %v788_v35, %s5270_s9  ;;  %v3212_v11 = vsel %vm3208_vm7, %v3147_v61, %v2187_v27  ;;  %v2699_v39 = vpop.permute.xlu0 %2698  ;;  %v3018_v27 = vsel %vm3013_vm4, %v2953_v33, %v6236_v55  ;;  %v791_v55 = vld [vmem:[#allocation2 + $0x112] sm:$0xff]  ;;  %v2890_v15 = vsel %vm20_vm0, %v5206_v62, %v5836_v4  ;;  %v792_v61 = vld [vmem:[#allocation2 + $0x122] sm:$0xff] }
 0x284   :  { %v3277_v26 = vsel %vm3273_vm8, %v3212_v11, %v2443_v53  ;;  %2216 = vrot.lane.b32.xlu0 %v662_v44, %s5271_s13  ;;  %v3083_v30 = vsel %vm3078_vm5, %v3018_v27, %v6529_v17 }
 0x285   :  { %v1933_v22 = vpop.permute.xlu1 %1932  ;;  %v3342_v24 = vsel %vm3338_vm9, %v3277_v26, %v2699_v39 }
 0x286   :  { %4999 = vmatmul.mubr.msk.f32.gmra.mxu0 %vm3415_vm10, %v3342_v24 }
 0x287   :  { %1962 = vrot.lane.b32.xlu1 %v789_v43, %s5270_s9  ;;  %v2189_v37 = vpop.permute.xlu0 %2188  ;;  %v665_v43 = vld [vmem:[#allocation2 + $0x128] sm:$0xff] }
 0x288   :  { %2472 = vrot.lane.b32.xlu0 %v6356_v20, %s5272_s14  ;;  %v3148_v20 = vsel %vm3143_vm6, %v3083_v30, %v1933_v22  ;;  %v2955_v22 = vsel %vm2948_vm3, %v2890_v15, %v6044_v51  ;;  %v4062_v15 = vld [vmem:[%s8086_s3 + $0x8] sm:$0xff] }
 0x289   :  { %v1935_v57 = vpop.permute.xlu1 %1934  ;;  %v3213_v3 = vsel %vm3208_vm7, %v3148_v20, %v2189_v37  ;;  %v3020_v11 = vsel %vm3013_vm4, %v2955_v22, %v6242_v1  ;;  %v793_v1 = vld [vmem:[#allocation2 + $0x12a] sm:$0xff]  ;;  %v794_v20 = vld [vmem:[#allocation2 + $0x13a] sm:$0xff] }
 0x28a   :  { %v3085_v26 = vsel %vm3078_vm5, %v3020_v11, %v6535_v12  ;;  %v5210_v22 = vld [vmem:[#allocation2 + $0x78] sm:$0xff] }
 0x28b   :  { %2218 = vrot.lane.b32.xlu1 %v663_v59, %s5271_s13  ;;  %v2445_v52 = vpop.permute.xlu0 %2444  ;;  %v5207_v59 = vld [vmem:[#allocation2 + $0x50] sm:$0xff] }
 0x28c   :  { %2728 = vrot.lane.b32.xlu0 %v790_v7, %s5273_s1  ;;  %v3278_v48 = vsel %vm3273_vm8, %v3213_v3, %v2445_v52  ;;  %v2891_v4 = vsel %vm20_vm0, %v5207_v59, %v5838_v6  ;;  %v8277_v59 = vld [vmem:[#allocation135_spill] sm:$0xff] }
 0x28d   :  { %v2191_v25 = vpop.permute.xlu1 %2190 }
 0x28f   :  { %2474 = vrot.lane.b32.xlu1 %v6360_v18, %s5272_s14  ;;  %v2954_v18 = vsel %vm2948_vm3, %v2889_v0, %v6040_v31  ;;  %v2701_v38 = vpop.permute.xlu0 %2700 }
 0x290   :  { %v3019_v17 = vsel %vm3013_vm4, %v2954_v18, %v6238_v42  ;;  %v3343_v53 = vsel %vm3338_vm9, %v3278_v48, %v2701_v38  ;;  %2730 = vrot.lane.b32.xlu0 %v791_v55, %s5273_s1  ;;  %v664_v42 = vld [vmem:[#allocation2 + $0x120] sm:$0xff]  ;;  %v5209_v48 = vld [vmem:[#allocation2 + $0x68] sm:$0xff] }
 0x291   :  { %v2447_v35 = vpop.permute.xlu1 %2446  ;;  %v3084_v2 = vsel %vm3078_vm5, %v3019_v17, %v6531_v16  ;;  %5001 = vmatprep.mubr.msk.f32.mxu0 %vm3415_vm10, %v3343_v53  ;;  %v8273_v53 = vld [vmem:[#allocation167_spill] sm:$0xff] }
 0x292   :  { %v3149_v32 = vsel %vm3143_vm6, %v3084_v2, %v1935_v57 }
 0x293   :  { %1964 = vrot.lane.b32.xlu1 %v790_v7, %s5270_s9  ;;  %v3214_v31 = vsel %vm3208_vm7, %v3149_v32, %v2191_v25  ;;  %v2703_v63 = vpop.permute.xlu0 %2702  ;;  %v667_v7 = vld [vmem:[#allocation2 + $0x140] sm:$0xff] }
 0x294   :  { %v3279_v34 = vsel %vm3273_vm8, %v3214_v31, %v2447_v35  ;;  %2220 = vrot.lane.b32.xlu0 %v664_v42, %s5271_s13  ;;  %v5208_v35 = vld [vmem:[#allocation2 + $0x60] sm:$0xff] }
 0x295   :  { %v1937_v58 = vpop.permute.xlu1 %1936  ;;  %v3344_v16 = vsel %vm3338_vm9, %v3279_v34, %v2703_v63  ;;  %v2892_v45 = vsel %vm20_vm0, %v5208_v35, %v5842_v8  ;;  %v2893_v8 = vsel %vm20_vm0, %v5209_v48, %v5844_v10  ;;  %v669_v63 = vld [vmem:[#allocation2 + $0x158] sm:$0xff] }
 0x296   :  { %5002 = vmatmul.mubr.msk.f32.gmra.mxu0 %vm3415_vm10, %v3344_v16  ;;  %v2957_v0 = vsel %vm2948_vm3, %v2892_v45, %v6056_v19  ;;  %v2958_v19 = vsel %vm2948_vm3, %v2893_v8, %v6058_v47  ;;  %v734_v8 = vld [vmem:[#allocation2 + $0x169] sm:$0xff] }
 0x297   :  { %1966 = vrot.lane.b32.xlu1 %v791_v55, %s5270_s9  ;;  %v2193_v21 = vpop.permute.xlu0 %2192  ;;  %v3022_v18 = vsel %vm3013_vm4, %v2957_v0, %v6250_v50  ;;  %v795_v50 = vld [vmem:[#allocation2 + $0x142] sm:$0xff] }
 0x298   :  { %2476 = vrot.lane.b32.xlu0 %v6368_v41, %s5272_s14  ;;  %v3150_v41 = vsel %vm3143_vm6, %v3085_v26, %v1937_v58  ;;  %v3087_v55 = vsel %vm3078_vm5, %v3022_v18, %v6543_v28  ;;  %v3023_v28 = vsel %vm3013_vm4, %v2958_v19, %v6254_v5  ;;  %v668_v5 = vld [vmem:[#allocation2 + $0x150] sm:$0xff] }
 0x299   :  { %v1939_v46 = vpop.permute.xlu1 %1938  ;;  %v3215_v51 = vsel %vm3208_vm7, %v3150_v41, %v2193_v21  ;;  %v3088_v10 = vsel %vm3078_vm5, %v3023_v28, %v8273_v53  ;;  %v4063_v21 = vld [vmem:[%s8086_s3 + $0x10] sm:$0xff]  ;;  %v4061_v41 = vld [vmem:[%s8086_s3] sm:$0xff] }
 0x29a   :  { %v8276_v26 = vld [vmem:[#allocation57_spill] sm:$0xff] }
 0x29b   :  { %2222 = vrot.lane.b32.xlu1 %v665_v43, %s5271_s13  ;;  %v2449_v44 = vpop.permute.xlu0 %2448  ;;  %v735_v53 = vld [vmem:[#allocation2 + $0x171] sm:$0xff] }
 0x29c   :  { %2732 = vrot.lane.b32.xlu0 %v792_v61, %s5273_s1  ;;  %v3280_v24 = vsel %vm3273_vm8, %v3215_v51, %v2449_v44  ;;  %v8275_v44 = vld [vmem:[#allocation133_spill] sm:$0xff] }
 0x29d   :  { %v2195_v60 = vpop.permute.xlu1 %2194 }
 0x29f   :  { %2478 = vrot.lane.b32.xlu1 %v6372_v49, %s5272_s14  ;;  %v2956_v49 = vsel %vm2948_vm3, %v2891_v4, %v6048_v23  ;;  %v2705_v57 = vpop.permute.xlu0 %2704  ;;  %v796_v4 = vld [vmem:[#allocation2 + $0x152] sm:$0xff] }
 0x2a0   :  { %v3021_v12 = vsel %vm3013_vm4, %v2956_v49, %v6244_v40  ;;  %v3345_v37 = vsel %vm3338_vm9, %v3280_v24, %v2705_v57  ;;  %2734 = vrot.lane.b32.xlu0 %v793_v1, %s5273_s1  ;;  %v666_v40 = vld [vmem:[#allocation2 + $0x138] sm:$0xff]  ;;  %v8278_v49 = vld [vmem:[#allocation111_spill] sm:$0xff] }
 0x2a1   :  { %v2451_v39 = vpop.permute.xlu1 %2450  ;;  %v3086_v6 = vsel %vm3078_vm5, %v3021_v12, %v6537_v54  ;;  %5004 = vmatprep.mubr.msk.f32.mxu0 %vm3415_vm10, %v3345_v37  ;;  %v5211_v57 = vld [vmem:[#allocation2 + $0x80] sm:$0xff] }
 0x2a2   :  { %v3151_v56 = vsel %vm3143_vm6, %v3086_v6, %v1939_v46  ;;  %v4064_v46 = vld [vmem:[%s8086_s3 + $0x18] sm:$0xff]  ;;  %v8279_v6 = vld [vmem:[#allocation4_spill] sm:$0xff] }
 0x2a3   :  { %1968 = vrot.lane.b32.xlu1 %v792_v61, %s5270_s9  ;;  %v3216_v23 = vsel %vm3208_vm7, %v3151_v56, %v2195_v60  ;;  %v2707_v33 = vpop.permute.xlu0 %2706  ;;  %5091 = vmatprep.subr.mxu1 %v4064_v46  ;;  %v8274_v61 = vld [vmem:[#allocation3_spill] sm:$0xff]  ;;  %v2895_v37 = vsel %vm20_vm0, %v5211_v57, %v8279_v6  ;;  %v8280_v56 = vld [vmem:[#allocation58_spill] sm:$0xff]  ;;  %v5214_v6 = vld [vmem:[#allocation2 + $0xa8] sm:$0xff] }
 0x2a4   :  { %v3281_v9 = vsel %vm3273_vm8, %v3216_v23, %v2451_v39  ;;  %2224 = vrot.lane.b32.xlu0 %v666_v40, %s5271_s13  ;;  %5092 = vmatpush3.msra.mxu1 %v4064_v46  ;;  %v2894_v11 = vsel %vm20_vm0, %v5210_v22, %v8274_v61  ;;  %v2960_v23 = vsel %vm2948_vm3, %v2895_v37, %v8280_v56  ;;  %v8288_v46 = vld [vmem:[#allocation60_spill] sm:$0xff]  ;;  %v8290_v37 = vld [vmem:[#allocation7_spill] sm:$0xff]  ;;  %v8291_v56 = vld [vmem:[#allocation61_spill] sm:$0xff] }
 0x2a5   :  { %v1941_v25 = vpop.permute.xlu1 %1940  ;;  %v3346_v54 = vsel %vm3338_vm9, %v3281_v9, %v2707_v33  ;;  %5093 = vmatprep.subr.mxu1 %v4063_v21  ;;  %v2959_v39 = vsel %vm2948_vm3, %v2894_v11, %v8276_v26  ;;  %v797_v9 = vld [vmem:[#allocation2 + $0x15a] sm:$0xff] }
 0x2a6   :  { %5005 = vmatmul.mubr.msk.f32.gmra.mxu0 %vm3415_vm10, %v3346_v54  ;;  %5094 = vmatpush3.msra.mxu1 %v4063_v21  ;;  %v3024_v51 = vsel %vm3013_vm4, %v2959_v39, %v8278_v49 }
 0x2a7   :  { %1970 = vrot.lane.b32.xlu1 %v793_v1, %s5270_s9  ;;  %v2197_v52 = vpop.permute.xlu0 %2196  ;;  %5095 = vmatprep.subr.mxu1 %v4062_v15  ;;  %v3089_v12 = vsel %vm3078_vm5, %v3024_v51, %v6549_v29  ;;  %v8281_v29 = vld [vmem:[#allocation112_spill] sm:$0xff] }
 0x2a8   :  { %2480 = vrot.lane.b32.xlu0 %v6380_v36, %s5272_s14  ;;  %v3152_v36 = vsel %vm3143_vm6, %v3087_v55, %v1941_v25  ;;  %5096 = vmatpush3.msra.mxu1 %v4062_v15  ;;  %v3025_v33 = vsel %vm3013_vm4, %v2960_v23, %v8281_v29  ;;  %v671_v55 = vld [vmem:[#allocation2 + $0x170] sm:$0xff] }
 0x2a9   :  { %v1943_v27 = vpop.permute.xlu1 %1942  ;;  %5097 = vmatprep.subr.mxu1 %v4061_v41 }
 0x2aa   :  { %v3153_v31 = vsel %vm3143_vm6, %v3088_v10, %v1943_v27  ;;  %5098 = vmatpush3.msra.mxu1 %v4061_v41  ;;  %v8282_v27 = vld [vmem:[#allocation168_spill] sm:$0xff]  ;;  %v8285_v10 = vld [vmem:[#allocation113_spill] sm:$0xff] }
 0x2ab   :  { %2226 = vrot.lane.b32.xlu1 %v667_v7, %s5271_s13  ;;  %v2453_v3 = vpop.permute.xlu0 %2452 }
 0x2ac   :  { %2736 = vrot.lane.b32.xlu0 %v794_v20, %s5273_s1 }
 0x2ad   :  { %v2199_v30 = vpop.permute.xlu1 %2198 }
 0x2ae   :  { %v3218_v47 = vsel %vm3208_vm7, %v3153_v31, %v2199_v30  ;;  %v798_v31 = vld [vmem:[#allocation2 + $0x16a] sm:$0xff] }
 0x2af   :  { %2482 = vrot.lane.b32.xlu1 %v6384_v13, %s5272_s14  ;;  %v3217_v13 = vsel %vm3208_vm7, %v3152_v36, %v2197_v52  ;;  %v2709_v2 = vpop.permute.xlu0 %2708  ;;  %v3090_v52 = vsel %vm3078_vm5, %v3025_v33, %v8282_v27 }
 0x2b0   :  { %v3282_v38 = vsel %vm3273_vm8, %v3217_v13, %v2453_v3  ;;  %2738 = vrot.lane.b32.xlu0 %v795_v50, %s5273_s1  ;;  %v5212_v13 = vld [vmem:[#allocation2 + $0x90] sm:$0xff] }
 0x2b1   :  { %v2455_v17 = vpop.permute.xlu1 %2454  ;;  %v3347_v58 = vsel %vm3338_vm9, %v3282_v38, %v2709_v2  ;;  %v8284_v38 = vld [vmem:[#allocation59_spill] sm:$0xff] }
 0x2b2   :  { %5007 = vmatprep.mubr.msk.f32.mxu0 %vm3415_vm10, %v3347_v58  ;;  %v3283_v42 = vsel %vm3273_vm8, %v3218_v47, %v2455_v17  ;;  %v8286_v47 = vld [vmem:[#allocation169_spill] sm:$0xff] }
 0x2b3   :  { %1972 = vrot.lane.b32.xlu1 %v794_v20, %s5270_s9  ;;  %v2711_v34 = vpop.permute.xlu0 %2710  ;;  %v670_v20 = vld [vmem:[#allocation2 + $0x168] sm:$0xff] }
 0x2b4   :  { %v3348_v43 = vsel %vm3338_vm9, %v3283_v42, %v2711_v34  ;;  %2228 = vrot.lane.b32.xlu0 %v668_v5, %s5271_s13  ;;  %v5213_v34 = vld [vmem:[#allocation2 + $0x98] sm:$0xff] }
 0x2b5   :  { %v1945_v32 = vpop.permute.xlu1 %1944  ;;  %5008 = vmatmul.mubr.msk.f32.gmra.mxu0 %vm3415_vm10, %v3348_v43 }
 0x2b6   :  { %v3154_v25 = vsel %vm3143_vm6, %v3089_v12, %v1945_v32 }
 0x2b7   :  { %1974 = vrot.lane.b32.xlu1 %v795_v50, %s5270_s9  ;;  %v2201_v60 = vpop.permute.xlu0 %2200  ;;  %v8283_v50 = vld [vmem:[#allocation5_spill] sm:$0xff] }
 0x2b8   :  { %2484 = vrot.lane.b32.xlu0 %v8275_v44, %s5272_s14  ;;  %v3219_v40 = vsel %vm3208_vm7, %v3154_v25, %v2201_v60  ;;  %v2896_v28 = vsel %vm20_vm0, %v5212_v13, %v8283_v50  ;;  %v2898_v25 = vsel %vm20_vm0, %v5214_v6, %v8290_v37  ;;  %v8305_v6 = vld [vmem:[#allocation173_spill] sm:$0xff] }
 0x2b9   :  { %v1947_v16 = vpop.permute.xlu1 %1946  ;;  %v2961_v2 = vsel %vm2948_vm3, %v2896_v28, %v8284_v38  ;;  %v2963_v23 = vsel %vm2948_vm3, %v2898_v25, %v8291_v56 }
 0x2ba   :  { %v3155_v45 = vsel %vm3143_vm6, %v3090_v52, %v1947_v16  ;;  %v3026_v58 = vsel %vm3013_vm4, %v2961_v2, %v8285_v10  ;;  %v5215_v52 = vld [vmem:[#allocation2 + $0xb0] sm:$0xff] }
 0x2bb   :  { %2230 = vrot.lane.b32.xlu1 %v669_v63, %s5271_s13  ;;  %v2457_v1 = vpop.permute.xlu0 %2456  ;;  %v3091_v5 = vsel %vm3078_vm5, %v3026_v58, %v8286_v47  ;;  %v8287_v63 = vld [vmem:[#allocation6_spill] sm:$0xff] }
 0x2bc   :  { %2740 = vrot.lane.b32.xlu0 %v796_v4, %s5273_s1  ;;  %v3284_v7 = vsel %vm3273_vm8, %v3219_v40, %v2457_v1  ;;  %v2897_v43 = vsel %vm20_vm0, %v5213_v34, %v8287_v63  ;;  %v672_v1 = vld [vmem:[#allocation2 + $0x180] sm:$0xff]  ;;  %v8298_v34 = vld [vmem:[#allocation9_spill] sm:$0xff] }
 0x2bd   :  { %v2203_v62 = vpop.permute.xlu1 %2202  ;;  %v2962_v21 = vsel %vm2948_vm3, %v2897_v43, %v8288_v46  ;;  %v736_v40 = vld [vmem:[#allocation2 + $0x181] sm:$0xff]  ;;  %v674_v46 = vld [vmem:[#allocation2 + $0x198] sm:$0xff] }
 0x2be   :  { %v3220_v0 = vsel %vm3208_vm7, %v3155_v45, %v2203_v62  ;;  %v8289_v62 = vld [vmem:[#allocation114_spill] sm:$0xff]  ;;  %v8299_v43 = vld [vmem:[#allocation63_spill] sm:$0xff] }
 0x2bf   :  { %2486 = vrot.lane.b32.xlu1 %v8277_v59, %s5272_s14  ;;  %v2713_v54 = vpop.permute.xlu0 %2712  ;;  %v3027_v15 = vsel %vm3013_vm4, %v2962_v21, %v8289_v62  ;;  %v8300_v21 = vld [vmem:[#allocation117_spill] sm:$0xff] }
 0x2c0   :  { %v3349_v30 = vsel %vm3338_vm9, %v3284_v7, %v2713_v54  ;;  %2742 = vrot.lane.b32.xlu0 %v797_v9, %s5273_s1  ;;  %v3092_v11 = vsel %vm3078_vm5, %v3027_v15, %v6557_v14  ;;  %v8293_v7 = vld [vmem:[#allocation170_spill] sm:$0xff]  ;;  %v675_v15 = vld [vmem:[#allocation2 + $0x1a0] sm:$0xff] }
 0x2c1   :  { %v2459_v24 = vpop.permute.xlu1 %2458  ;;  %5010 = vmatprep.mubr.msk.f32.mxu0 %vm3415_vm10, %v3349_v30  ;;  %v8294_v30 = vld [vmem:[#allocation8_spill] sm:$0xff] }
 0x2c2   :  { %v3285_v18 = vsel %vm3273_vm8, %v3220_v0, %v2459_v24  ;;  %v673_v24 = vld [vmem:[#allocation2 + $0x188] sm:$0xff]  ;;  %v8295_v0 = vld [vmem:[#allocation62_spill] sm:$0xff] }
 0x2c3   :  { %1976 = vrot.lane.b32.xlu1 %v796_v4, %s5270_s9  ;;  %v2715_v3 = vpop.permute.xlu0 %2714  ;;  %v799_v4 = vld [vmem:[#allocation2 + $0x172] sm:$0xff] }
 0x2c4   :  { %v3350_v17 = vsel %vm3338_vm9, %v3285_v18, %v2715_v3  ;;  %2232 = vrot.lane.b32.xlu0 %v670_v20, %s5271_s13  ;;  %v737_v3 = vld [vmem:[#allocation2 + $0x189] sm:$0xff] }
 0x2c5   :  { %v1949_v35 = vpop.permute.xlu1 %1948  ;;  %5011 = vmatmul.mubr.msk.f32.gmra.mxu0 %vm3415_vm10, %v3350_v17 }
 0x2c6   :  { %v3156_v16 = vsel %vm3143_vm6, %v3091_v5, %v1949_v35  ;;  %v2899_v35 = vsel %vm20_vm0, %v5215_v52, %v8294_v30  ;;  %v548_v52 = vld [vmem:[#allocation2 + $0x1d1] sm:$0xff] }
 0x2c7   :  { %1978 = vrot.lane.b32.xlu1 %v797_v9, %s5270_s9  ;;  %v2205_v36 = vpop.permute.xlu0 %2204  ;;  %v8292_v9 = vld [vmem:[#allocation115_spill] sm:$0xff]  ;;  %v2964_v20 = vsel %vm2948_vm3, %v2899_v35, %v8295_v0  ;;  %v611_v35 = vld [vmem:[#allocation2 + $0x1ca] sm:$0xff]  ;;  %v5218_v0 = vld [vmem:[#allocation2 + $0xd8] sm:$0xff] }
 0x2c8   :  { %2488 = vrot.lane.b32.xlu0 %v734_v8, %s5272_s14  ;;  %v3221_v60 = vsel %vm3208_vm7, %v3156_v16, %v2205_v36  ;;  %v3028_v29 = vsel %vm3013_vm4, %v2963_v23, %v8292_v9  ;;  %v800_v36 = vld [vmem:[#allocation2 + $0x182] sm:$0xff] }
 0x2c9   :  { %v1951_v48 = vpop.permute.xlu1 %1950  ;;  %v3093_v54 = vsel %vm3078_vm5, %v3028_v29, %v8293_v7  ;;  %v739_v9 = vld [vmem:[#allocation2 + $0x1a1] sm:$0xff] }
 0x2ca   :  { %v3157_v39 = vsel %vm3143_vm6, %v3092_v11, %v1951_v48  ;;  %v802_v7 = vld [vmem:[#allocation2 + $0x19a] sm:$0xff] }
 0x2cb   :  { %2234 = vrot.lane.b32.xlu1 %v671_v55, %s5271_s13  ;;  %v2461_v32 = vpop.permute.xlu0 %2460  ;;  %v8296_v55 = vld [vmem:[#allocation116_spill] sm:$0xff] }
 0x2cc   :  { %2490 = vrot.lane.b32.xlu0 %v735_v53, %s5272_s14  ;;  %v3286_v22 = vsel %vm3273_vm8, %v3221_v60, %v2461_v32  ;;  %v3029_v17 = vsel %vm3013_vm4, %v2964_v20, %v8296_v55  ;;  %v8306_v20 = vld [vmem:[#allocation11_spill] sm:$0xff] }
 0x2cd   :  { %v2207_v19 = vpop.permute.xlu1 %2206 }
 0x2ce   :  { %v3222_v59 = vsel %vm3208_vm7, %v3157_v39, %v2207_v19  ;;  %v8297_v19 = vld [vmem:[#allocation171_spill] sm:$0xff] }
 0x2cf   :  { %1724 = vrot.lane.b32.xlu1 %v734_v8, %s5269_s25  ;;  %v2717_v61 = vpop.permute.xlu0 %2716  ;;  %v3094_v13 = vsel %vm3078_vm5, %v3029_v17, %v8297_v19  ;;  %v803_v17 = vld [vmem:[#allocation2 + $0x1a2] sm:$0xff]  ;;  %v612_v19 = vld [vmem:[#allocation2 + $0x1d2] sm:$0xff] }
 0x2d0   :  { %v3351_v44 = vsel %vm3338_vm9, %v3286_v22, %v2717_v61  ;;  %1726 = vrot.lane.b32.xlu0 %v735_v53, %s5269_s25  ;;  %v8301_v22 = vld [vmem:[#allocation172_spill] sm:$0xff] }
 0x2d1   :  { %v2463_v42 = vpop.permute.xlu1 %2462  ;;  %5013 = vmatprep.mubr.msk.f32.mxu0 %vm3415_vm10, %v3351_v44  ;;  %v5217_v44 = vld [vmem:[#allocation2 + $0xc8] sm:$0xff] }
 0x2d2   :  { %v3287_v41 = vsel %vm3273_vm8, %v3222_v59, %v2463_v42  ;;  %v5216_v42 = vld [vmem:[#allocation2 + $0xc0] sm:$0xff] }
 0x2d3   :  { %2744 = vrot.lane.b32.xlu1 %v798_v31, %s5273_s1  ;;  %v2719_v49 = vpop.permute.xlu0 %2718  ;;  %v2900_v63 = vsel %vm20_vm0, %v5216_v42, %v8298_v34 }
 0x2d4   :  { %v3352_v51 = vsel %vm3338_vm9, %v3287_v41, %v2719_v49  ;;  %2746 = vrot.lane.b32.xlu0 %v799_v4, %s5273_s1  ;;  %v2965_v16 = vsel %vm2948_vm3, %v2900_v63, %v8299_v43  ;;  %v677_v43 = vld [vmem:[#allocation2 + $0x1e8] sm:$0xff] }
 0x2d5   :  { %v1953_v26 = vpop.permute.xlu1 %1952  ;;  %5014 = vmatmul.mubr.msk.f32.gmra.mxu0 %vm3415_vm10, %v3352_v51  ;;  %v3030_v60 = vsel %vm3013_vm4, %v2965_v16, %v8300_v21  ;;  %v738_v51 = vld [vmem:[#allocation2 + $0x199] sm:$0xff] }
 0x2d6   :  { %v3158_v45 = vsel %vm3143_vm6, %v3093_v54, %v1953_v26  ;;  %v3095_v61 = vsel %vm3078_vm5, %v3030_v60, %v8301_v22  ;;  %v8302_v26 = vld [vmem:[#allocation10_spill] sm:$0xff]  ;;  %v8313_v16 = vld [vmem:[#allocation175_spill] sm:$0xff] }
 0x2d7   :  { %1980 = vrot.lane.b32.xlu1 %v798_v31, %s5270_s9  ;;  %v2209_v12 = vpop.permute.xlu0 %2208  ;;  %v801_v31 = vld [vmem:[#allocation2 + $0x18a] sm:$0xff]  ;;  %v2901_v39 = vsel %vm20_vm0, %v5217_v44, %v8302_v26  ;;  %v740_v22 = vld [vmem:[#allocation2 + $0x1e1] sm:$0xff] }
 0x2d8   :  { %2236 = vrot.lane.b32.xlu0 %v672_v1, %s5271_s13  ;;  %v3223_v18 = vsel %vm3208_vm7, %v3158_v45, %v2209_v12 }
 0x2d9   :  { %v1955_v14 = vpop.permute.xlu1 %1954 }
 0x2da   :  { %v3159_v38 = vsel %vm3143_vm6, %v3094_v13, %v1955_v14  ;;  %v8304_v14 = vld [vmem:[#allocation118_spill] sm:$0xff] }
 0x2db   :  { %1982 = vrot.lane.b32.xlu1 %v799_v4, %s5270_s9  ;;  %v2465_v33 = vpop.permute.xlu0 %2464  ;;  %v8303_v4 = vld [vmem:[#allocation64_spill] sm:$0xff]  ;;  %v8309_v13 = vld [vmem:[#allocation174_spill] sm:$0xff] }
 0x2dc   :  { %2492 = vrot.lane.b32.xlu0 %v736_v40, %s5272_s14  ;;  %v3288_v48 = vsel %vm3273_vm8, %v3223_v18, %v2465_v33  ;;  %v2966_v41 = vsel %vm2948_vm3, %v2901_v39, %v8303_v4  ;;  %v2902_v18 = vsel %vm20_vm0, %v5218_v0, %v8306_v20  ;;  %v741_v39 = vld [vmem:[#allocation2 + $0x1e9] sm:$0xff] }
 0x2dd   :  { %v2211_v57 = vpop.permute.xlu1 %2210  ;;  %v3031_v1 = vsel %vm3013_vm4, %v2966_v41, %v8304_v14  ;;  %v804_v4 = vld [vmem:[#allocation2 + $0x1e2] sm:$0xff]  ;;  %v8321_v0 = vld [vmem:[#allocation177_spill] sm:$0xff] }
 0x2de   :  { %v3224_v2 = vsel %vm3208_vm7, %v3159_v38, %v2211_v57  ;;  %v547_v57 = vld [vmem:[#allocation2 + $0x1c9] sm:$0xff]  ;;  %v3096_v37 = vsel %vm3078_vm5, %v3031_v1, %v8305_v6  ;;  %v5219_v38 = vld [vmem:[#allocation2 + $0xe0] sm:$0xff] }
 0x2df   :  { %2238 = vrot.lane.b32.xlu1 %v673_v24, %s5271_s13  ;;  %v2721_v8 = vpop.permute.xlu0 %2720  ;;  %v8315_v1 = vld [vmem:[#allocation67_spill] sm:$0xff] }
 0x2e0   :  { %v3353_v50 = vsel %vm3338_vm9, %v3288_v48, %v2721_v8  ;;  %2494 = vrot.lane.b32.xlu0 %v737_v3, %s5272_s14  ;;  %v8308_v48 = vld [vmem:[#allocation119_spill] sm:$0xff] }
 0x2e1   :  { %v2467_v27 = vpop.permute.xlu1 %2466  ;;  %5016 = vmatprep.mubr.msk.f32.mxu0 %vm3415_vm10, %v3353_v50 }
 0x2e2   :  { %v3289_v53 = vsel %vm3273_vm8, %v3224_v2, %v2467_v27  ;;  %v8310_v2 = vld [vmem:[#allocation12_spill] sm:$0xff] }
 0x2e3   :  { %1728 = vrot.lane.b32.xlu1 %v736_v40, %s5269_s25  ;;  %v2723_v10 = vpop.permute.xlu0 %2722 }
 0x2e4   :  { %v3354_v58 = vsel %vm3338_vm9, %v3289_v53, %v2723_v10  ;;  %1730 = vrot.lane.b32.xlu0 %v737_v3, %s5269_s25  ;;  %v8307_v3 = vld [vmem:[#allocation65_spill] sm:$0xff]  ;;  %v2903_v53 = vsel %vm20_vm0, %v5219_v38, %v8310_v2 }
 0x2e5   :  { %v1957_v28 = vpop.permute.xlu1 %1956  ;;  %5017 = vmatmul.mubr.msk.f32.gmra.mxu0 %vm3415_vm10, %v3354_v58  ;;  %v2967_v55 = vsel %vm2948_vm3, %v2902_v18, %v8307_v3  ;;  %v8311_v58 = vld [vmem:[#allocation66_spill] sm:$0xff] }
 0x2e6   :  { %v3160_v59 = vsel %vm3143_vm6, %v3095_v61, %v1957_v28  ;;  %v3032_v8 = vsel %vm3013_vm4, %v2967_v55, %v8308_v48  ;;  %v678_v48 = vld [vmem:[#allocation2 + $0x1f8] sm:$0xff] }
 0x2e7   :  { %2748 = vrot.lane.b32.xlu1 %v800_v36, %s5273_s1  ;;  %v2213_v47 = vpop.permute.xlu0 %2212  ;;  %v3097_v50 = vsel %vm3078_vm5, %v3032_v8, %v8309_v13 }
 0x2e8   :  { %2750 = vrot.lane.b32.xlu0 %v801_v31, %s5273_s1  ;;  %v3225_v49 = vsel %vm3208_vm7, %v3160_v59, %v2213_v47  ;;  %v676_v47 = vld [vmem:[#allocation2 + $0x1e0] sm:$0xff] }
 0x2e9   :  { %v1959_v32 = vpop.permute.xlu1 %1958 }
 0x2ea   :  { %v3161_v23 = vsel %vm3143_vm6, %v3096_v37, %v1959_v32  ;;  %v2968_v32 = vsel %vm2948_vm3, %v2903_v53, %v8311_v58  ;;  %v8317_v37 = vld [vmem:[#allocation176_spill] sm:$0xff] }
 0x2eb   :  { %1984 = vrot.lane.b32.xlu1 %v800_v36, %s5270_s9  ;;  %v2469_v62 = vpop.permute.xlu0 %2468  ;;  %v5222_v53 = vld [vmem:[#allocation2 + $0x108] sm:$0xff] }
 0x2ec   :  { %2240 = vrot.lane.b32.xlu0 %v674_v46, %s5271_s13  ;;  %v3290_v12 = vsel %vm3273_vm8, %v3225_v49, %v2469_v62  ;;  %v5220_v49 = vld [vmem:[#allocation2 + $0xf0] sm:$0xff] }
 0x2ed   :  { %v2215_v5 = vpop.permute.xlu1 %2214 }
 0x2ee   :  { %v3226_v40 = vsel %vm3208_vm7, %v3161_v23, %v2215_v5  ;;  %v8312_v5 = vld [vmem:[#allocation120_spill] sm:$0xff]  ;;  %v5221_v23 = vld [vmem:[#allocation2 + $0xf8] sm:$0xff] }
 0x2ef   :  { %1986 = vrot.lane.b32.xlu1 %v801_v31, %s5270_s9  ;;  %v2725_v24 = vpop.permute.xlu0 %2724  ;;  %v3033_v42 = vsel %vm3013_vm4, %v2968_v32, %v8312_v5  ;;  %v8323_v32 = vld [vmem:[#allocation69_spill] sm:$0xff]  ;;  %v8324_v5 = vld [vmem:[#allocation123_spill] sm:$0xff] }
 0x2f0   :  { %v3355_v25 = vsel %vm3338_vm9, %v3290_v12, %v2725_v24  ;;  %2496 = vrot.lane.b32.xlu0 %v738_v51, %s5272_s14  ;;  %v3098_v46 = vsel %vm3078_vm5, %v3033_v42, %v8313_v16  ;;  %v8314_v51 = vld [vmem:[#allocation13_spill] sm:$0xff] }
 0x2f1   :  { %v2471_v11 = vpop.permute.xlu1 %2470  ;;  %5019 = vmatprep.mubr.msk.f32.mxu0 %vm3415_vm10, %v3355_v25  ;;  %v2904_v14 = vsel %vm20_vm0, %v5220_v49, %v8314_v51  ;;  %v8316_v24 = vld [vmem:[#allocation121_spill] sm:$0xff] }
 0x2f2   :  { %v3291_v29 = vsel %vm3273_vm8, %v3226_v40, %v2471_v11  ;;  %v2969_v12 = vsel %vm2948_vm3, %v2904_v14, %v8315_v1  ;;  %v8318_v40 = vld [vmem:[#allocation14_spill] sm:$0xff] }
 0x2f3   :  { %2242 = vrot.lane.b32.xlu1 %v675_v15, %s5271_s13  ;;  %v2727_v33 = vpop.permute.xlu0 %2726 }
 0x2f4   :  { %v3356_v54 = vsel %vm3338_vm9, %v3291_v29, %v2727_v33  ;;  %2498 = vrot.lane.b32.xlu0 %v739_v9, %s5272_s14  ;;  %v2905_v9 = vsel %vm20_vm0, %v5221_v23, %v8318_v40  ;;  %v8319_v33 = vld [vmem:[#allocation68_spill] sm:$0xff]  ;;  %v681_v23 = vld [vmem:[#allocation2 + $0x218] sm:$0xff] }
 0x2f5   :  { %v1961_v56 = vpop.permute.xlu1 %1960  ;;  %5020 = vmatmul.mubr.msk.f32.gmra.mxu0 %vm3415_vm10, %v3356_v54 }
 0x2f6   :  { %v3162_v10 = vsel %vm3143_vm6, %v3097_v50, %v1961_v56 }
 0x2f7   :  { %1732 = vrot.lane.b32.xlu1 %v547_v57, %s5269_s25  ;;  %v2217_v30 = vpop.permute.xlu0 %2216  ;;  %v3034_v57 = vsel %vm3013_vm4, %v2969_v12, %v8316_v24  ;;  %v807_v12 = vld [vmem:[#allocation2 + $0x202] sm:$0xff] }
 0x2f8   :  { %1734 = vrot.lane.b32.xlu0 %v548_v52, %s5269_s25  ;;  %v3227_v31 = vsel %vm3208_vm7, %v3162_v10, %v2217_v30  ;;  %v3099_v25 = vsel %vm3078_vm5, %v3034_v57, %v8317_v37  ;;  %v8320_v52 = vld [vmem:[#allocation122_spill] sm:$0xff]  ;;  %v8322_v10 = vld [vmem:[#allocation15_spill] sm:$0xff] }
 0x2f9   :  { %v1963_v27 = vpop.permute.xlu1 %1962  ;;  %v2906_v58 = vsel %vm20_vm0, %v5222_v53, %v8322_v10  ;;  %v8337_v53 = vld [vmem:[#allocation181_spill] sm:$0xff] }
 0x2fa   :  { %v3163_v62 = vsel %vm3143_vm6, %v3098_v46, %v1963_v27  ;;  %v805_v27 = vld [vmem:[#allocation2 + $0x1ea] sm:$0xff] }
 0x2fb   :  { %2752 = vrot.lane.b32.xlu1 %v802_v7, %s5273_s1  ;;  %v2473_v36 = vpop.permute.xlu0 %2472  ;;  %v2970_v7 = vsel %vm2948_vm3, %v2905_v9, %v8319_v33  ;;  %v5224_v9 = vld [vmem:[#allocation2 + $0x120] sm:$0xff] }
 0x2fc   :  { %2754 = vrot.lane.b32.xlu0 %v803_v17, %s5273_s1  ;;  %v3292_v34 = vsel %vm3273_vm8, %v3227_v31, %v2473_v36  ;;  %v3035_v30 = vsel %vm3013_vm4, %v2970_v7, %v8320_v52  ;;  %v2971_v31 = vsel %vm2948_vm3, %v2906_v58, %v8323_v32  ;;  %v8331_v7 = vld [vmem:[#allocation71_spill] sm:$0xff]  ;;  %v8332_v52 = vld [vmem:[#allocation125_spill] sm:$0xff] }
 0x2fd   :  { %v2219_v45 = vpop.permute.xlu1 %2218  ;;  %v3100_v20 = vsel %vm3078_vm5, %v3035_v30, %v8321_v0  ;;  %v3036_v42 = vsel %vm3013_vm4, %v2971_v31, %v8324_v5 }
 0x2fe   :  { %v3228_v15 = vsel %vm3208_vm7, %v3163_v62, %v2219_v45 }
 0x2ff   :  { %1988 = vrot.lane.b32.xlu1 %v611_v35, %s5270_s9  ;;  %v2729_v63 = vpop.permute.xlu0 %2728 }
 0x300   :  { %v3357_v21 = vsel %vm3338_vm9, %v3292_v34, %v2729_v63  ;;  %2244 = vrot.lane.b32.xlu0 %v676_v47, %s5271_s13  ;;  %v743_v47 = vld [vmem:[#allocation2 + $0x201] sm:$0xff] }
 0x301   :  { %v2475_v28 = vpop.permute.xlu1 %2474  ;;  %5022 = vmatprep.mubr.msk.f32.mxu0 %vm3415_vm10, %v3357_v21  ;;  %v806_v63 = vld [vmem:[#allocation2 + $0x1fa] sm:$0xff]  ;;  %v5223_v21 = vld [vmem:[#allocation2 + $0x110] sm:$0xff] }
 0x302   :  { %v3293_v61 = vsel %vm3273_vm8, %v3228_v15, %v2475_v28  ;;  %v742_v28 = vld [vmem:[#allocation2 + $0x1f9] sm:$0xff] }
 0x303   :  { %1990 = vrot.lane.b32.xlu1 %v612_v19, %s5270_s9  ;;  %v2731_v11 = vpop.permute.xlu0 %2730  ;;  %v679_v19 = vld [vmem:[#allocation2 + $0x200] sm:$0xff] }
 0x304   :  { %v3358_v44 = vsel %vm3338_vm9, %v3293_v61, %v2731_v11  ;;  %2500 = vrot.lane.b32.xlu0 %v740_v22, %s5272_s14 }
 0x305   :  { %v1965_v60 = vpop.permute.xlu1 %1964  ;;  %5023 = vmatmul.mubr.msk.f32.gmra.mxu0 %vm3415_vm10, %v3358_v44  ;;  %v8328_v44 = vld [vmem:[#allocation124_spill] sm:$0xff] }
 0x306   :  { %v3164_v29 = vsel %vm3143_vm6, %v3099_v25, %v1965_v60  ;;  %v8326_v60 = vld [vmem:[#allocation16_spill] sm:$0xff]  ;;  %v680_v25 = vld [vmem:[#allocation2 + $0x210] sm:$0xff] }
 0x307   :  { %2246 = vrot.lane.b32.xlu1 %v677_v43, %s5271_s13  ;;  %v2221_v59 = vpop.permute.xlu0 %2220  ;;  %v8325_v43 = vld [vmem:[#allocation178_spill] sm:$0xff]  ;;  %v2907_v62 = vsel %vm20_vm0, %v5223_v21, %v8326_v60 }
 0x308   :  { %2502 = vrot.lane.b32.xlu0 %v741_v39, %s5272_s14  ;;  %v3229_v54 = vsel %vm3208_vm7, %v3164_v29, %v2221_v59  ;;  %v3101_v16 = vsel %vm3078_vm5, %v3036_v42, %v8325_v43  ;;  %v8330_v29 = vld [vmem:[#allocation17_spill] sm:$0xff]  ;;  %v7077_v43 = vld [vmem:[%s8087_s2] ss:$0 sm:$0xff] }
 0x309   :  { %v1967_v26 = vpop.permute.xlu1 %1966  ;;  %v2908_v33 = vsel %vm20_vm0, %v5224_v9, %v8330_v29  ;;  %v5227_v9 = vld [vmem:[#allocation2 + $0x140] sm:$0xff]  ;;  %v8342_v29 = vld [vmem:[#allocation20_spill] sm:$0xff] }
 0x30a   :  { %v3165_v55 = vsel %vm3143_vm6, %v3100_v20, %v1967_v26 }
 0x30b   :  { %1736 = vrot.lane.b32.xlu1 %v740_v22, %s5269_s25  ;;  %v2477_v6 = vpop.permute.xlu0 %2476  ;;  %v8327_v22 = vld [vmem:[#allocation70_spill] sm:$0xff] }
 0x30c   :  { %1738 = vrot.lane.b32.xlu0 %v741_v39, %s5269_s25  ;;  %v3294_v35 = vsel %vm3273_vm8, %v3229_v54, %v2477_v6  ;;  %v2972_v61 = vsel %vm2948_vm3, %v2907_v62, %v8327_v22  ;;  %v2973_v54 = vsel %vm2948_vm3, %v2908_v33, %v8331_v7  ;;  %v2911_v33 = vsel %vm20_vm0, %v5227_v9, %v8342_v29 }
 0x30d   :  { %v2223_v41 = vpop.permute.xlu1 %2222  ;;  %v3037_v26 = vsel %vm3013_vm4, %v2972_v61, %v8328_v44  ;;  %v3038_v30 = vsel %vm3013_vm4, %v2973_v54, %v8332_v52  ;;  %v5226_v61 = vld [vmem:[#allocation2 + $0x138] sm:$0xff] }
 0x30e   :  { %v3230_v17 = vsel %vm3208_vm7, %v3165_v55, %v2223_v41  ;;  %v8343_v54 = vld [vmem:[#allocation74_spill] sm:$0xff] }
 0x30f   :  { %2756 = vrot.lane.b32.xlu1 %v804_v4, %s5273_s1  ;;  %v2733_v45 = vpop.permute.xlu0 %2732  ;;  %v747_v52 = vld [vmem:[#allocation2 + $0x231] sm:$0xff] }
 0x310   :  { %v3359_v18 = vsel %vm3338_vm9, %v3294_v35, %v2733_v45  ;;  %2758 = vrot.lane.b32.xlu0 %v805_v27, %s5273_s1  ;;  %v8333_v45 = vld [vmem:[#allocation180_spill] sm:$0xff] }
 0x311   :  { %v2479_v56 = vpop.permute.xlu1 %2478  ;;  %5025 = vmatprep.mubr.msk.f32.mxu0 %vm3415_vm10, %v3359_v18  ;;  %v3103_v0 = vsel %vm3078_vm5, %v3038_v30, %v8333_v45  ;;  %v5225_v18 = vld [vmem:[#allocation2 + $0x128] sm:$0xff] }
 0x312   :  { %v3295_v8 = vsel %vm3273_vm8, %v3230_v17, %v2479_v56  ;;  %v8344_v30 = vld [vmem:[#allocation128_spill] sm:$0xff] }
 0x313   :  { %1992 = vrot.lane.b32.xlu1 %v804_v4, %s5270_s9  ;;  %v2735_v36 = vpop.permute.xlu0 %2734  ;;  %v8329_v4 = vld [vmem:[#allocation179_spill] sm:$0xff] }
 0x314   :  { %v3360_v13 = vsel %vm3338_vm9, %v3295_v8, %v2735_v36  ;;  %2248 = vrot.lane.b32.xlu0 %v678_v48, %s5271_s13  ;;  %v3102_v41 = vsel %vm3078_vm5, %v3037_v26, %v8329_v4  ;;  %v8335_v48 = vld [vmem:[#allocation72_spill] sm:$0xff] }
 0x315   :  { %v1969_v3 = vpop.permute.xlu1 %1968  ;;  %5026 = vmatmul.mubr.msk.f32.gmra.mxu0 %vm3415_vm10, %v3360_v13  ;;  %v8336_v13 = vld [vmem:[#allocation126_spill] sm:$0xff] }
 0x316   :  { %v3166_v15 = vsel %vm3143_vm6, %v3101_v16, %v1969_v3  ;;  %v8334_v3 = vld [vmem:[#allocation18_spill] sm:$0xff] }
 0x317   :  { %1994 = vrot.lane.b32.xlu1 %v805_v27, %s5270_s9  ;;  %v2225_v38 = vpop.permute.xlu0 %2224  ;;  %v744_v27 = vld [vmem:[#allocation2 + $0x211] sm:$0xff]  ;;  %v2909_v55 = vsel %vm20_vm0, %v5225_v18, %v8334_v3 }
 0x318   :  { %2504 = vrot.lane.b32.xlu0 %v742_v28, %s5272_s14  ;;  %v3231_v11 = vsel %vm3208_vm7, %v3166_v15, %v2225_v38  ;;  %v2974_v8 = vsel %vm2948_vm3, %v2909_v55, %v8335_v48 }
 0x319   :  { %v1971_v50 = vpop.permute.xlu1 %1970 }
 0x31a   :  { %v3167_v14 = vsel %vm3143_vm6, %v3102_v41, %v1971_v50  ;;  %v3039_v50 = vsel %vm3013_vm4, %v2974_v8, %v8336_v13 }
 0x31b   :  { %2250 = vrot.lane.b32.xlu1 %v679_v19, %s5271_s13  ;;  %v2481_v34 = vpop.permute.xlu0 %2480  ;;  %v745_v19 = vld [vmem:[#allocation2 + $0x219] sm:$0xff]  ;;  %v3104_v10 = vsel %vm3078_vm5, %v3039_v50, %v8337_v53 }
 0x31c   :  { %2506 = vrot.lane.b32.xlu0 %v743_v47, %s5272_s14  ;;  %v3296_v39 = vsel %vm3273_vm8, %v3231_v11, %v2481_v34  ;;  %v8338_v11 = vld [vmem:[#allocation19_spill] sm:$0xff]  ;;  %v811_v53 = vld [vmem:[#allocation2 + $0x232] sm:$0xff] }
 0x31d   :  { %v2227_v2 = vpop.permute.xlu1 %2226  ;;  %v2910_v44 = vsel %vm20_vm0, %v5226_v61, %v8338_v11  ;;  %v748_v61 = vld [vmem:[#allocation2 + $0x241] sm:$0xff] }
 0x31e   :  { %v3232_v1 = vsel %vm3208_vm7, %v3167_v14, %v2227_v2  ;;  %v808_v2 = vld [vmem:[#allocation2 + $0x212] sm:$0xff]  ;;  %v8340_v14 = vld [vmem:[#allocation127_spill] sm:$0xff] }
 0x31f   :  { %1740 = vrot.lane.b32.xlu1 %v742_v28, %s5269_s25  ;;  %v2737_v59 = vpop.permute.xlu0 %2736 }
 0x320   :  { %v3361_v49 = vsel %vm3338_vm9, %v3296_v39, %v2737_v59  ;;  %1742 = vrot.lane.b32.xlu0 %v743_v47, %s5269_s25  ;;  %v682_v39 = vld [vmem:[#allocation2 + $0x228] sm:$0xff]  ;;  %v8339_v59 = vld [vmem:[#allocation73_spill] sm:$0xff] }
 0x321   :  { %v2483_v46 = vpop.permute.xlu1 %2482  ;;  %5028 = vmatprep.mubr.msk.f32.mxu0 %vm3415_vm10, %v3361_v49  ;;  %v2975_v4 = vsel %vm2948_vm3, %v2910_v44, %v8339_v59  ;;  %v5229_v59 = vld [vmem:[#allocation2 + $0x158] sm:$0xff] }
 0x322   :  { %v3297_v24 = vsel %vm3273_vm8, %v3232_v1, %v2483_v46  ;;  %v809_v46 = vld [vmem:[#allocation2 + $0x21a] sm:$0xff]  ;;  %v3040_v1 = vsel %vm3013_vm4, %v2975_v4, %v8340_v14  ;;  %v8350_v14 = vld [vmem:[#allocation76_spill] sm:$0xff] }
 0x323   :  { %2760 = vrot.lane.b32.xlu1 %v806_v63, %s5273_s1  ;;  %v2739_v57 = vpop.permute.xlu0 %2738  ;;  %v8349_v4 = vld [vmem:[#allocation22_spill] sm:$0xff] }
 0x324   :  { %v3362_v6 = vsel %vm3338_vm9, %v3297_v24, %v2739_v57  ;;  %2762 = vrot.lane.b32.xlu0 %v807_v12, %s5273_s1  ;;  %v8341_v24 = vld [vmem:[#allocation182_spill] sm:$0xff] }
 0x325   :  { %v1973_v51 = vpop.permute.xlu1 %1972  ;;  %5029 = vmatmul.mubr.msk.f32.gmra.mxu0 %vm3415_vm10, %v3362_v6  ;;  %v3105_v57 = vsel %vm3078_vm5, %v3040_v1, %v8341_v24  ;;  %v8351_v24 = vld [vmem:[#allocation130_spill] sm:$0xff] }
 0x326   :  { %v3168_v17 = vsel %vm3143_vm6, %v3103_v0, %v1973_v51  ;;  %v683_v51 = vld [vmem:[#allocation2 + $0x230] sm:$0xff] }
 0x327   :  { %1996 = vrot.lane.b32.xlu1 %v806_v63, %s5270_s9  ;;  %v2229_v56 = vpop.permute.xlu0 %2228  ;;  %v810_v0 = vld [vmem:[#allocation2 + $0x22a] sm:$0xff] }
 0x328   :  { %2252 = vrot.lane.b32.xlu0 %v680_v25, %s5271_s13  ;;  %v3233_v36 = vsel %vm3208_vm7, %v3168_v17, %v2229_v56 }
 0x329   :  { %v1975_v37 = vpop.permute.xlu1 %1974 }
 0x32a   :  { %v3169_v31 = vsel %vm3143_vm6, %v3104_v10, %v1975_v37  ;;  %v746_v37 = vld [vmem:[#allocation2 + $0x229] sm:$0xff] }
 0x32b   :  { %1998 = vrot.lane.b32.xlu1 %v807_v12, %s5270_s9  ;;  %v2485_v35 = vpop.permute.xlu0 %2484 }
 0x32c   :  { %2508 = vrot.lane.b32.xlu0 %v744_v27, %s5272_s14  ;;  %v3298_v28 = vsel %vm3273_vm8, %v3233_v36, %v2485_v35 }
 0x32d   :  { %v2231_v40 = vpop.permute.xlu1 %2230 }
 0x32e   :  { %v3234_v47 = vsel %vm3208_vm7, %v3169_v31, %v2231_v40  ;;  %v5228_v31 = vld [vmem:[#allocation2 + $0x150] sm:$0xff] }
 0x32f   :  { %2254 = vrot.lane.b32.xlu1 %v681_v23, %s5271_s13  ;;  %v2741_v38 = vpop.permute.xlu0 %2740 }
 0x330   :  { %v3363_v58 = vsel %vm3338_vm9, %v3298_v28, %v2741_v38  ;;  %2510 = vrot.lane.b32.xlu0 %v745_v19, %s5272_s14 }
 0x331   :  { %v2487_v20 = vpop.permute.xlu1 %2486  ;;  %5031 = vmatprep.mubr.msk.f32.mxu0 %vm3415_vm10, %v3363_v58 }
 0x332   :  { %v3299_v5 = vsel %vm3273_vm8, %v3234_v47, %v2487_v20  ;;  %v8345_v20 = vld [vmem:[#allocation183_spill] sm:$0xff]  ;;  %v8346_v47 = vld [vmem:[#allocation21_spill] sm:$0xff] }
 0x333   :  { %1744 = vrot.lane.b32.xlu1 %v744_v27, %s5269_s25  ;;  %v2743_v42 = vpop.permute.xlu0 %2742  ;;  %v2976_v27 = vsel %vm2948_vm3, %v2911_v33, %v8343_v54 }
 0x334   :  { %v3364_v34 = vsel %vm3338_vm9, %v3299_v5, %v2743_v42  ;;  %1746 = vrot.lane.b32.xlu0 %v745_v19, %s5269_s25  ;;  %v3041_v35 = vsel %vm3013_vm4, %v2976_v27, %v8344_v30  ;;  %v2912_v5 = vsel %vm20_vm0, %v5228_v31, %v8346_v47  ;;  %v684_v42 = vld [vmem:[#allocation2 + $0x240] sm:$0xff] }
 0x335   :  { %v1977_v32 = vpop.permute.xlu1 %1976  ;;  %5032 = vmatmul.mubr.msk.f32.gmra.mxu0 %vm3415_vm10, %v3364_v34  ;;  %v3106_v18 = vsel %vm3078_vm5, %v3041_v35, %v8345_v20  ;;  %v8347_v34 = vld [vmem:[#allocation75_spill] sm:$0xff] }
 0x336   :  { %v4997_v16 = vpop.f32.mrf.mxu0  ;;  %v3170_v6 = vsel %vm3143_vm6, %v3105_v57, %v1977_v32 }
 0x337   :  { %2764 = vrot.lane.b32.xlu1 %v808_v2, %s5273_s1  ;;  %v3684_v21 = vadd.f32 %v4997_v16, %v7077_v43  ;;  %v2233_v60 = vpop.permute.xlu0 %2232 }
 0x338   :  { %v3678_v62 = vpop.f32.mrf.mxu0  ;;  %2766 = vrot.lane.b32.xlu0 %v809_v46, %s5273_s1  ;;  %v3235_v25 = vsel %vm3208_vm7, %v3170_v6, %v2233_v60 }
 0x339   :  { %v1979_v63 = vpop.permute.xlu1 %1978  ;;  %v3679_v15 = vadd.f32 %v7077_v43, %v3678_v62  ;;  %v3998_v41 = vmax.f32 %v3684_v21, 0.0  ;;  %v8348_v21 = vld [vmem:[#allocation129_spill] sm:$0xff] }
 0x33a   :  { %v3171_v55 = vsel %vm3143_vm6, %v3106_v18, %v1979_v63  ;;  %v2977_v63 = vsel %vm2948_vm3, %v2912_v5, %v8347_v34  ;;  %v5230_v18 = vld [vmem:[#allocation2 + $0x168] sm:$0xff] }
 0x33b   :  { %2000 = vrot.lane.b32.xlu1 %v808_v2, %s5270_s9  ;;  %v3997_v26 = vmax.f32 %v3679_v15, 0.0  ;;  %v2489_v49 = vpop.permute.xlu0 %2488  ;;  %v3042_v60 = vsel %vm3013_vm4, %v2977_v63, %v8348_v21  ;;  %v5231_v63 = vld [vmem:[#allocation2 + $0x170] sm:$0xff] }
 0x33c   :  { %2256 = vrot.lane.b32.xlu0 %v682_v39, %s5271_s13  ;;  %v3300_v23 = vsel %vm3273_vm8, %v3235_v25, %v2489_v49  ;;  %v812_v25 = vld [vmem:[#allocation2 + $0x242] sm:$0xff] }
 0x33d   :  { %v2235_v22 = vpop.permute.xlu1 %2234  ;;  %5099 = vmatprep.mubr.msk.f32.mxu1 %vm3338_vm9, %v3997_v26 }
 0x33e   :  { %5100 = vmatmul.mubr.msk.f32.vlgmr.msra.gmra.mxu1 %vm3338_vm9, %v3998_v41  ;;  %v3236_v48 = vsel %vm3208_vm7, %v3171_v55, %v2235_v22  ;;  %v2913_v41 = vsel %vm20_vm0, %v5229_v59, %v8349_v4 }
 0x33f   :  { %2002 = vrot.lane.b32.xlu1 %v809_v46, %s5270_s9  ;;  %v2491_v56 = vpop.permute.xlu0 %2490  ;;  %v685_v46 = vld [vmem:[#allocation2 + $0x248] sm:$0xff]  ;;  %v2978_v1 = vsel %vm2948_vm3, %v2913_v41, %v8350_v14 }
 0x340   :  { %2512 = vrot.lane.b32.xlu0 %v746_v37, %s5272_s14  ;;  %v3301_v8 = vsel %vm3273_vm8, %v3236_v48, %v2491_v56  ;;  %v3043_v57 = vsel %vm3013_vm4, %v2978_v1, %v8351_v24  ;;  %v8353_v48 = vld [vmem:[#allocation77_spill] sm:$0xff]  ;;  %v815_v24 = vld [vmem:[#allocation2 + $0x262] sm:$0xff] }
 0x341   :  { %v1725_v12 = vpop.permute.xlu1 %1724 }
 0x342   :  { %v3107_v15 = vsel %vm3078_vm5, %v3042_v60, %v1725_v12  ;;  %v749_v12 = vld [vmem:[#allocation2 + $0x249] sm:$0xff]  ;;  %v8356_v60 = vld [vmem:[#allocation78_spill] sm:$0xff] }
 0x343   :  { %2258 = vrot.lane.b32.xlu1 %v683_v51, %s5271_s13  ;;  %v1727_v45 = vpop.permute.xlu0 %1726 }
 0x344   :  { %2514 = vrot.lane.b32.xlu0 %v747_v52, %s5272_s14  ;;  %v3108_v56 = vsel %vm3078_vm5, %v3043_v57, %v1727_v45  ;;  %v813_v45 = vld [vmem:[#allocation2 + $0x24a] sm:$0xff] }
 0x345   :  { %v2745_v40 = vpop.permute.xlu1 %2744  ;;  %v291_v57 = vld [vmem:[#allocation2 + $0x1b0] sm:$0xff] }
 0x346   :  { %v3365_v7 = vsel %vm3338_vm9, %v3300_v23, %v2745_v40  ;;  %v5000_v17 = vpop.f32.mrf.mxu0 }
 0x347   :  { %1748 = vrot.lane.b32.xlu1 %v746_v37, %s5269_s25  ;;  %5034 = vmatprep.mubr.msk.f32.mxu0 %vm3415_vm10, %v3365_v7  ;;  %v3694_v36 = vadd.f32 %v5000_v17, %v7077_v43  ;;  %v2747_v19 = vpop.permute.xlu0 %2746  ;;  %v686_v17 = vld [vmem:[#allocation2 + $0x258] sm:$0xff] }
 0x348   :  { %v3688_v13 = vpop.f32.mrf.mxu0  ;;  %v3366_v50 = vsel %vm3338_vm9, %v3301_v8, %v2747_v19  ;;  %1750 = vrot.lane.b32.xlu0 %v747_v52, %s5269_s25  ;;  %v687_v19 = vld [vmem:[#allocation2 + $0x260] sm:$0xff] }
 0x349   :  { %v1981_v3 = vpop.permute.xlu1 %1980  ;;  %v3689_v28 = vadd.f32 %v7077_v43, %v3688_v13  ;;  %5035 = vmatmul.mubr.msk.f32.gmra.mxu0 %vm3415_vm10, %v3366_v50  ;;  %v4000_v10 = vmax.f32 %v3694_v36, 0.0  ;;  %v8354_v13 = vld [vmem:[#allocation131_spill] sm:$0xff] }
 0x34a   :  { %v3172_v22 = vsel %vm3143_vm6, %v3107_v15, %v1981_v3  ;;  %v8352_v3 = vld [vmem:[#allocation23_spill] sm:$0xff] }
 0x34b   :  { %2768 = vrot.lane.b32.xlu1 %v810_v0, %s5273_s1  ;;  %v3999_v2 = vmax.f32 %v3689_v28, 0.0  ;;  %v2237_v58 = vpop.permute.xlu0 %2236  ;;  %v2914_v55 = vsel %vm20_vm0, %v5230_v18, %v8352_v3 }
 0x34c   :  { %2770 = vrot.lane.b32.xlu0 %v811_v53, %s5273_s1  ;;  %v3237_v11 = vsel %vm3208_vm7, %v3172_v22, %v2237_v58  ;;  %v2979_v8 = vsel %vm2948_vm3, %v2914_v55, %v8353_v48  ;;  %v751_v22 = vld [vmem:[#allocation2 + $0x261] sm:$0xff]  ;;  %v752_v55 = vld [vmem:[#allocation2 + $0x271] sm:$0xff] }
 0x34d   :  { %v1983_v38 = vpop.permute.xlu1 %1982  ;;  %5102 = vmatprep.mubr.msk.f32.mxu1 %vm3338_vm9, %v3999_v2  ;;  %v3044_v50 = vsel %vm3013_vm4, %v2979_v8, %v8354_v13  ;;  %v8361_v13 = vld [vmem:[#allocation26_spill] sm:$0xff] }
 0x34e   :  { %5103 = vmatmul.mubr.msk.f32.gmra.mxu1 %vm3338_vm9, %v4000_v10  ;;  %v3173_v29 = vsel %vm3143_vm6, %v3108_v56, %v1983_v38  ;;  %v750_v10 = vld [vmem:[#allocation2 + $0x259] sm:$0xff]  ;;  %v8358_v56 = vld [vmem:[#allocation25_spill] sm:$0xff] }
 0x34f   :  { %2004 = vrot.lane.b32.xlu1 %v810_v0, %s5270_s9  ;;  %v2493_v16 = vpop.permute.xlu0 %2492 }
 0x350   :  { %2260 = vrot.lane.b32.xlu0 %v684_v42, %s5271_s13  ;;  %v3302_v26 = vsel %vm3273_vm8, %v3237_v11, %v2493_v16  ;;  %v8355_v16 = vld [vmem:[#allocation24_spill] sm:$0xff] }
 0x351   :  { %v2239_v32 = vpop.permute.xlu1 %2238 }
 0x352   :  { %v3238_v33 = vsel %vm3208_vm7, %v3173_v29, %v2239_v32 }
 0x353   :  { %2006 = vrot.lane.b32.xlu1 %v811_v53, %s5270_s9  ;;  %v2495_v44 = vpop.permute.xlu0 %2494 }
 0x354   :  { %2516 = vrot.lane.b32.xlu0 %v748_v61, %s5272_s14  ;;  %v3303_v54 = vsel %vm3273_vm8, %v3238_v33, %v2495_v44 }
 0x355   :  { %v1729_v62 = vpop.permute.xlu1 %1728 }
 0x356   :  { %v5003_v51 = vpop.f32.mrf.mxu0  ;;  %v3109_v38 = vsel %vm3078_vm5, %v3044_v50, %v1729_v62 }
 0x357   :  { %2262 = vrot.lane.b32.xlu1 %v685_v46, %s5271_s13  ;;  %v1731_v6 = vpop.permute.xlu0 %1730  ;;  %v3704_v23 = vadd.f32 %v5003_v51, %v7077_v43  ;;  %v2915_v46 = vsel %vm20_vm0, %v5231_v63, %v8355_v16 }
 0x358   :  { %v3698_v37 = vpop.f32.mrf.mxu0  ;;  %2518 = vrot.lane.b32.xlu0 %v749_v12, %s5272_s14  ;;  %v2980_v62 = vsel %vm2948_vm3, %v2915_v46, %v8356_v60 }
 0x359   :  { %v2749_v39 = vpop.permute.xlu1 %2748  ;;  %v3699_v40 = vadd.f32 %v7077_v43, %v3698_v37  ;;  %v4002_v52 = vmax.f32 %v3704_v23, 0.0  ;;  %v2916_v23 = vsel %vm20_vm0, %v291_v57, %v8358_v56  ;;  %v754_v56 = vld [vmem:[#allocation2 + $0x289] sm:$0xff] }
 0x35a   :  { %v3367_v49 = vsel %vm3338_vm9, %v3302_v26, %v2749_v39  ;;  %v814_v39 = vld [vmem:[#allocation2 + $0x25a] sm:$0xff] }
 0x35b   :  { %1752 = vrot.lane.b32.xlu1 %v748_v61, %s5269_s25  ;;  %5037 = vmatprep.mubr.msk.f32.mxu0 %vm3415_vm10, %v3367_v49  ;;  %v4001_v7 = vmax.f32 %v3699_v40, 0.0  ;;  %v2751_v27 = vpop.permute.xlu0 %2750  ;;  %v8357_v61 = vld [vmem:[#allocation132_spill] sm:$0xff]  ;;  %v688_v40 = vld [vmem:[#allocation2 + $0x270] sm:$0xff] }
 0x35c   :  { %v3368_v30 = vsel %vm3338_vm9, %v3303_v54, %v2751_v27  ;;  %1754 = vrot.lane.b32.xlu0 %v749_v12, %s5269_s25  ;;  %v3045_v11 = vsel %vm3013_vm4, %v2980_v62, %v8357_v61  ;;  %v689_v27 = vld [vmem:[#allocation2 + $0x278] sm:$0xff] }
 0x35d   :  { %v1985_v9 = vpop.permute.xlu1 %1984  ;;  %5105 = vmatprep.mubr.msk.f32.mxu1 %vm3338_vm9, %v4001_v7  ;;  %5038 = vmatmul.mubr.msk.f32.gmra.mxu0 %vm3415_vm10, %v3368_v30  ;;  %v3110_v59 = vsel %vm3078_vm5, %v3045_v11, %v1731_v6  ;;  %v817_v62 = vld [vmem:[#allocation2 + $0x27a] sm:$0xff] }
 0x35e   :  { %5106 = vmatmul.mubr.msk.f32.gmra.mxu1 %vm3338_vm9, %v4002_v52  ;;  %v3174_v53 = vsel %vm3143_vm6, %v3109_v38, %v1985_v9  ;;  %v8359_v9 = vld [vmem:[#allocation79_spill] sm:$0xff]  ;;  %v8360_v52 = vld [vmem:[#allocation134_spill] sm:$0xff]  ;;  %v8362_v38 = vld [vmem:[#allocation80_spill] sm:$0xff] }
 0x35f   :  { %2772 = vrot.lane.b32.xlu1 %v812_v25, %s5273_s1  ;;  %v2241_v0 = vpop.permute.xlu0 %2240  ;;  %v2981_v29 = vsel %vm2948_vm3, %v2916_v23, %v8359_v9 }
 0x360   :  { %2774 = vrot.lane.b32.xlu0 %v813_v45, %s5273_s1  ;;  %v3239_v58 = vsel %vm3208_vm7, %v3174_v53, %v2241_v0  ;;  %v3046_v30 = vsel %vm3013_vm4, %v2981_v29, %v8360_v52  ;;  %v753_v53 = vld [vmem:[#allocation2 + $0x279] sm:$0xff] }
 0x361   :  { %v1987_v35 = vpop.permute.xlu1 %1986  ;;  %v8368_v52 = vld [vmem:[#allocation82_spill] sm:$0xff] }
 0x362   :  { %v3175_v41 = vsel %vm3143_vm6, %v3110_v59, %v1987_v35 }
 0x363   :  { %2008 = vrot.lane.b32.xlu1 %v812_v25, %s5270_s9  ;;  %v2497_v36 = vpop.permute.xlu0 %2496 }
 0x364   :  { %2264 = vrot.lane.b32.xlu0 %v686_v17, %s5271_s13  ;;  %v3304_v5 = vsel %vm3273_vm8, %v3239_v58, %v2497_v36 }
 0x365   :  { %v2243_v20 = vpop.permute.xlu1 %2242 }
 0x366   :  { %v5006_v2 = vpop.f32.mrf.mxu0  ;;  %v3240_v49 = vsel %vm3208_vm7, %v3175_v41, %v2243_v20  ;;  %v292_v20 = vld [vmem:[#allocation2 + $0x1b8] sm:$0xff]  ;;  %v690_v41 = vld [vmem:[#allocation2 + $0x288] sm:$0xff] }
 0x367   :  { %2010 = vrot.lane.b32.xlu1 %v813_v45, %s5270_s9  ;;  %v3714_v32 = vadd.f32 %v5006_v2, %v7077_v43  ;;  %v2499_v31 = vpop.permute.xlu0 %2498  ;;  %v2917_v50 = vsel %vm20_vm0, %v292_v20, %v8361_v13 }
 0x368   :  { %v3708_v47 = vpop.f32.mrf.mxu0  ;;  %2520 = vrot.lane.b32.xlu0 %v750_v10, %s5272_s14  ;;  %v3305_v51 = vsel %vm3273_vm8, %v3240_v49, %v2499_v31  ;;  %v2982_v2 = vsel %vm2948_vm3, %v2917_v50, %v8362_v38  ;;  %v816_v31 = vld [vmem:[#allocation2 + $0x272] sm:$0xff] }
 0x369   :  { %v1733_v28 = vpop.permute.xlu1 %1732  ;;  %v3709_v42 = vadd.f32 %v7077_v43, %v3708_v47  ;;  %v4004_v44 = vmax.f32 %v3714_v32, 0.0  ;;  %v8365_v49 = vld [vmem:[#allocation81_spill] sm:$0xff] }
 0x36a   :  { %v3111_v0 = vsel %vm3078_vm5, %v3046_v30, %v1733_v28 }
 0x36b   :  { %2266 = vrot.lane.b32.xlu1 %v687_v19, %s5271_s13  ;;  %v4003_v15 = vmax.f32 %v3709_v42, 0.0  ;;  %v1735_v26 = vpop.permute.xlu0 %1734 }
 0x36c   :  { %2522 = vrot.lane.b32.xlu0 %v751_v22, %s5272_s14 }
 0x36d   :  { %v2753_v34 = vpop.permute.xlu1 %2752  ;;  %5108 = vmatprep.mubr.msk.f32.mxu1 %vm3338_vm9, %v4003_v15 }
 0x36e   :  { %v3369_v21 = vsel %vm3338_vm9, %v3304_v5, %v2753_v34  ;;  %5109 = vmatmul.mubr.msk.f32.gmra.mxu1 %vm3338_vm9, %v4004_v44 }
 0x36f   :  { %1756 = vrot.lane.b32.xlu1 %v750_v10, %s5269_s25  ;;  %5040 = vmatprep.mubr.msk.f32.mxu0 %vm3415_vm10, %v3369_v21  ;;  %v2755_v14 = vpop.permute.xlu0 %2754  ;;  %v8363_v10 = vld [vmem:[#allocation136_spill] sm:$0xff] }
 0x370   :  { %v3370_v1 = vsel %vm3338_vm9, %v3305_v51, %v2755_v14  ;;  %1758 = vrot.lane.b32.xlu0 %v751_v22, %s5269_s25  ;;  %v3047_v58 = vsel %vm3013_vm4, %v2982_v2, %v8363_v10  ;;  %v819_v10 = vld [vmem:[#allocation2 + $0x292] sm:$0xff] }
 0x371   :  { %v1989_v4 = vpop.permute.xlu1 %1988  ;;  %5041 = vmatmul.mubr.msk.f32.gmra.mxu0 %vm3415_vm10, %v3370_v1  ;;  %v3112_v47 = vsel %vm3078_vm5, %v3047_v58, %v1735_v26  ;;  %v5232_v26 = vld [vmem:[#allocation2 + $0x1c8] sm:$0xff] }
 0x372   :  { %v3176_v18 = vsel %vm3143_vm6, %v3111_v0, %v1989_v4 }
 0x373   :  { %2776 = vrot.lane.b32.xlu1 %v814_v39, %s5273_s1  ;;  %v2245_v6 = vpop.permute.xlu0 %2244 }
 0x374   :  { %2778 = vrot.lane.b32.xlu0 %v815_v24, %s5273_s1  ;;  %v3241_v17 = vsel %vm3208_vm7, %v3176_v18, %v2245_v6  ;;  %v818_v18 = vld [vmem:[#allocation2 + $0x28a] sm:$0xff] }
 0x375   :  { %v1991_v12 = vpop.permute.xlu1 %1990  ;;  %v5009_v25 = vpop.f32.mrf.mxu0 }
 0x376   :  { %v3724_v33 = vadd.f32 %v5009_v25, %v7077_v43  ;;  %v3177_v42 = vsel %vm3143_vm6, %v3112_v47, %v1991_v12  ;;  %v691_v12 = vld [vmem:[#allocation2 + $0x290] sm:$0xff]  ;;  %v5234_v47 = vld [vmem:[#allocation2 + $0x1e0] sm:$0xff] }
 0x377   :  { %2012 = vrot.lane.b32.xlu1 %v814_v39, %s5270_s9  ;;  %v2501_v7 = vpop.permute.xlu0 %2500  ;;  %v3718_v54 = vpop.f32.mrf.mxu0  ;;  %v8364_v39 = vld [vmem:[#allocation27_spill] sm:$0xff] }
 0x378   :  { %v3719_v35 = vadd.f32 %v7077_v43, %v3718_v54  ;;  %2268 = vrot.lane.b32.xlu0 %v688_v40, %s5271_s13  ;;  %v4006_v48 = vmax.f32 %v3724_v33, 0.0  ;;  %v3306_v36 = vsel %vm3273_vm8, %v3241_v17, %v2501_v7  ;;  %v2918_v59 = vsel %vm20_vm0, %v5232_v26, %v8364_v39  ;;  %v5233_v33 = vld [vmem:[#allocation2 + $0x1d0] sm:$0xff]  ;;  %v8367_v7 = vld [vmem:[#allocation28_spill] sm:$0xff] }
 0x379   :  { %v2247_v37 = vpop.permute.xlu1 %2246  ;;  %v2983_v51 = vsel %vm2948_vm3, %v2918_v59, %v8365_v49  ;;  %v2919_v54 = vsel %vm20_vm0, %v5233_v33, %v8367_v7 }
 0x37a   :  { %v4005_v3 = vmax.f32 %v3719_v35, 0.0  ;;  %v3242_v34 = vsel %vm3208_vm7, %v3177_v42, %v2247_v37  ;;  %v2984_v30 = vsel %vm2948_vm3, %v2919_v54, %v8368_v52  ;;  %v755_v35 = vld [vmem:[#allocation2 + $0x291] sm:$0xff] }
 0x37b   :  { %2014 = vrot.lane.b32.xlu1 %v815_v24, %s5270_s9  ;;  %v2503_v8 = vpop.permute.xlu0 %2502  ;;  %v8366_v24 = vld [vmem:[#allocation137_spill] sm:$0xff] }
 0x37c   :  { %5111 = vmatprep.mubr.msk.f32.mxu1 %vm3338_vm9, %v4005_v3  ;;  %2524 = vrot.lane.b32.xlu0 %v752_v55, %s5272_s14  ;;  %v3307_v63 = vsel %vm3273_vm8, %v3242_v34, %v2503_v8  ;;  %v3048_v57 = vsel %vm3013_vm4, %v2983_v51, %v8366_v24  ;;  %v692_v34 = vld [vmem:[#allocation2 + $0x2a0] sm:$0xff]  ;;  %v757_v24 = vld [vmem:[#allocation2 + $0x2a9] sm:$0xff] }
 0x37d   :  { %v1737_v45 = vpop.permute.xlu1 %1736  ;;  %5112 = vmatmul.mubr.msk.f32.gmra.mxu1 %vm3338_vm9, %v4006_v48 }
 0x37e   :  { %v3113_v37 = vsel %vm3078_vm5, %v3048_v57, %v1737_v45  ;;  %v8369_v45 = vld [vmem:[#allocation138_spill] sm:$0xff]  ;;  %v8375_v57 = vld [vmem:[#allocation140_spill] sm:$0xff] }
 0x37f   :  { %2270 = vrot.lane.b32.xlu1 %v689_v27, %s5271_s13  ;;  %v1739_v32 = vpop.permute.xlu0 %1738  ;;  %v3049_v0 = vsel %vm3013_vm4, %v2984_v30, %v8369_v45 }
 0x380   :  { %2526 = vrot.lane.b32.xlu0 %v753_v53, %s5272_s14  ;;  %v3114_v3 = vsel %vm3078_vm5, %v3049_v0, %v1739_v32  ;;  %v821_v0 = vld [vmem:[#allocation2 + $0x2aa] sm:$0xff] }
 0x381   :  { %v2757_v19 = vpop.permute.xlu1 %2756 }
 0x382   :  { %v3371_v28 = vsel %vm3338_vm9, %v3306_v36, %v2757_v19 }
 0x383   :  { %1760 = vrot.lane.b32.xlu1 %v752_v55, %s5269_s25  ;;  %5043 = vmatprep.mubr.msk.f32.mxu0 %vm3415_vm10, %v3371_v28  ;;  %v2759_v16 = vpop.permute.xlu0 %2758 }
 0x384   :  { %v3372_v46 = vsel %vm3338_vm9, %v3307_v63, %v2759_v16  ;;  %1762 = vrot.lane.b32.xlu0 %v753_v53, %s5269_s25  ;;  %v8371_v63 = vld [vmem:[#allocation83_spill] sm:$0xff] }
 0x385   :  { %v1993_v5 = vpop.permute.xlu1 %1992  ;;  %v5012_v60 = vpop.f32.mrf.mxu0  ;;  %5044 = vmatmul.mubr.msk.f32.gmra.mxu0 %vm3415_vm10, %v3372_v46 }
 0x386   :  { %v3734_v15 = vadd.f32 %v5012_v60, %v7077_v43  ;;  %v3178_v25 = vsel %vm3143_vm6, %v3113_v37, %v1993_v5  ;;  %v8370_v5 = vld [vmem:[#allocation29_spill] sm:$0xff]  ;;  %v8372_v60 = vld [vmem:[#allocation139_spill] sm:$0xff] }
 0x387   :  { %2780 = vrot.lane.b32.xlu1 %v816_v31, %s5273_s1  ;;  %v2249_v22 = vpop.permute.xlu0 %2248  ;;  %v3728_v61 = vpop.f32.mrf.mxu0  ;;  %v2920_v42 = vsel %vm20_vm0, %v5234_v47, %v8370_v5 }
 0x388   :  { %v3729_v11 = vadd.f32 %v7077_v43, %v3728_v61  ;;  %2782 = vrot.lane.b32.xlu0 %v817_v62, %s5273_s1  ;;  %v4008_v14 = vmax.f32 %v3734_v15, 0.0  ;;  %v3243_v23 = vsel %vm3208_vm7, %v3178_v25, %v2249_v22  ;;  %v2985_v16 = vsel %vm2948_vm3, %v2920_v42, %v8371_v63 }
 0x389   :  { %v1995_v21 = vpop.permute.xlu1 %1994 }
 0x38a   :  { %v4007_v4 = vmax.f32 %v3729_v11, 0.0  ;;  %v3179_v17 = vsel %vm3143_vm6, %v3114_v3, %v1995_v21  ;;  %v693_v21 = vld [vmem:[#allocation2 + $0x2a8] sm:$0xff]  ;;  %v5236_v3 = vld [vmem:[#allocation2 + $0x1f8] sm:$0xff] }
 0x38b   :  { %2016 = vrot.lane.b32.xlu1 %v816_v31, %s5270_s9  ;;  %v2505_v1 = vpop.permute.xlu0 %2504  ;;  %v756_v11 = vld [vmem:[#allocation2 + $0x2a1] sm:$0xff] }
 0x38c   :  { %5114 = vmatprep.mubr.msk.f32.mxu1 %vm3338_vm9, %v4007_v4  ;;  %2272 = vrot.lane.b32.xlu0 %v690_v41, %s5271_s13  ;;  %v3308_v9 = vsel %vm3273_vm8, %v3243_v23, %v2505_v1  ;;  %v5235_v4 = vld [vmem:[#allocation2 + $0x1e8] sm:$0xff]  ;;  %v8373_v41 = vld [vmem:[#allocation30_spill] sm:$0xff] }
 0x38d   :  { %v2251_v44 = vpop.permute.xlu1 %2250  ;;  %5115 = vmatmul.mubr.msk.f32.gmra.mxu1 %vm3338_vm9, %v4008_v14  ;;  %v2921_v49 = vsel %vm20_vm0, %v5235_v4, %v8373_v41  ;;  %v8374_v1 = vld [vmem:[#allocation84_spill] sm:$0xff] }
 0x38e   :  { %v3244_v8 = vsel %vm3208_vm7, %v3179_v17, %v2251_v44 }
 0x38f   :  { %2018 = vrot.lane.b32.xlu1 %v817_v62, %s5270_s9  ;;  %v2507_v40 = vpop.permute.xlu0 %2506  ;;  %v3050_v62 = vsel %vm3013_vm4, %v2985_v16, %v8372_v60  ;;  %v5237_v16 = vld [vmem:[#allocation2 + $0x200] sm:$0xff] }
 0x390   :  { %2528 = vrot.lane.b32.xlu0 %v754_v56, %s5272_s14  ;;  %v3309_v36 = vsel %vm3273_vm8, %v3244_v8, %v2507_v40  ;;  %v8377_v8 = vld [vmem:[#allocation85_spill] sm:$0xff] }
 0x391   :  { %v1741_v6 = vpop.permute.xlu1 %1740 }
 0x392   :  { %v3115_v22 = vsel %vm3078_vm5, %v3050_v62, %v1741_v6  ;;  %v8380_v62 = vld [vmem:[#allocation86_spill] sm:$0xff] }
 0x393   :  { %2274 = vrot.lane.b32.xlu1 %v691_v12, %s5271_s13  ;;  %v1743_v20 = vpop.permute.xlu0 %1742  ;;  %v2986_v12 = vsel %vm2948_vm3, %v2921_v49, %v8374_v1 }
 0x394   :  { %2530 = vrot.lane.b32.xlu0 %v755_v35, %s5272_s14  ;;  %v3051_v6 = vsel %vm3013_vm4, %v2986_v12, %v8375_v57  ;;  %v823_v57 = vld [vmem:[#allocation2 + $0x2c2] sm:$0xff] }
 0x395   :  { %v2761_v29 = vpop.permute.xlu1 %2760  ;;  %v5015_v48 = vpop.f32.mrf.mxu0  ;;  %v3116_v23 = vsel %vm3078_vm5, %v3051_v6, %v1743_v20 }
 0x396   :  { %v3373_v27 = vsel %vm3338_vm9, %v3308_v9, %v2761_v29  ;;  %v3744_v19 = vadd.f32 %v5015_v48, %v7077_v43  ;;  %v694_v48 = vld [vmem:[#allocation2 + $0x2b8] sm:$0xff] }
 0x397   :  { %1764 = vrot.lane.b32.xlu1 %v754_v56, %s5269_s25  ;;  %5046 = vmatprep.mubr.msk.f32.mxu0 %vm3415_vm10, %v3373_v27  ;;  %v2763_v13 = vpop.permute.xlu0 %2762  ;;  %v3738_v50 = vpop.f32.mrf.mxu0  ;;  %v820_v56 = vld [vmem:[#allocation2 + $0x2a2] sm:$0xff] }
 0x398   :  { %v3374_v28 = vsel %vm3338_vm9, %v3309_v36, %v2763_v13  ;;  %v3739_v38 = vadd.f32 %v7077_v43, %v3738_v50  ;;  %1766 = vrot.lane.b32.xlu0 %v755_v35, %s5269_s25  ;;  %v4010_v58 = vmax.f32 %v3744_v19, 0.0  ;;  %v695_v13 = vld [vmem:[#allocation2 + $0x2c0] sm:$0xff]  ;;  %v8378_v50 = vld [vmem:[#allocation141_spill] sm:$0xff] }
 0x399   :  { %v1997_v55 = vpop.permute.xlu1 %1996  ;;  %5047 = vmatmul.mubr.msk.f32.gmra.mxu0 %vm3415_vm10, %v3374_v28 }
 0x39a   :  { %v4009_v53 = vmax.f32 %v3739_v38, 0.0  ;;  %v3180_v61 = vsel %vm3143_vm6, %v3115_v22, %v1997_v55  ;;  %v8376_v55 = vld [vmem:[#allocation31_spill] sm:$0xff] }
 0x39b   :  { %2784 = vrot.lane.b32.xlu1 %v818_v18, %s5273_s1  ;;  %v2253_v32 = vpop.permute.xlu0 %2252  ;;  %v2922_v17 = vsel %vm20_vm0, %v5236_v3, %v8376_v55  ;;  %v760_v55 = vld [vmem:[#allocation2 + $0x2d1] sm:$0xff] }
 0x39c   :  { %5117 = vmatprep.mubr.msk.f32.mxu1 %vm3338_vm9, %v4009_v53  ;;  %2786 = vrot.lane.b32.xlu0 %v819_v10, %s5273_s1  ;;  %v3245_v44 = vsel %vm3208_vm7, %v3180_v61, %v2253_v32  ;;  %v2987_v36 = vsel %vm2948_vm3, %v2922_v17, %v8377_v8  ;;  %v759_v61 = vld [vmem:[#allocation2 + $0x2c1] sm:$0xff] }
 0x39d   :  { %v1999_v2 = vpop.permute.xlu1 %1998  ;;  %5118 = vmatmul.mubr.msk.f32.gmra.mxu1 %vm3338_vm9, %v4010_v58  ;;  %v3052_v28 = vsel %vm3013_vm4, %v2987_v36, %v8378_v50  ;;  %v758_v58 = vld [vmem:[#allocation2 + $0x2b9] sm:$0xff] }
 0x39e   :  { %v3181_v33 = vsel %vm3143_vm6, %v3116_v23, %v1999_v2  ;;  %v8382_v23 = vld [vmem:[#allocation33_spill] sm:$0xff]  ;;  %v8385_v50 = vld [vmem:[#allocation34_spill] sm:$0xff] }
 0x39f   :  { %2020 = vrot.lane.b32.xlu1 %v818_v18, %s5270_s9  ;;  %v2509_v46 = vpop.permute.xlu0 %2508 }
 0x3a0   :  { %2276 = vrot.lane.b32.xlu0 %v692_v34, %s5271_s13  ;;  %v3310_v39 = vsel %vm3273_vm8, %v3245_v44, %v2509_v46  ;;  %v8379_v46 = vld [vmem:[#allocation32_spill] sm:$0xff] }
 0x3a1   :  { %v2255_v31 = vpop.permute.xlu1 %2254 }
 0x3a2   :  { %v3246_v7 = vsel %vm3208_vm7, %v3181_v33, %v2255_v31 }
 0x3a3   :  { %2022 = vrot.lane.b32.xlu1 %v819_v10, %s5270_s9  ;;  %v2511_v26 = vpop.permute.xlu0 %2510 }
 0x3a4   :  { %2532 = vrot.lane.b32.xlu0 %v756_v11, %s5272_s14  ;;  %v3311_v27 = vsel %vm3273_vm8, %v3246_v7, %v2511_v26 }
 0x3a5   :  { %v1745_v15 = vpop.permute.xlu1 %1744  ;;  %v5018_v14 = vpop.f32.mrf.mxu0 }
 0x3a6   :  { %v3754_v40 = vadd.f32 %v5018_v14, %v7077_v43  ;;  %v3117_v2 = vsel %vm3078_vm5, %v3052_v28, %v1745_v15 }
 0x3a7   :  { %2278 = vrot.lane.b32.xlu1 %v693_v21, %s5271_s13  ;;  %v1747_v37 = vpop.permute.xlu0 %1746  ;;  %v3748_v25 = vpop.f32.mrf.mxu0  ;;  %v2923_v21 = vsel %vm20_vm0, %v5237_v16, %v8379_v46 }
 0x3a8   :  { %v3749_v9 = vadd.f32 %v7077_v43, %v3748_v25  ;;  %2534 = vrot.lane.b32.xlu0 %v757_v24, %s5272_s14  ;;  %v4012_v30 = vmax.f32 %v3754_v40, 0.0  ;;  %v2988_v15 = vsel %vm2948_vm3, %v2923_v21, %v8380_v62 }
 0x3a9   :  { %v2765_v59 = vpop.permute.xlu1 %2764 }
 0x3aa   :  { %v3375_v51 = vsel %vm3338_vm9, %v3310_v39, %v2765_v59  ;;  %v4011_v54 = vmax.f32 %v3749_v9, 0.0  ;;  %v822_v59 = vld [vmem:[#allocation2 + $0x2ba] sm:$0xff]  ;;  %v696_v9 = vld [vmem:[#allocation2 + $0x2d0] sm:$0xff] }
 0x3ab   :  { %1768 = vrot.lane.b32.xlu1 %v756_v11, %s5269_s25  ;;  %5049 = vmatprep.mubr.msk.f32.mxu0 %vm3415_vm10, %v3375_v51  ;;  %v2767_v52 = vpop.permute.xlu0 %2766  ;;  %v8381_v11 = vld [vmem:[#allocation142_spill] sm:$0xff] }
 0x3ac   :  { %v3376_v35 = vsel %vm3338_vm9, %v3311_v27, %v2767_v52  ;;  %5120 = vmatprep.mubr.msk.f32.mxu1 %vm3338_vm9, %v4011_v54  ;;  %1770 = vrot.lane.b32.xlu0 %v757_v24, %s5269_s25  ;;  %v3053_v44 = vsel %vm3013_vm4, %v2988_v15, %v8381_v11  ;;  %v697_v52 = vld [vmem:[#allocation2 + $0x2d8] sm:$0xff] }
 0x3ad   :  { %v2001_v29 = vpop.permute.xlu1 %2000  ;;  %5050 = vmatmul.mubr.msk.f32.gmra.mxu0 %vm3415_vm10, %v3376_v35  ;;  %5121 = vmatmul.mubr.msk.f32.gmra.mxu1 %vm3338_vm9, %v4012_v30  ;;  %v3118_v4 = vsel %vm3078_vm5, %v3053_v44, %v1747_v37  ;;  %v8384_v30 = vld [vmem:[#allocation143_spill] sm:$0xff] }
 0x3ae   :  { %v3182_v10 = vsel %vm3143_vm6, %v3117_v2, %v2001_v29  ;;  %v8383_v29 = vld [vmem:[#allocation87_spill] sm:$0xff]  ;;  %v8386_v2 = vld [vmem:[#allocation88_spill] sm:$0xff] }
 0x3af   :  { %2788 = vrot.lane.b32.xlu1 %v820_v56, %s5273_s1  ;;  %v2257_v20 = vpop.permute.xlu0 %2256  ;;  %v825_v15 = vld [vmem:[#allocation2 + $0x2da] sm:$0xff] }
 0x3b0   :  { %2790 = vrot.lane.b32.xlu0 %v821_v0, %s5273_s1  ;;  %v3247_v32 = vsel %vm3208_vm7, %v3182_v10, %v2257_v20  ;;  %v761_v10 = vld [vmem:[#allocation2 + $0x2d9] sm:$0xff] }
 0x3b1   :  { %v2003_v45 = vpop.permute.xlu1 %2002 }
 0x3b2   :  { %v3183_v49 = vsel %vm3143_vm6, %v3118_v4, %v2003_v45 }
 0x3b3   :  { %2024 = vrot.lane.b32.xlu1 %v820_v56, %s5270_s9  ;;  %v2513_v19 = vpop.permute.xlu0 %2512  ;;  %v5238_v56 = vld [vmem:[#allocation2 + $0x210] sm:$0xff] }
 0x3b4   :  { %2280 = vrot.lane.b32.xlu0 %v694_v48, %s5271_s13  ;;  %v3312_v42 = vsel %vm3273_vm8, %v3247_v32, %v2513_v19  ;;  %v2924_v40 = vsel %vm20_vm0, %v5238_v56, %v8382_v23  ;;  %v762_v23 = vld [vmem:[#allocation2 + $0x2e9] sm:$0xff] }
 0x3b5   :  { %v2259_v18 = vpop.permute.xlu1 %2258  ;;  %v5021_v53 = vpop.f32.mrf.mxu0  ;;  %v2989_v33 = vsel %vm2948_vm3, %v2924_v40, %v8383_v29 }
 0x3b6   :  { %v3764_v31 = vadd.f32 %v5021_v53, %v7077_v43  ;;  %v3248_v51 = vsel %vm3208_vm7, %v3183_v49, %v2259_v18  ;;  %v3054_v35 = vsel %vm3013_vm4, %v2989_v33, %v8384_v30  ;;  %v698_v49 = vld [vmem:[#allocation2 + $0x2e8] sm:$0xff]  ;;  %v8392_v30 = vld [vmem:[#allocation90_spill] sm:$0xff] }
 0x3b7   :  { %2026 = vrot.lane.b32.xlu1 %v821_v0, %s5270_s9  ;;  %v2515_v47 = vpop.permute.xlu0 %2514  ;;  %v3758_v5 = vpop.f32.mrf.mxu0 }
 0x3b8   :  { %v3759_v34 = vadd.f32 %v7077_v43, %v3758_v5  ;;  %2536 = vrot.lane.b32.xlu0 %v758_v58, %s5272_s14  ;;  %v4014_v26 = vmax.f32 %v3764_v31, 0.0  ;;  %v3313_v14 = vsel %vm3273_vm8, %v3248_v51, %v2515_v47  ;;  %v824_v47 = vld [vmem:[#allocation2 + $0x2d2] sm:$0xff] }
 0x3b9   :  { %v1749_v38 = vpop.permute.xlu1 %1748  ;;  %v8389_v51 = vld [vmem:[#allocation89_spill] sm:$0xff] }
 0x3ba   :  { %v4013_v22 = vmax.f32 %v3759_v34, 0.0  ;;  %v3119_v20 = vsel %vm3078_vm5, %v3054_v35, %v1749_v38 }
 0x3bb   :  { %2282 = vrot.lane.b32.xlu1 %v695_v13, %s5271_s13  ;;  %v1751_v39 = vpop.permute.xlu0 %1750  ;;  %v5239_v13 = vld [vmem:[#allocation2 + $0x218] sm:$0xff] }
 0x3bc   :  { %5123 = vmatprep.mubr.msk.f32.mxu1 %vm3338_vm9, %v4013_v22  ;;  %2538 = vrot.lane.b32.xlu0 %v759_v61, %s5272_s14  ;;  %v2925_v28 = vsel %vm20_vm0, %v5239_v13, %v8385_v50 }
 0x3bd   :  { %v2769_v63 = vpop.permute.xlu1 %2768  ;;  %5124 = vmatmul.mubr.msk.f32.gmra.mxu1 %vm3338_vm9, %v4014_v26  ;;  %v2990_v53 = vsel %vm2948_vm3, %v2925_v28, %v8386_v2 }
 0x3be   :  { %v3377_v60 = vsel %vm3338_vm9, %v3312_v42, %v2769_v63 }
 0x3bf   :  { %1772 = vrot.lane.b32.xlu1 %v758_v58, %s5269_s25  ;;  %5052 = vmatprep.mubr.msk.f32.mxu0 %vm3415_vm10, %v3377_v60  ;;  %v2771_v1 = vpop.permute.xlu0 %2770  ;;  %v8387_v58 = vld [vmem:[#allocation144_spill] sm:$0xff] }
 0x3c0   :  { %v3378_v12 = vsel %vm3338_vm9, %v3313_v14, %v2771_v1  ;;  %1774 = vrot.lane.b32.xlu0 %v759_v61, %s5269_s25  ;;  %v3055_v32 = vsel %vm3013_vm4, %v2990_v53, %v8387_v58  ;;  %v827_v58 = vld [vmem:[#allocation2 + $0x2f2] sm:$0xff] }
 0x3c1   :  { %v2005_v41 = vpop.permute.xlu1 %2004  ;;  %5053 = vmatmul.mubr.msk.f32.gmra.mxu0 %vm3415_vm10, %v3378_v12  ;;  %v3120_v5 = vsel %vm3078_vm5, %v3055_v32, %v1751_v39  ;;  %v5240_v39 = vld [vmem:[#allocation2 + $0x228] sm:$0xff] }
 0x3c2   :  { %v3184_v18 = vsel %vm3143_vm6, %v3119_v20, %v2005_v41 }
 0x3c3   :  { %2792 = vrot.lane.b32.xlu1 %v822_v59, %s5273_s1  ;;  %v2261_v6 = vpop.permute.xlu0 %2260 }
 0x3c4   :  { %2794 = vrot.lane.b32.xlu0 %v823_v57, %s5273_s1  ;;  %v3249_v17 = vsel %vm3208_vm7, %v3184_v18, %v2261_v6 }
 0x3c5   :  { %v2007_v24 = vpop.permute.xlu1 %2006  ;;  %v5024_v25 = vpop.f32.mrf.mxu0 }
 0x3c6   :  { %v3774_v7 = vadd.f32 %v5024_v25, %v7077_v43  ;;  %v3185_v34 = vsel %vm3143_vm6, %v3120_v5, %v2007_v24  ;;  %v699_v24 = vld [vmem:[#allocation2 + $0x2f0] sm:$0xff]  ;;  %v5242_v5 = vld [vmem:[#allocation2 + $0x240] sm:$0xff] }
 0x3c7   :  { %2028 = vrot.lane.b32.xlu1 %v822_v59, %s5270_s9  ;;  %v2517_v54 = vpop.permute.xlu0 %2516  ;;  %v3768_v27 = vpop.f32.mrf.mxu0  ;;  %v8388_v59 = vld [vmem:[#allocation35_spill] sm:$0xff] }
 0x3c8   :  { %v3769_v45 = vadd.f32 %v7077_v43, %v3768_v27  ;;  %2284 = vrot.lane.b32.xlu0 %v696_v9, %s5271_s13  ;;  %v4016_v48 = vmax.f32 %v3774_v7, 0.0  ;;  %v3314_v36 = vsel %vm3273_vm8, %v3249_v17, %v2517_v54  ;;  %v2926_v4 = vsel %vm20_vm0, %v5240_v39, %v8388_v59  ;;  %v5241_v7 = vld [vmem:[#allocation2 + $0x230] sm:$0xff]  ;;  %v8391_v54 = vld [vmem:[#allocation36_spill] sm:$0xff] }
 0x3c9   :  { %v2263_v37 = vpop.permute.xlu1 %2262  ;;  %v2991_v14 = vsel %vm2948_vm3, %v2926_v4, %v8389_v51  ;;  %v2927_v27 = vsel %vm20_vm0, %v5241_v7, %v8391_v54  ;;  %v5243_v4 = vld [vmem:[#allocation2 + $0x248] sm:$0xff] }
 0x3ca   :  { %v4015_v3 = vmax.f32 %v3769_v45, 0.0  ;;  %v3250_v63 = vsel %vm3208_vm7, %v3185_v34, %v2263_v37  ;;  %v2992_v35 = vsel %vm2948_vm3, %v2927_v27, %v8392_v30  ;;  %v763_v45 = vld [vmem:[#allocation2 + $0x2f1] sm:$0xff]  ;;  %v700_v34 = vld [vmem:[#allocation2 + $0x300] sm:$0xff] }
 0x3cb   :  { %2030 = vrot.lane.b32.xlu1 %v823_v57, %s5270_s9  ;;  %v2519_v8 = vpop.permute.xlu0 %2518  ;;  %v8390_v57 = vld [vmem:[#allocation145_spill] sm:$0xff] }
 0x3cc   :  { %5126 = vmatprep.mubr.msk.f32.mxu1 %vm3338_vm9, %v4015_v3  ;;  %2540 = vrot.lane.b32.xlu0 %v760_v55, %s5272_s14  ;;  %v3315_v16 = vsel %vm3273_vm8, %v3250_v63, %v2519_v8  ;;  %v3056_v6 = vsel %vm3013_vm4, %v2991_v14, %v8390_v57  ;;  %v826_v3 = vld [vmem:[#allocation2 + $0x2ea] sm:$0xff]  ;;  %v8395_v63 = vld [vmem:[#allocation91_spill] sm:$0xff] }
 0x3cd   :  { %v1753_v0 = vpop.permute.xlu1 %1752  ;;  %5127 = vmatmul.mubr.msk.f32.gmra.mxu1 %vm3338_vm9, %v4016_v48  ;;  %v8399_v57 = vld [vmem:[#allocation148_spill] sm:$0xff] }
 0x3ce   :  { %v3121_v25 = vsel %vm3078_vm5, %v3056_v6, %v1753_v0  ;;  %v8393_v0 = vld [vmem:[#allocation146_spill] sm:$0xff] }
 0x3cf   :  { %2286 = vrot.lane.b32.xlu1 %v697_v52, %s5271_s13  ;;  %v1755_v31 = vpop.permute.xlu0 %1754  ;;  %v3057_v20 = vsel %vm3013_vm4, %v2992_v35, %v8393_v0  ;;  %v7482_v35 = vld [vmem:[%s8088_s4] ss:$0 sm:$0xff] }
 0x3d0   :  { %2542 = vrot.lane.b32.xlu0 %v761_v10, %s5272_s14 }
 0x3d1   :  { %v2773_v19 = vpop.permute.xlu1 %2772 }
 0x3d2   :  { %v3379_v38 = vsel %vm3338_vm9, %v3314_v36, %v2773_v19 }
 0x3d3   :  { %1776 = vrot.lane.b32.xlu1 %v760_v55, %s5269_s25  ;;  %5055 = vmatprep.mubr.msk.f32.mxu0 %vm3415_vm10, %v3379_v38  ;;  %v2775_v46 = vpop.permute.xlu0 %2774  ;;  %v3122_v55 = vsel %vm3078_vm5, %v3057_v20, %v1755_v31 }
 0x3d4   :  { %v3380_v21 = vsel %vm3338_vm9, %v3315_v16, %v2775_v46  ;;  %1778 = vrot.lane.b32.xlu0 %v761_v10, %s5269_s25 }
 0x3d5   :  { %v2009_v42 = vpop.permute.xlu1 %2008  ;;  %v5027_v62 = vpop.f32.mrf.mxu0  ;;  %5056 = vmatmul.mubr.msk.f32.gmra.mxu0 %vm3415_vm10, %v3380_v21  ;;  %v701_v21 = vld [vmem:[#allocation2 + $0x308] sm:$0xff] }
 0x3d6   :  { %v3784_v22 = vadd.f32 %v5027_v62, %v7077_v43  ;;  %v3186_v56 = vsel %vm3143_vm6, %v3121_v25, %v2009_v42 }
 0x3d7   :  { %2796 = vrot.lane.b32.xlu1 %v824_v47, %s5273_s1  ;;  %v2265_v61 = vpop.permute.xlu0 %2264  ;;  %v3778_v11 = vpop.f32.mrf.mxu0 }
 0x3d8   :  { %v3779_v44 = vadd.f32 %v7077_v43, %v3778_v11  ;;  %2798 = vrot.lane.b32.xlu0 %v825_v15, %s5273_s1  ;;  %v4018_v1 = vmax.f32 %v3784_v22, 0.0  ;;  %v3251_v40 = vsel %vm3208_vm7, %v3186_v56, %v2265_v61  ;;  %v764_v11 = vld [vmem:[#allocation2 + $0x301] sm:$0xff] }
 0x3d9   :  { %v2011_v60 = vpop.permute.xlu1 %2010  ;;  %v828_v56 = vld [vmem:[#allocation2 + $0x302] sm:$0xff] }
 0x3da   :  { %v4017_v41 = vmax.f32 %v3779_v44, 0.0  ;;  %v3187_v48 = vsel %vm3143_vm6, %v3122_v55, %v2011_v60  ;;  %v8396_v60 = vld [vmem:[#allocation147_spill] sm:$0xff]  ;;  %v829_v55 = vld [vmem:[#allocation2 + $0x30a] sm:$0xff] }
 0x3db   :  { %2032 = vrot.lane.b32.xlu1 %v824_v47, %s5270_s9  ;;  %v2521_v12 = vpop.permute.xlu0 %2520 }
 0x3dc   :  { %5129 = vmatprep.mubr.msk.f32.mxu1 %vm3338_vm9, %v4017_v41  ;;  %2288 = vrot.lane.b32.xlu0 %v698_v49, %s5271_s13  ;;  %v3316_v29 = vsel %vm3273_vm8, %v3251_v40, %v2521_v12  ;;  %v8397_v41 = vld [vmem:[#allocation38_spill] sm:$0xff]  ;;  %v7470_v40 = vld [vmem:[%s8087_s2] ss:$0 sm:$0xff] }
 0x3dd   :  { %v2267_v26 = vpop.permute.xlu1 %2266  ;;  %5130 = vmatmul.mubr.msk.f32.gmra.mxu1 %vm3338_vm9, %v4018_v1  ;;  %v2929_v49 = vsel %vm20_vm0, %v5243_v4, %v8397_v41  ;;  %v8398_v1 = vld [vmem:[#allocation92_spill] sm:$0xff]  ;;  %v830_v4 = vld [vmem:[#allocation2 + $0x31a] sm:$0xff] }
 0x3de   :  { %v3252_v36 = vsel %vm3208_vm7, %v3187_v48, %v2267_v26  ;;  %v2994_v12 = vsel %vm2948_vm3, %v2929_v49, %v8398_v1 }
 0x3df   :  { %2034 = vrot.lane.b32.xlu1 %v825_v15, %s5270_s9  ;;  %v2523_v9 = vpop.permute.xlu0 %2522  ;;  %v3059_v6 = vsel %vm3013_vm4, %v2994_v12, %v8399_v57 }
 0x3e0   :  { %2544 = vrot.lane.b32.xlu0 %v762_v23, %s5272_s14  ;;  %v3317_v19 = vsel %vm3273_vm8, %v3252_v36, %v2523_v9 }
 0x3e1   :  { %v1757_v37 = vpop.permute.xlu1 %1756 }
 0x3e3   :  { %2290 = vrot.lane.b32.xlu1 %v699_v24, %s5271_s13  ;;  %v1759_v18 = vpop.permute.xlu0 %1758  ;;  %v765_v24 = vld [vmem:[#allocation2 + $0x309] sm:$0xff] }
 0x3e4   :  { %2546 = vrot.lane.b32.xlu0 %v763_v45, %s5272_s14 }
 0x3e5   :  { %v2777_v33 = vpop.permute.xlu1 %2776  ;;  %v5030_v8 = vpop.f32.mrf.mxu0 }
 0x3e6   :  { %v3381_v52 = vsel %vm3338_vm9, %v3316_v29, %v2777_v33  ;;  %v3794_v13 = vadd.f32 %v5030_v8, %v7077_v43 }
 0x3e7   :  { %1780 = vrot.lane.b32.xlu1 %v762_v23, %s5269_s25  ;;  %5058 = vmatprep.mubr.msk.f32.mxu0 %vm3415_vm10, %v3381_v52  ;;  %v2779_v50 = vpop.permute.xlu0 %2778  ;;  %v3788_v28 = vpop.f32.mrf.mxu0  ;;  %v3124_v23 = vsel %vm3078_vm5, %v3059_v6, %v1759_v18 }
 0x3e8   :  { %v3382_v38 = vsel %vm3338_vm9, %v3317_v19, %v2779_v50  ;;  %v3789_v2 = vadd.f32 %v7077_v43, %v3788_v28  ;;  %1782 = vrot.lane.b32.xlu0 %v763_v45, %s5269_s25  ;;  %v4020_v32 = vmax.f32 %v3794_v13, 0.0  ;;  %v8394_v43 = vld [vmem:[#allocation37_spill] sm:$0xff]  ;;  %v5245_v19 = vld [vmem:[#allocation2 + $0x258] sm:$0xff]  ;;  %v8400_v13 = vld [vmem:[#allocation39_spill] sm:$0xff] }
 0x3e9   :  { %v2013_v17 = vpop.permute.xlu1 %2012  ;;  %5059 = vmatmul.mubr.msk.f32.gmra.mxu0 %vm3415_vm10, %v3382_v38  ;;  %v2928_v42 = vsel %vm20_vm0, %v5242_v5, %v8394_v43  ;;  %v2930_v50 = vsel %vm20_vm0, %v5245_v19, %v8400_v13  ;;  %v702_v28 = vld [vmem:[#allocation2 + $0x318] sm:$0xff]  ;;  %v8401_v38 = vld [vmem:[#allocation93_spill] sm:$0xff] }
 0x3ea   :  { %v4019_v10 = vmax.f32 %v3789_v2, 0.0  ;;  %v2993_v16 = vsel %vm2948_vm3, %v2928_v42, %v8395_v63  ;;  %v2995_v2 = vsel %vm2948_vm3, %v2930_v50, %v8401_v38  ;;  %v766_v43 = vld [vmem:[#allocation2 + $0x319] sm:$0xff]  ;;  %v768_v13 = vld [vmem:[#allocation2 + $0x331] sm:$0xff] }
 0x3eb   :  { %2800 = vrot.lane.b32.xlu1 %v826_v3, %s5273_s1  ;;  %v2269_v31 = vpop.permute.xlu0 %2268  ;;  %v3058_v62 = vsel %vm3013_vm4, %v2993_v16, %v8396_v60 }
 0x3ec   :  { %5132 = vmatprep.mubr.msk.f32.mxu1 %vm3338_vm9, %v4019_v10  ;;  %2802 = vrot.lane.b32.xlu0 %v827_v58, %s5273_s1  ;;  %v3123_v22 = vsel %vm3078_vm5, %v3058_v62, %v1757_v37  ;;  %v703_v10 = vld [vmem:[#allocation2 + $0x320] sm:$0xff] }
 0x3ed   :  { %v2015_v53 = vpop.permute.xlu1 %2014  ;;  %5133 = vmatmul.mubr.msk.f32.gmra.mxu1 %vm3338_vm9, %v4020_v32  ;;  %v3188_v61 = vsel %vm3143_vm6, %v3123_v22, %v2013_v17  ;;  %v8404_v22 = vld [vmem:[#allocation94_spill] sm:$0xff] }
 0x3ee   :  { %v3253_v44 = vsel %vm3208_vm7, %v3188_v61, %v2269_v31  ;;  %v3189_v7 = vsel %vm3143_vm6, %v3124_v23, %v2015_v53 }
 0x3ef   :  { %2036 = vrot.lane.b32.xlu1 %v826_v3, %s5270_s9  ;;  %v2525_v46 = vpop.permute.xlu0 %2524 }
 0x3f0   :  { %2292 = vrot.lane.b32.xlu0 %v700_v34, %s5271_s13  ;;  %v3318_v39 = vsel %vm3273_vm8, %v3253_v44, %v2525_v46  ;;  %v5246_v46 = vld [vmem:[#allocation2 + $0x260] sm:$0xff]  ;;  %v8405_v44 = vld [vmem:[#allocation150_spill] sm:$0xff] }
 0x3f1   :  { %v2271_v47 = vpop.permute.xlu1 %2270 }
 0x3f2   :  { %v3254_v54 = vsel %vm3208_vm7, %v3189_v7, %v2271_v47  ;;  %v831_v7 = vld [vmem:[#allocation2 + $0x322] sm:$0xff] }
 0x3f3   :  { %2038 = vrot.lane.b32.xlu1 %v827_v58, %s5270_s9  ;;  %v2527_v26 = vpop.permute.xlu0 %2526  ;;  %v8402_v58 = vld [vmem:[#allocation149_spill] sm:$0xff] }
 0x3f4   :  { %2548 = vrot.lane.b32.xlu0 %v764_v11, %s5272_s14  ;;  %v3319_v52 = vsel %vm3273_vm8, %v3254_v54, %v2527_v26  ;;  %v3060_v32 = vsel %vm3013_vm4, %v2995_v2, %v8402_v58 }
 0x3f5   :  { %v7446_v15 = vpop.permute.xlu1 %1760  ;;  %v5033_v14 = vpop.f32.mrf.mxu0 }
 0x3f6   :  { %v3804_v9 = vadd.f32 %v7470_v40, %v5033_v14  ;;  %v3125_v47 = vsel %vm3078_vm5, %v3060_v32, %v7446_v15 }
 0x3f7   :  { %2294 = vrot.lane.b32.xlu1 %v701_v21, %s5271_s13  ;;  %v7464_v37 = vpop.permute.xlu0 %1762  ;;  %v3798_v25 = vpop.f32.mrf.mxu0  ;;  %v8403_v21 = vld [vmem:[#allocation40_spill] sm:$0xff] }
 0x3f8   :  { %v3799_v29 = vadd.f32 %v7470_v40, %v3798_v25  ;;  %2550 = vrot.lane.b32.xlu0 %v765_v24, %s5272_s14  ;;  %v4022_v45 = vmax.f32 %v3804_v9, 0.0  ;;  %v2931_v60 = vsel %vm20_vm0, %v5246_v46, %v8403_v21 }
 0x3f9   :  { %v2781_v59 = vpop.permute.xlu1 %2780  ;;  %v2996_v61 = vsel %vm2948_vm3, %v2931_v60, %v8404_v22  ;;  %v832_v60 = vld [vmem:[#allocation2 + $0x332] sm:$0xff] }
 0x3fa   :  { %v3383_v51 = vsel %vm3338_vm9, %v3318_v39, %v2781_v59  ;;  %v4021_v27 = vmax.f32 %v3799_v29, 0.0  ;;  %v3061_v26 = vsel %vm3013_vm4, %v2996_v61, %v8405_v44 }
 0x3fb   :  { %1784 = vrot.lane.b32.xlu1 %v764_v11, %s5269_s25  ;;  %5061 = vmatprep.mubr.msk.f32.mxu0 %vm3415_vm10, %v3383_v51  ;;  %v2783_v30 = vpop.permute.xlu0 %2782  ;;  %v767_v11 = vld [vmem:[#allocation2 + $0x321] sm:$0xff]  ;;  %v3126_v41 = vsel %vm3078_vm5, %v3061_v26, %v7464_v37 }
 0x3fc   :  { %v3384_v0 = vsel %vm3338_vm9, %v3319_v52, %v2783_v30  ;;  %5135 = vmatprep.mubr.msk.f32.mxu1 %vm3338_vm9, %v4021_v27  ;;  %1786 = vrot.lane.b32.xlu0 %v765_v24, %s5269_s25  ;;  %v5247_v52 = vld [vmem:[#allocation2 + $0x270] sm:$0xff] }
 0x3fd   :  { %v2017_v33 = vpop.permute.xlu1 %2016  ;;  %5062 = vmatmul.mubr.msk.f32.gmra.mxu0 %vm3415_vm10, %v3384_v0  ;;  %5136 = vmatmul.mubr.msk.f32.gmra.mxu1 %vm3338_vm9, %v4022_v45  ;;  %v8406_v30 = vld [vmem:[#allocation41_spill] sm:$0xff] }
 0x3fe   :  { %v5101_v18 = vpop.f32.mrf.mxu1  ;;  %v3190_v5 = vsel %vm3143_vm6, %v3125_v47, %v2017_v33  ;;  %v2932_v45 = vsel %vm20_vm0, %v5247_v52, %v8406_v30  ;;  %v704_v0 = vld [vmem:[#allocation2 + $0x330] sm:$0xff]  ;;  %v8410_v47 = vld [vmem:[#allocation96_spill] sm:$0xff] }
 0x3ff   :  { %2804 = vrot.lane.b32.xlu1 %v828_v56, %s5273_s1  ;;  %v4336_v3 = vadd.f32 %v5101_v18, %v7482_v35  ;;  %v2273_v17 = vpop.permute.xlu0 %2272 }
 0x400   :  { %v4330_v48 = vpop.f32.mrf.mxu1  ;;  %2806 = vrot.lane.b32.xlu0 %v829_v55, %s5273_s1  ;;  %v3255_v42 = vsel %vm3208_vm7, %v3190_v5, %v2273_v17  ;;  %v8408_v17 = vld [vmem:[#allocation151_spill] sm:$0xff] }
 0x401   :  { %v2019_v20 = vpop.permute.xlu1 %2018  ;;  %4650 = vst [vmem:[%s8089_s5 + $0x8] sm:$0xff] %v4336_v3  ;;  %v4331_v8 = vadd.f32 %v7482_v35, %v4330_v48 }
 0x402   :  { %v3191_v1 = vsel %vm3143_vm6, %v3126_v41, %v2019_v20  ;;  %v8407_v20 = vld [vmem:[#allocation95_spill] sm:$0xff] }
 0x403   :  { %2040 = vrot.lane.b32.xlu1 %v828_v56, %s5270_s9  ;;  %4649 = vst [vmem:[%s8089_s5] sm:$0xff] %v4331_v8  ;;  %v2529_v53 = vpop.permute.xlu0 %2528  ;;  %v2997_v18 = vsel %vm2948_vm3, %v2932_v45, %v8407_v20 }
 0x404   :  { %2296 = vrot.lane.b32.xlu0 %v702_v28, %s5271_s13  ;;  %v3320_v63 = vsel %vm3273_vm8, %v3255_v42, %v2529_v53  ;;  %v3062_v48 = vsel %vm3013_vm4, %v2997_v18, %v8408_v17  ;;  %v5248_v53 = vld [vmem:[#allocation2 + $0x278] sm:$0xff] }
 0x405   :  { %v2275_v36 = vpop.permute.xlu1 %2274  ;;  %v769_v42 = vld [vmem:[#allocation2 + $0x339] sm:$0xff] }
 0x406   :  { %v3256_v24 = vsel %vm3208_vm7, %v3191_v1, %v2275_v36  ;;  %v833_v1 = vld [vmem:[#allocation2 + $0x33a] sm:$0xff] }
 0x407   :  { %2042 = vrot.lane.b32.xlu1 %v829_v55, %s5270_s9  ;;  %v2531_v34 = vpop.permute.xlu0 %2530  ;;  %v705_v55 = vld [vmem:[#allocation2 + $0x338] sm:$0xff] }
 0x408   :  { %2552 = vrot.lane.b32.xlu0 %v766_v43, %s5272_s14  ;;  %v3321_v25 = vsel %vm3273_vm8, %v3256_v24, %v2531_v34  ;;  %v8411_v34 = vld [vmem:[#allocation152_spill] sm:$0xff] }
 0x409   :  { %v1765_v31 = vpop.permute.xlu1 %1764  ;;  %v5036_v15 = vpop.f32.mrf.mxu0 }
 0x40a   :  { %v3814_v49 = vadd.f32 %v7470_v40, %v5036_v15  ;;  %v3127_v36 = vsel %vm3078_vm5, %v3062_v48, %v1765_v31 }
 0x40b   :  { %2298 = vrot.lane.b32.xlu1 %v703_v10, %s5271_s13  ;;  %v7523_v39 = vpop.permute.xlu0 %1766  ;;  %v3808_v59 = vpop.f32.mrf.mxu0  ;;  %v8409_v10 = vld [vmem:[#allocation42_spill] sm:$0xff] }
 0x40c   :  { %v3809_v51 = vadd.f32 %v7470_v40, %v3808_v59  ;;  %2554 = vrot.lane.b32.xlu0 %v767_v11, %s5272_s14  ;;  %v4024_v23 = vmax.f32 %v3814_v49, 0.0  ;;  %v2933_v58 = vsel %vm20_vm0, %v5248_v53, %v8409_v10  ;;  %v834_v53 = vld [vmem:[#allocation2 + $0x34a] sm:$0xff]  ;;  %v8417_v10 = vld [vmem:[#allocation154_spill] sm:$0xff] }
 0x40d   :  { %v2785_v16 = vpop.permute.xlu1 %2784  ;;  %v2998_v5 = vsel %vm2948_vm3, %v2933_v58, %v8410_v47 }
 0x40e   :  { %v3385_v62 = vsel %vm3338_vm9, %v3320_v63, %v2785_v16  ;;  %v5104_v12 = vpop.f32.mrf.mxu1  ;;  %v4023_v57 = vmax.f32 %v3809_v51, 0.0  ;;  %v3063_v63 = vsel %vm3013_vm4, %v2998_v5, %v8411_v34  ;;  %v835_v5 = vld [vmem:[#allocation2 + $0x352] sm:$0xff] }
 0x40f   :  { %1788 = vrot.lane.b32.xlu1 %v766_v43, %s5269_s25  ;;  %5064 = vmatprep.mubr.msk.f32.mxu0 %vm3415_vm10, %v3385_v62  ;;  %v4346_v6 = vadd.f32 %v5104_v12, %v7482_v35  ;;  %v2787_v37 = vpop.permute.xlu0 %2786  ;;  %v3128_v62 = vsel %vm3078_vm5, %v3063_v63, %v7523_v39 }
 0x410   :  { %v4340_v56 = vpop.f32.mrf.mxu1  ;;  %v3386_v9 = vsel %vm3338_vm9, %v3321_v25, %v2787_v37  ;;  %5138 = vmatprep.mubr.msk.f32.mxu1 %vm3338_vm9, %v4023_v57  ;;  %1790 = vrot.lane.b32.xlu0 %v767_v11, %s5269_s25  ;;  %v5249_v57 = vld [vmem:[#allocation2 + $0x288] sm:$0xff] }
 0x411   :  { %v2021_v14 = vpop.permute.xlu1 %2020  ;;  %4652 = vst [vmem:[%s8089_s5 + $0x18] sm:$0xff] %v4346_v6  ;;  %v4341_v29 = vadd.f32 %v7482_v35, %v4340_v56  ;;  %5065 = vmatmul.mubr.msk.f32.gmra.mxu0 %vm3415_vm10, %v3386_v9  ;;  %5139 = vmatmul.mubr.msk.f32.gmra.mxu1 %vm3338_vm9, %v4024_v23  ;;  %v8412_v6 = vld [vmem:[#allocation43_spill] sm:$0xff]  ;;  %v706_v37 = vld [vmem:[#allocation2 + $0x348] sm:$0xff]  ;;  %v8413_v56 = vld [vmem:[#allocation97_spill] sm:$0xff] }
 0x412   :  { %v3192_v19 = vsel %vm3143_vm6, %v3127_v36, %v2021_v14  ;;  %v2934_v25 = vsel %vm20_vm0, %v5249_v57, %v8412_v6  ;;  %v5250_v36 = vld [vmem:[#allocation2 + $0x290] sm:$0xff] }
 0x413   :  { %2808 = vrot.lane.b32.xlu1 %v830_v4, %s5273_s1  ;;  %4651 = vst [vmem:[%s8089_s5 + $0x10] sm:$0xff] %v4341_v29  ;;  %v2277_v54 = vpop.permute.xlu0 %2276  ;;  %v2999_v23 = vsel %vm2948_vm3, %v2934_v25, %v8413_v56  ;;  %v707_v29 = vld [vmem:[#allocation2 + $0x350] sm:$0xff] }
 0x414   :  { %2810 = vrot.lane.b32.xlu0 %v831_v7, %s5273_s1  ;;  %v3257_v50 = vsel %vm3208_vm7, %v3192_v19, %v2277_v54  ;;  %v8415_v19 = vld [vmem:[#allocation44_spill] sm:$0xff] }
 0x415   :  { %v2023_v33 = vpop.permute.xlu1 %2022 }
 0x416   :  { %v3193_v44 = vsel %vm3143_vm6, %v3128_v62, %v2023_v33  ;;  %v8414_v33 = vld [vmem:[#allocation153_spill] sm:$0xff] }
 0x417   :  { %2044 = vrot.lane.b32.xlu1 %v830_v4, %s5270_s9  ;;  %v2533_v3 = vpop.permute.xlu0 %2532 }
 0x418   :  { %2300 = vrot.lane.b32.xlu0 %v704_v0, %s5271_s13  ;;  %v3322_v38 = vsel %vm3273_vm8, %v3257_v50, %v2533_v3  ;;  %v770_v0 = vld [vmem:[#allocation2 + $0x349] sm:$0xff] }
 0x419   :  { %v2279_v27 = vpop.permute.xlu1 %2278 }
 0x41a   :  { %v3258_v59 = vsel %vm3208_vm7, %v3193_v44, %v2279_v27 }
 0x41b   :  { %2046 = vrot.lane.b32.xlu1 %v831_v7, %s5270_s9  ;;  %v2535_v28 = vpop.permute.xlu0 %2534  ;;  %v3064_v7 = vsel %vm3013_vm4, %v2999_v23, %v8414_v33  ;;  %v8421_v33 = vld [vmem:[#allocation46_spill] sm:$0xff] }
 0x41c   :  { %2556 = vrot.lane.b32.xlu0 %v768_v13, %s5272_s14  ;;  %v3323_v39 = vsel %vm3273_vm8, %v3258_v59, %v2535_v28  ;;  %v8418_v59 = vld [vmem:[#allocation45_spill] sm:$0xff] }
 0x41d   :  { %v1769_v8 = vpop.permute.xlu1 %1768  ;;  %v5039_v31 = vpop.f32.mrf.mxu0 }
 0x41e   :  { %v5107_v43 = vpop.f32.mrf.mxu1  ;;  %v3824_v15 = vadd.f32 %v7470_v40, %v5039_v31  ;;  %v3129_v27 = vsel %vm3078_vm5, %v3064_v7, %v1769_v8 }
 0x41f   :  { %2302 = vrot.lane.b32.xlu1 %v705_v55, %s5271_s13  ;;  %v4356_v16 = vadd.f32 %v5107_v43, %v7482_v35  ;;  %v7573_v46 = vpop.permute.xlu0 %1770  ;;  %v3818_v21 = vpop.f32.mrf.mxu0  ;;  %v771_v55 = vld [vmem:[#allocation2 + $0x351] sm:$0xff] }
 0x420   :  { %v3819_v22 = vadd.f32 %v7470_v40, %v3818_v21  ;;  %v4350_v61 = vpop.f32.mrf.mxu1  ;;  %2558 = vrot.lane.b32.xlu0 %v769_v42, %s5272_s14  ;;  %v4026_v49 = vmax.f32 %v3824_v15, 0.0 }
 0x421   :  { %v2789_v2 = vpop.permute.xlu1 %2788  ;;  %4654 = vst [vmem:[%s8089_s5 + $0x28] sm:$0xff] %v4356_v16  ;;  %v4351_v26 = vadd.f32 %v7482_v35, %v4350_v61 }
 0x422   :  { %v3387_v32 = vsel %vm3338_vm9, %v3322_v38, %v2789_v2  ;;  %v4025_v4 = vmax.f32 %v3819_v22, 0.0  ;;  %v8416_v38 = vld [vmem:[#allocation98_spill] sm:$0xff] }
 0x423   :  { %1792 = vrot.lane.b32.xlu1 %v768_v13, %s5269_s25  ;;  %5067 = vmatprep.mubr.msk.f32.mxu0 %vm3415_vm10, %v3387_v32  ;;  %4653 = vst [vmem:[%s8089_s5 + $0x20] sm:$0xff] %v4351_v26  ;;  %v2791_v41 = vpop.permute.xlu0 %2790  ;;  %v2935_v13 = vsel %vm20_vm0, %v5250_v36, %v8415_v19  ;;  %v5251_v26 = vld [vmem:[#allocation2 + $0x2a0] sm:$0xff] }
 0x424   :  { %v3388_v51 = vsel %vm3338_vm9, %v3323_v39, %v2791_v41  ;;  %5141 = vmatprep.mubr.msk.f32.mxu1 %vm3338_vm9, %v4025_v4  ;;  %1794 = vrot.lane.b32.xlu0 %v769_v42, %s5269_s25  ;;  %v3000_v2 = vsel %vm2948_vm3, %v2935_v13, %v8416_v38  ;;  %v2936_v4 = vsel %vm20_vm0, %v5251_v26, %v8418_v59  ;;  %v8419_v41 = vld [vmem:[#allocation99_spill] sm:$0xff]  ;;  %v8427_v59 = vld [vmem:[#allocation48_spill] sm:$0xff] }
 0x425   :  { %v2025_v11 = vpop.permute.xlu1 %2024  ;;  %5068 = vmatmul.mubr.msk.f32.gmra.mxu0 %vm3415_vm10, %v3388_v51  ;;  %5142 = vmatmul.mubr.msk.f32.gmra.mxu1 %vm3338_vm9, %v4026_v49  ;;  %v3065_v58 = vsel %vm3013_vm4, %v3000_v2, %v8417_v10  ;;  %v3001_v49 = vsel %vm2948_vm3, %v2936_v4, %v8419_v41  ;;  %v5254_v26 = vld [vmem:[#allocation2 + $0x2c0] sm:$0xff] }
 0x426   :  { %v3194_v30 = vsel %vm3143_vm6, %v3129_v27, %v2025_v11  ;;  %v3130_v43 = vsel %vm3078_vm5, %v3065_v58, %v7573_v46  ;;  %v2939_v4 = vsel %vm20_vm0, %v5254_v26, %v8427_v59 }
 0x427   :  { %2812 = vrot.lane.b32.xlu1 %v832_v60, %s5273_s1  ;;  %v2281_v12 = vpop.permute.xlu0 %2280 }
 0x428   :  { %2814 = vrot.lane.b32.xlu0 %v833_v1, %s5273_s1  ;;  %v3259_v20 = vsel %vm3208_vm7, %v3194_v30, %v2281_v12 }
 0x429   :  { %v2027_v14 = vpop.permute.xlu1 %2026 }
 0x42a   :  { %v3195_v63 = vsel %vm3143_vm6, %v3130_v43, %v2027_v14  ;;  %v8424_v43 = vld [vmem:[#allocation47_spill] sm:$0xff] }
 0x42b   :  { %2048 = vrot.lane.b32.xlu1 %v832_v60, %s5270_s9  ;;  %v2537_v9 = vpop.permute.xlu0 %2536 }
 0x42c   :  { %2304 = vrot.lane.b32.xlu0 %v706_v37, %s5271_s13  ;;  %v3324_v17 = vsel %vm3273_vm8, %v3259_v20, %v2537_v9 }
 0x42d   :  { %v2283_v24 = vpop.permute.xlu1 %2282 }
 0x42e   :  { %v5110_v52 = vpop.f32.mrf.mxu1  ;;  %v3260_v16 = vsel %vm3208_vm7, %v3195_v63, %v2283_v24 }
 0x42f   :  { %2050 = vrot.lane.b32.xlu1 %v833_v1, %s5270_s9  ;;  %v4366_v45 = vadd.f32 %v5110_v52, %v7482_v35  ;;  %v2539_v18 = vpop.permute.xlu0 %2538  ;;  %v8420_v1 = vld [vmem:[#allocation155_spill] sm:$0xff] }
 0x430   :  { %v4360_v3 = vpop.f32.mrf.mxu1  ;;  %2560 = vrot.lane.b32.xlu0 %v770_v0, %s5272_s14  ;;  %v3325_v60 = vsel %vm3273_vm8, %v3260_v16, %v2539_v18  ;;  %v3066_v12 = vsel %vm3013_vm4, %v3001_v49, %v8420_v1  ;;  %v8428_v49 = vld [vmem:[#allocation102_spill] sm:$0xff] }
 0x431   :  { %v1773_v54 = vpop.permute.xlu1 %1772  ;;  %4656 = vst [vmem:[%s8089_s5 + $0x38] sm:$0xff] %v4366_v45  ;;  %v4361_v48 = vadd.f32 %v7482_v35, %v4360_v3  ;;  %v5042_v28 = vpop.f32.mrf.mxu0  ;;  %v8423_v45 = vld [vmem:[#allocation156_spill] sm:$0xff] }
 0x432   :  { %v3834_v32 = vadd.f32 %v7470_v40, %v5042_v28  ;;  %v3131_v6 = vsel %vm3078_vm5, %v3066_v12, %v1773_v54  ;;  %v8422_v54 = vld [vmem:[#allocation100_spill] sm:$0xff] }
 0x433   :  { %2306 = vrot.lane.b32.xlu1 %v707_v29, %s5271_s13  ;;  %4655 = vst [vmem:[%s8089_s5 + $0x30] sm:$0xff] %v4361_v48  ;;  %v1775_v31 = vpop.permute.xlu0 %1774  ;;  %v3828_v47 = vpop.f32.mrf.mxu0  ;;  %v5252_v29 = vld [vmem:[#allocation2 + $0x2a8] sm:$0xff] }
 0x434   :  { %v3829_v42 = vadd.f32 %v7470_v40, %v3828_v47  ;;  %2816 = vrot.lane.b32.xlu0 %v834_v53, %s5273_s1  ;;  %v4028_v62 = vmax.f32 %v3834_v32, 0.0  ;;  %v2937_v7 = vsel %vm20_vm0, %v5252_v29, %v8421_v33 }
 0x435   :  { %v2793_v8 = vpop.permute.xlu1 %2792  ;;  %v3002_v30 = vsel %vm2948_vm3, %v2937_v7, %v8422_v54 }
 0x436   :  { %v3389_v50 = vsel %vm3338_vm9, %v3324_v17, %v2793_v8  ;;  %v4027_v21 = vmax.f32 %v3829_v42, 0.0  ;;  %v3067_v0 = vsel %vm3013_vm4, %v3002_v30, %v8423_v45 }
 0x437   :  { %2562 = vrot.lane.b32.xlu1 %v771_v55, %s5272_s14  ;;  %5070 = vmatprep.mubr.msk.f32.mxu0 %vm3415_vm10, %v3389_v50  ;;  %v2795_v15 = vpop.permute.xlu0 %2794  ;;  %v3132_v55 = vsel %vm3078_vm5, %v3067_v0, %v1775_v31 }
 0x438   :  { %v3390_v22 = vsel %vm3338_vm9, %v3325_v60, %v2795_v15  ;;  %5144 = vmatprep.mubr.msk.f32.mxu1 %vm3338_vm9, %v4027_v21  ;;  %v8426_v21 = vld [vmem:[#allocation157_spill] sm:$0xff] }
 0x439   :  { %v2029_v34 = vpop.permute.xlu1 %2028  ;;  %5071 = vmatmul.mubr.msk.f32.gmra.mxu0 %vm3415_vm10, %v3390_v22  ;;  %5145 = vmatmul.mubr.msk.f32.gmra.mxu1 %vm3338_vm9, %v4028_v62 }
 0x43a   :  { %v3196_v25 = vsel %vm3143_vm6, %v3131_v6, %v2029_v34  ;;  %v8425_v34 = vld [vmem:[#allocation101_spill] sm:$0xff] }
 0x43b   :  { %2818 = vrot.lane.b32.xlu1 %v835_v5, %s5273_s1  ;;  %v2285_v46 = vpop.permute.xlu0 %2284  ;;  %v5253_v5 = vld [vmem:[#allocation2 + $0x2b8] sm:$0xff] }
 0x43c   :  { %v3261_v37 = vsel %vm3208_vm7, %v3196_v25, %v2285_v46  ;;  %v2938_v42 = vsel %vm20_vm0, %v5253_v5, %v8424_v43 }
 0x43d   :  { %v2031_v61 = vpop.permute.xlu1 %2030  ;;  %v5113_v44 = vpop.f32.mrf.mxu1  ;;  %v3003_v63 = vsel %vm2948_vm3, %v2938_v42, %v8425_v34  ;;  %v8434_v42 = vld [vmem:[#allocation104_spill] sm:$0xff] }
 0x43e   :  { %v4376_v39 = vadd.f32 %v5113_v44, %v7482_v35  ;;  %v3197_v8 = vsel %vm3143_vm6, %v3132_v55, %v2031_v61  ;;  %v3068_v60 = vsel %vm3013_vm4, %v3003_v63, %v8426_v21  ;;  %v8430_v55 = vld [vmem:[#allocation49_spill] sm:$0xff] }
 0x43f   :  { %v2541_v51 = vpop.permute.xlu0 %2540  ;;  %v4370_v14 = vpop.f32.mrf.mxu1 }
 0x440   :  { %4658 = vst [vmem:[%s8089_s5 + $0x48] sm:$0xff] %v4376_v39  ;;  %v4371_v24 = vadd.f32 %v7482_v35, %v4370_v14  ;;  %v3326_v23 = vsel %vm3273_vm8, %v3261_v37, %v2541_v51  ;;  %v3004_v51 = vsel %vm2948_vm3, %v2939_v4, %v8428_v49  ;;  %v8429_v14 = vld [vmem:[#allocation158_spill] sm:$0xff] }
 0x441   :  { %v2287_v11 = vpop.permute.xlu1 %2286  ;;  %v3069_v1 = vsel %vm3013_vm4, %v3004_v51, %v8429_v14 }
 0x442   :  { %4657 = vst [vmem:[%s8089_s5 + $0x40] sm:$0xff] %v4371_v24  ;;  %v3262_v36 = vsel %vm3208_vm7, %v3197_v8, %v2287_v11 }
 0x443   :  { %v2543_v56 = vpop.permute.xlu0 %2542 }
 0x444   :  { %v3327_v13 = vsel %vm3273_vm8, %v3262_v36, %v2543_v56 }
 0x445   :  { %v1777_v57 = vpop.permute.xlu1 %1776  ;;  %v5045_v52 = vpop.f32.mrf.mxu0 }
 0x446   :  { %v3844_v20 = vadd.f32 %v7470_v40, %v5045_v52  ;;  %v3133_v15 = vsel %vm3078_vm5, %v3068_v60, %v1777_v57 }
 0x447   :  { %v1779_v18 = vpop.permute.xlu0 %1778  ;;  %v3838_v3 = vpop.f32.mrf.mxu0 }
 0x448   :  { %v3839_v17 = vadd.f32 %v7470_v40, %v3838_v3  ;;  %v4030_v50 = vmax.f32 %v3844_v20, 0.0  ;;  %v3134_v6 = vsel %vm3078_vm5, %v3069_v1, %v1779_v18  ;;  %v5255_v3 = vld [vmem:[#allocation2 + $0x2d0] sm:$0xff] }
 0x449   :  { %v2797_v9 = vpop.permute.xlu1 %2796 }
 0x44a   :  { %v3391_v27 = vsel %vm3338_vm9, %v3326_v23, %v2797_v9  ;;  %v4029_v19 = vmax.f32 %v3839_v17, 0.0  ;;  %v2940_v17 = vsel %vm20_vm0, %v5255_v3, %v8430_v55  ;;  %v5258_v55 = vld [vmem:[#allocation2 + $0x2f0] sm:$0xff] }
 0x44b   :  { %5073 = vmatprep.mubr.msk.f32.mxu0 %vm3415_vm10, %v3391_v27  ;;  %v2799_v28 = vpop.permute.xlu0 %2798 }
 0x44c   :  { %v3392_v38 = vsel %vm3338_vm9, %v3327_v13, %v2799_v28  ;;  %5147 = vmatprep.mubr.msk.f32.mxu1 %vm3338_vm9, %v4029_v19  ;;  %v8432_v19 = vld [vmem:[#allocation159_spill] sm:$0xff] }
 0x44d   :  { %v2033_v48 = vpop.permute.xlu1 %2032  ;;  %5074 = vmatmul.mubr.msk.f32.gmra.mxu0 %vm3415_vm10, %v3392_v38  ;;  %v5116_v53 = vpop.f32.mrf.mxu1  ;;  %5148 = vmatmul.mubr.msk.f32.gmra.mxu1 %vm3338_vm9, %v4030_v50 }
 0x44e   :  { %v4386_v10 = vadd.f32 %v5116_v53, %v7482_v35  ;;  %v3198_v22 = vsel %vm3143_vm6, %v3133_v15, %v2033_v48  ;;  %v8431_v48 = vld [vmem:[#allocation103_spill] sm:$0xff] }
 0x44f   :  { %v2289_v58 = vpop.permute.xlu0 %2288  ;;  %v4380_v32 = vpop.f32.mrf.mxu1  ;;  %v3005_v8 = vsel %vm2948_vm3, %v2940_v17, %v8431_v48  ;;  %v8439_v17 = vld [vmem:[#allocation52_spill] sm:$0xff] }
 0x450   :  { %4660 = vst [vmem:[%s8089_s5 + $0x58] sm:$0xff] %v4386_v10  ;;  %v4381_v31 = vadd.f32 %v7482_v35, %v4380_v32  ;;  %v3263_v61 = vsel %vm3208_vm7, %v3198_v22, %v2289_v58  ;;  %v3070_v13 = vsel %vm3013_vm4, %v3005_v8, %v8432_v19  ;;  %v5256_v32 = vld [vmem:[#allocation2 + $0x2d8] sm:$0xff]  ;;  %v2943_v48 = vsel %vm20_vm0, %v5258_v55, %v8439_v17 }
 0x451   :  { %v2035_v2 = vpop.permute.xlu1 %2034  ;;  %v8440_v19 = vld [vmem:[#allocation106_spill] sm:$0xff] }
 0x452   :  { %4659 = vst [vmem:[%s8089_s5 + $0x50] sm:$0xff] %v4381_v31  ;;  %v3199_v56 = vsel %vm3143_vm6, %v3134_v6, %v2035_v2  ;;  %v8433_v31 = vld [vmem:[#allocation50_spill] sm:$0xff]  ;;  %v8436_v6 = vld [vmem:[#allocation51_spill] sm:$0xff] }
 0x453   :  { %v2545_v16 = vpop.permute.xlu0 %2544 }
 0x454   :  { %v3328_v11 = vsel %vm3273_vm8, %v3263_v61, %v2545_v16  ;;  %v8435_v16 = vld [vmem:[#allocation160_spill] sm:$0xff] }
 0x455   :  { %v2291_v47 = vpop.permute.xlu1 %2290 }
 0x456   :  { %v3264_v9 = vsel %vm3208_vm7, %v3199_v56, %v2291_v47  ;;  %v2941_v47 = vsel %vm20_vm0, %v5256_v32, %v8433_v31 }
 0x457   :  { %v2547_v46 = vpop.permute.xlu0 %2546  ;;  %v3006_v34 = vsel %vm2948_vm3, %v2941_v47, %v8434_v42 }
 0x458   :  { %v3329_v7 = vsel %vm3273_vm8, %v3264_v9, %v2547_v46  ;;  %v3071_v21 = vsel %vm3013_vm4, %v3006_v34, %v8435_v16  ;;  %v8438_v9 = vld [vmem:[#allocation161_spill] sm:$0xff] }
 0x459   :  { %v1781_v62 = vpop.permute.xlu1 %1780  ;;  %v5048_v41 = vpop.f32.mrf.mxu0 }
 0x45a   :  { %v3854_v12 = vadd.f32 %v7470_v40, %v5048_v41  ;;  %v3135_v28 = vsel %vm3078_vm5, %v3070_v13, %v1781_v62  ;;  %v3008_v13 = vsel %vm2948_vm3, %v2943_v48, %v8440_v19 }
 0x45b   :  { %v1783_v24 = vpop.permute.xlu0 %1782  ;;  %v3848_v57 = vpop.f32.mrf.mxu0 }
 0x45c   :  { %v3849_v25 = vadd.f32 %v7470_v40, %v3848_v57  ;;  %v4032_v27 = vmax.f32 %v3854_v12, 0.0  ;;  %v3136_v61 = vsel %vm3078_vm5, %v3071_v21, %v1783_v24  ;;  %v5257_v57 = vld [vmem:[#allocation2 + $0x2e8] sm:$0xff] }
 0x45d   :  { %v2801_v44 = vpop.permute.xlu1 %2800  ;;  %v5119_v23 = vpop.f32.mrf.mxu1 }
 0x45e   :  { %v3393_v39 = vsel %vm3338_vm9, %v3328_v11, %v2801_v44  ;;  %v4031_v29 = vmax.f32 %v3849_v25, 0.0  ;;  %v4396_v33 = vadd.f32 %v5119_v23, %v7482_v35  ;;  %v2942_v25 = vsel %vm20_vm0, %v5257_v57, %v8436_v6  ;;  %v5260_v6 = vld [vmem:[#allocation2 + $0x308] sm:$0xff] }
 0x45f   :  { %5076 = vmatprep.mubr.msk.f32.mxu0 %vm3415_vm10, %v3393_v39  ;;  %v2803_v52 = vpop.permute.xlu0 %2802  ;;  %v4390_v54 = vpop.f32.mrf.mxu1 }
 0x460   :  { %4662 = vst [vmem:[%s8089_s5 + $0x68] sm:$0xff] %v4396_v33  ;;  %v3394_v30 = vsel %vm3338_vm9, %v3329_v7, %v2803_v52  ;;  %v4391_v45 = vadd.f32 %v7482_v35, %v4390_v54  ;;  %5150 = vmatprep.mubr.msk.f32.mxu1 %vm3338_vm9, %v4031_v29 }
 0x461   :  { %v2037_v37 = vpop.permute.xlu1 %2036  ;;  %5077 = vmatmul.mubr.msk.f32.gmra.mxu0 %vm3415_vm10, %v3394_v30  ;;  %5151 = vmatmul.mubr.msk.f32.gmra.mxu1 %vm3338_vm9, %v4032_v27 }
 0x462   :  { %4661 = vst [vmem:[%s8089_s5 + $0x60] sm:$0xff] %v4391_v45  ;;  %v3200_v38 = vsel %vm3143_vm6, %v3135_v28, %v2037_v37  ;;  %v8437_v37 = vld [vmem:[#allocation105_spill] sm:$0xff] }
 0x463   :  { %v2293_v20 = vpop.permute.xlu0 %2292  ;;  %v3007_v56 = vsel %vm2948_vm3, %v2942_v25, %v8437_v37  ;;  %v8445_v25 = vld [vmem:[#allocation54_spill] sm:$0xff] }
 0x464   :  { %v3265_v2 = vsel %vm3208_vm7, %v3200_v38, %v2293_v20  ;;  %v3072_v29 = vsel %vm3013_vm4, %v3007_v56, %v8438_v9  ;;  %v2945_v37 = vsel %vm20_vm0, %v5260_v6, %v8445_v25  ;;  %v8446_v9 = vld [vmem:[#allocation108_spill] sm:$0xff] }
 0x465   :  { %v2039_v0 = vpop.permute.xlu1 %2038 }
 0x466   :  { %v3201_v26 = vsel %vm3143_vm6, %v3136_v61, %v2039_v0 }
 0x467   :  { %v2549_v36 = vpop.permute.xlu0 %2548 }
 0x468   :  { %v3330_v10 = vsel %vm3273_vm8, %v3265_v2, %v2549_v36 }
 0x469   :  { %v2295_v18 = vpop.permute.xlu1 %2294 }
 0x46a   :  { %v3266_v4 = vsel %vm3208_vm7, %v3201_v26, %v2295_v18 }
 0x46b   :  { %v2551_v53 = vpop.permute.xlu0 %2550 }
 0x46c   :  { %v3331_v41 = vsel %vm3273_vm8, %v3266_v4, %v2551_v53  ;;  %v8444_v4 = vld [vmem:[#allocation163_spill] sm:$0xff] }
 0x46d   :  { %v1785_v50 = vpop.permute.xlu1 %1784  ;;  %v5051_v43 = vpop.f32.mrf.mxu0 }
 0x46e   :  { %v5122_v63 = vpop.f32.mrf.mxu1  ;;  %v3864_v60 = vadd.f32 %v7470_v40, %v5051_v43  ;;  %v3137_v7 = vsel %vm3078_vm5, %v3072_v29, %v1785_v50  ;;  %v8441_v50 = vld [vmem:[#allocation162_spill] sm:$0xff]  ;;  %v3010_v29 = vsel %vm2948_vm3, %v2945_v37, %v8446_v9 }
 0x46f   :  { %v4406_v62 = vadd.f32 %v5122_v63, %v7482_v35  ;;  %v1787_v15 = vpop.permute.xlu0 %1786  ;;  %v3858_v22 = vpop.f32.mrf.mxu0  ;;  %v3073_v28 = vsel %vm3013_vm4, %v3008_v13, %v8441_v50 }
 0x470   :  { %v3859_v46 = vadd.f32 %v7470_v40, %v3858_v22  ;;  %v4400_v11 = vpop.f32.mrf.mxu1  ;;  %v4034_v49 = vmax.f32 %v3864_v60, 0.0  ;;  %v8442_v22 = vld [vmem:[#allocation53_spill] sm:$0xff] }
 0x471   :  { %v2805_v58 = vpop.permute.xlu1 %2804  ;;  %4664 = vst [vmem:[%s8089_s5 + $0x78] sm:$0xff] %v4406_v62  ;;  %v4401_v59 = vadd.f32 %v7482_v35, %v4400_v11  ;;  %v8443_v11 = vld [vmem:[#allocation107_spill] sm:$0xff] }
 0x472   :  { %v3395_v5 = vsel %vm3338_vm9, %v3330_v10, %v2805_v58  ;;  %v4033_v39 = vmax.f32 %v3859_v46, 0.0  ;;  %v3138_v10 = vsel %vm3078_vm5, %v3073_v28, %v1787_v15  ;;  %v5259_v15 = vld [vmem:[#allocation2 + $0x300] sm:$0xff] }
 0x473   :  { %5079 = vmatprep.mubr.msk.f32.mxu0 %vm3415_vm10, %v3395_v5  ;;  %4663 = vst [vmem:[%s8089_s5 + $0x70] sm:$0xff] %v4401_v59  ;;  %v2807_v51 = vpop.permute.xlu0 %2806  ;;  %v2944_v61 = vsel %vm20_vm0, %v5259_v15, %v8442_v22 }
 0x474   :  { %v3396_v14 = vsel %vm3338_vm9, %v3331_v41, %v2807_v51  ;;  %5153 = vmatprep.mubr.msk.f32.mxu1 %vm3338_vm9, %v4033_v39 }
 0x475   :  { %v2041_v44 = vpop.permute.xlu1 %2040  ;;  %5080 = vmatmul.mubr.msk.f32.gmra.mxu0 %vm3415_vm10, %v3396_v14  ;;  %5154 = vmatmul.mubr.msk.f32.gmra.mxu1 %vm3338_vm9, %v4034_v49 }
 0x476   :  { %v3202_v52 = vsel %vm3143_vm6, %v3137_v7, %v2041_v44  ;;  %v3009_v44 = vsel %vm2948_vm3, %v2944_v61, %v8443_v11 }
 0x477   :  { %v2297_v12 = vpop.permute.xlu0 %2296  ;;  %v3074_v39 = vsel %vm3013_vm4, %v3009_v44, %v8444_v4 }
 0x478   :  { %v3267_v30 = vsel %vm3208_vm7, %v3202_v52, %v2297_v12 }
 0x479   :  { %v2043_v1 = vpop.permute.xlu1 %2042 }
 0x47a   :  { %v3203_v31 = vsel %vm3143_vm6, %v3138_v10, %v2043_v1  ;;  %v8448_v10 = vld [vmem:[#allocation55_spill] sm:$0xff] }
 0x47b   :  { %v2553_v23 = vpop.permute.xlu0 %2552 }
 0x47c   :  { %v3332_v20 = vsel %vm3273_vm8, %v3267_v30, %v2553_v23 }
 0x47d   :  { %v2299_v24 = vpop.permute.xlu1 %2298  ;;  %v5125_v27 = vpop.f32.mrf.mxu1 }
 0x47e   :  { %v4416_v54 = vadd.f32 %v5125_v27, %v7482_v35  ;;  %v3268_v47 = vsel %vm3208_vm7, %v3203_v31, %v2299_v24  ;;  %v8449_v31 = vld [vmem:[#allocation56_spill] sm:$0xff] }
 0x47f   :  { %v2555_v45 = vpop.permute.xlu0 %2554  ;;  %v4410_v0 = vpop.f32.mrf.mxu1 }
 0x480   :  { %4666 = vst [vmem:[%s8089_s5 + $0x88] sm:$0xff] %v4416_v54  ;;  %v4411_v18 = vadd.f32 %v7482_v35, %v4410_v0  ;;  %v3333_v43 = vsel %vm3273_vm8, %v3268_v47, %v2555_v45 }
 0x481   :  { %v1789_v33 = vpop.permute.xlu1 %1788  ;;  %v5054_v36 = vpop.f32.mrf.mxu0 }
 0x482   :  { %4665 = vst [vmem:[%s8089_s5 + $0x80] sm:$0xff] %v4411_v18  ;;  %v3874_v38 = vadd.f32 %v7470_v40, %v5054_v36  ;;  %v3139_v51 = vsel %vm3078_vm5, %v3074_v39, %v1789_v33  ;;  %v8447_v33 = vld [vmem:[#allocation164_spill] sm:$0xff] }
 0x483   :  { %v1791_v2 = vpop.permute.xlu0 %1790  ;;  %v3868_v53 = vpop.f32.mrf.mxu0  ;;  %v3075_v7 = vsel %vm3013_vm4, %v3010_v29, %v8447_v33 }
 0x484   :  { %v3869_v58 = vadd.f32 %v7470_v40, %v3868_v53  ;;  %v4036_v42 = vmax.f32 %v3874_v38, 0.0  ;;  %v3140_v30 = vsel %vm3078_vm5, %v3075_v7, %v1791_v2  ;;  %v5261_v53 = vld [vmem:[#allocation2 + $0x318] sm:$0xff] }
 0x485   :  { %v2809_v3 = vpop.permute.xlu1 %2808 }
 0x486   :  { %v3397_v8 = vsel %vm3338_vm9, %v3332_v20, %v2809_v3  ;;  %v4035_v5 = vmax.f32 %v3869_v58, 0.0  ;;  %v2946_v58 = vsel %vm20_vm0, %v5261_v53, %v8448_v10 }
 0x487   :  { %5082 = vmatprep.mubr.msk.f32.mxu0 %vm3415_vm10, %v3397_v8  ;;  %v2811_v34 = vpop.permute.xlu0 %2810 }
 0x488   :  { %v3398_v63 = vsel %vm3338_vm9, %v3333_v43, %v2811_v34  ;;  %5156 = vmatprep.mubr.msk.f32.mxu1 %vm3338_vm9, %v4035_v5  ;;  %v8450_v5 = vld [vmem:[#allocation109_spill] sm:$0xff] }
 0x489   :  { %v2045_v32 = vpop.permute.xlu1 %2044  ;;  %5083 = vmatmul.mubr.msk.f32.gmra.mxu0 %vm3415_vm10, %v3398_v63  ;;  %5157 = vmatmul.mubr.msk.f32.gmra.mxu1 %vm3338_vm9, %v4036_v42  ;;  %v3011_v43 = vsel %vm2948_vm3, %v2946_v58, %v8450_v5  ;;  %v8451_v42 = vld [vmem:[#allocation110_spill] sm:$0xff]  ;;  %v8452_v63 = vld [vmem:[#allocation165_spill] sm:$0xff] }
 0x48a   :  { %v3204_v14 = vsel %vm3143_vm6, %v3139_v51, %v2045_v32  ;;  %v5262_v32 = vld [vmem:[#allocation2 + $0x320] sm:$0xff] }
 0x48b   :  { %v2301_v21 = vpop.permute.xlu0 %2300  ;;  %v2947_v47 = vsel %vm20_vm0, %v5262_v32, %v8449_v31 }
 0x48c   :  { %v3269_v1 = vsel %vm3208_vm7, %v3204_v14, %v2301_v21  ;;  %v3012_v34 = vsel %vm2948_vm3, %v2947_v47, %v8451_v42 }
 0x48d   :  { %v2047_v16 = vpop.permute.xlu1 %2046  ;;  %v5128_v62 = vpop.f32.mrf.mxu1 }
 0x48e   :  { %v4426_v46 = vadd.f32 %v5128_v62, %v7482_v35  ;;  %v3205_v20 = vsel %vm3143_vm6, %v3140_v30, %v2047_v16  ;;  %v3076_v16 = vsel %vm3013_vm4, %v3011_v43, %v8452_v63 }
 0x48f   :  { %v2557_v26 = vpop.permute.xlu0 %2556  ;;  %v4420_v59 = vpop.f32.mrf.mxu1 }
 0x490   :  { %4668 = vst [vmem:[%s8089_s5 + $0x98] sm:$0xff] %v4426_v46  ;;  %v4421_v41 = vadd.f32 %v7482_v35, %v4420_v59  ;;  %v3334_v24 = vsel %vm3273_vm8, %v3269_v1, %v2557_v26 }
 0x491   :  { %v2303_v60 = vpop.permute.xlu1 %2302 }
 0x492   :  { %4667 = vst [vmem:[%s8089_s5 + $0x90] sm:$0xff] %v4421_v41  ;;  %v3270_v18 = vsel %vm3208_vm7, %v3205_v20, %v2303_v60  ;;  %v8453_v60 = vld [vmem:[#allocation166_spill] sm:$0xff] }
 0x493   :  { %v2559_v12 = vpop.permute.xlu0 %2558  ;;  %v3077_v62 = vsel %vm3013_vm4, %v3012_v34, %v8453_v60 }
 0x494   :  { %v3335_v55 = vsel %vm3273_vm8, %v3270_v18, %v2559_v12 }
 0x495   :  { %v1793_v49 = vpop.permute.xlu1 %1792  ;;  %v5057_v23 = vpop.f32.mrf.mxu0 }
 0x496   :  { %v3884_v27 = vadd.f32 %v7470_v40, %v5057_v23  ;;  %v3141_v15 = vsel %vm3078_vm5, %v3076_v16, %v1793_v49 }
 0x497   :  { %v1795_v52 = vpop.permute.xlu0 %1794  ;;  %v3878_v54 = vpop.f32.mrf.mxu0 }
 0x498   :  { %v3879_v45 = vadd.f32 %v7470_v40, %v3878_v54  ;;  %v4038_v17 = vmax.f32 %v3884_v27, 0.0  ;;  %v3142_v61 = vsel %vm3078_vm5, %v3077_v62, %v1795_v52 }
 0x499   :  { %v2813_v57 = vpop.permute.xlu1 %2812 }
 0x49a   :  { %v3399_v56 = vsel %vm3338_vm9, %v3334_v24, %v2813_v57  ;;  %v4037_v3 = vmax.f32 %v3879_v45, 0.0 }
 0x49b   :  { %5085 = vmatprep.mubr.msk.f32.mxu0 %vm3415_vm10, %v3399_v56  ;;  %v2815_v48 = vpop.permute.xlu0 %2814 }
 0x49c   :  { %v3400_v8 = vsel %vm3338_vm9, %v3335_v55, %v2815_v48  ;;  %5159 = vmatprep.mubr.msk.f32.mxu1 %vm3338_vm9, %v4037_v3 }
 0x49d   :  { %v2049_v0 = vpop.permute.xlu1 %2048  ;;  %5086 = vmatmul.mubr.msk.f32.gmra.mxu0 %vm3415_vm10, %v3400_v8  ;;  %v5131_v19 = vpop.f32.mrf.mxu1  ;;  %5160 = vmatmul.mubr.msk.f32.gmra.mxu1 %vm3338_vm9, %v4038_v17 }
 0x49e   :  { %v4436_v13 = vadd.f32 %v5131_v19, %v7482_v35  ;;  %v3206_v46 = vsel %vm3143_vm6, %v3141_v15, %v2049_v0 }
 0x49f   :  { %v2305_v50 = vpop.permute.xlu0 %2304  ;;  %v4430_v28 = vpop.f32.mrf.mxu1 }
 0x4a0   :  { %4670 = vst [vmem:[%s8089_s5 + $0xa8] sm:$0xff] %v4436_v13  ;;  %v4431_v38 = vadd.f32 %v7482_v35, %v4430_v28  ;;  %v3271_v44 = vsel %vm3208_vm7, %v3206_v46, %v2305_v50 }
 0x4a1   :  { %v2051_v36 = vpop.permute.xlu1 %2050 }
 0x4a2   :  { %4669 = vst [vmem:[%s8089_s5 + $0xa0] sm:$0xff] %v4431_v38  ;;  %v3207_v11 = vsel %vm3143_vm6, %v3142_v61, %v2051_v36 }
 0x4a3   :  { %v2561_v21 = vpop.permute.xlu0 %2560 }
 0x4a4   :  { %v3336_v59 = vsel %vm3273_vm8, %v3271_v44, %v2561_v21 }
 0x4a5   :  { %v2307_v2 = vpop.permute.xlu1 %2306 }
 0x4a6   :  { %v3272_v26 = vsel %vm3208_vm7, %v3207_v11, %v2307_v2 }
 0x4a7   :  { %v2817_v4 = vpop.permute.xlu0 %2816 }
 0x4a8   :  { %v3401_v41 = vsel %vm3338_vm9, %v3336_v59, %v2817_v4  ;;  %v7936_v4 = vld [vmem:[%s8088_s4] ss:$0 sm:$0xff] }
 0x4a9   :  { %v2563_v22 = vpop.permute.xlu1 %2562  ;;  %v5060_v14 = vpop.f32.mrf.mxu0  ;;  %5088 = vmatprep.mubr.msk.f32.mxu0 %vm3415_vm10, %v3401_v41 }
 0x4aa   :  { %v3337_v39 = vsel %vm3273_vm8, %v3272_v26, %v2563_v22  ;;  %v3894_v1 = vadd.f32 %v7470_v40, %v5060_v14 }
 0x4ab   :  { %v3888_v12 = vpop.f32.mrf.mxu0 }
 0x4ac   :  { %v3889_v24 = vadd.f32 %v7470_v40, %v3888_v12  ;;  %v4040_v37 = vmax.f32 %v3894_v1, 0.0 }
 0x4ad   :  { %v2819_v51 = vpop.permute.xlu1 %2818  ;;  %v5134_v57 = vpop.f32.mrf.mxu1 }
 0x4ae   :  { %v3402_v49 = vsel %vm3338_vm9, %v3337_v39, %v2819_v51  ;;  %v4039_v6 = vmax.f32 %v3889_v24, 0.0  ;;  %v4446_v25 = vadd.f32 %v5134_v57, %v7482_v35 }
 0x4af   :  { %5089 = vmatmul.mubr.msk.f32.gmra.mxu0 %vm3415_vm10, %v3402_v49  ;;  %v4440_v56 = vpop.f32.mrf.mxu1 }
 0x4b0   :  { %4672 = vst [vmem:[%s8089_s5 + $0xb8] sm:$0xff] %v4446_v25  ;;  %v4441_v23 = vadd.f32 %v7482_v35, %v4440_v56  ;;  %5162 = vmatprep.mubr.msk.f32.mxu1 %vm3338_vm9, %v4039_v6 }
 0x4b1   :  { %5163 = vmatmul.mubr.msk.f32.gmra.mxu1 %vm3338_vm9, %v4040_v37 }
 0x4b2   :  { %4671 = vst [vmem:[%s8089_s5 + $0xb0] sm:$0xff] %v4441_v23 }
 0x4bd   :  { %v5063_v9 = vpop.f32.mrf.mxu0  ;;  %v5137_v29 = vpop.f32.mrf.mxu1 }
 0x4be   :  { %v3904_v33 = vadd.f32 %v7470_v40, %v5063_v9  ;;  %v4456_v7 = vadd.f32 %v5137_v29, %v7482_v35 }
 0x4bf   :  { %v3898_v27 = vpop.f32.mrf.mxu0  ;;  %v4450_v54 = vpop.f32.mrf.mxu1 }
 0x4c0   :  { %v3899_v52 = vadd.f32 %v7470_v40, %v3898_v27  ;;  %4674 = vst [vmem:[%s8089_s5 + $0xc8] sm:$0xff] %v4456_v7  ;;  %v4451_v30 = vadd.f32 %v7482_v35, %v4450_v54  ;;  %v4042_v0 = vmax.f32 %v3904_v33, 0.0 }
 0x4c2   :  { %v4041_v45 = vmax.f32 %v3899_v52, 0.0  ;;  %4673 = vst [vmem:[%s8089_s5 + $0xc0] sm:$0xff] %v4451_v30 }
 0x4c4   :  { %5165 = vmatprep.mubr.msk.f32.mxu1 %vm3338_vm9, %v4041_v45 }
 0x4c5   :  { %5166 = vmatmul.mubr.msk.f32.gmra.mxu1 %vm3338_vm9, %v4042_v0 }
 0x4d1   :  { %v5066_v20 = vpop.f32.mrf.mxu0  ;;  %v5140_v18 = vpop.f32.mrf.mxu1 }
 0x4d2   :  { %v3914_v3 = vadd.f32 %v7470_v40, %v5066_v20  ;;  %v4466_v55 = vadd.f32 %v5140_v18, %v7482_v35 }
 0x4d3   :  { %v3908_v17 = vpop.f32.mrf.mxu0  ;;  %v4460_v8 = vpop.f32.mrf.mxu1 }
 0x4d4   :  { %v3909_v48 = vadd.f32 %v7470_v40, %v3908_v17  ;;  %4676 = vst [vmem:[%s8089_s5 + $0xd8] sm:$0xff] %v4466_v55  ;;  %v4461_v36 = vadd.f32 %v7482_v35, %v4460_v8  ;;  %v4044_v13 = vmax.f32 %v3914_v3, 0.0 }
 0x4d6   :  { %v4043_v19 = vmax.f32 %v3909_v48, 0.0  ;;  %4675 = vst [vmem:[%s8089_s5 + $0xd0] sm:$0xff] %v4461_v36 }
 0x4d8   :  { %5168 = vmatprep.mubr.msk.f32.mxu1 %vm3338_vm9, %v4043_v19 }
 0x4d9   :  { %5169 = vmatmul.mubr.msk.f32.gmra.mxu1 %vm3338_vm9, %v4044_v13 }
 0x4e5   :  { %v5069_v50 = vpop.f32.mrf.mxu0  ;;  %v5143_v28 = vpop.f32.mrf.mxu1 }
 0x4e6   :  { %v3924_v38 = vadd.f32 %v7470_v40, %v5069_v50  ;;  %v4476_v2 = vadd.f32 %v5143_v28, %v7482_v35 }
 0x4e7   :  { %v3918_v53 = vpop.f32.mrf.mxu0  ;;  %v4470_v58 = vpop.f32.mrf.mxu1 }
 0x4e8   :  { %v3919_v10 = vadd.f32 %v7470_v40, %v3918_v53  ;;  %4678 = vst [vmem:[%s8089_s5 + $0xe8] sm:$0xff] %v4476_v2  ;;  %v4471_v32 = vadd.f32 %v7482_v35, %v4470_v58  ;;  %v4046_v47 = vmax.f32 %v3924_v38, 0.0 }
 0x4ea   :  { %v4045_v31 = vmax.f32 %v3919_v10, 0.0  ;;  %4677 = vst [vmem:[%s8089_s5 + $0xe0] sm:$0xff] %v4471_v32 }
 0x4ec   :  { %5171 = vmatprep.mubr.msk.f32.mxu1 %vm3338_vm9, %v4045_v31 }
 0x4ed   :  { %5172 = vmatmul.mubr.msk.f32.gmra.mxu1 %vm3338_vm9, %v4046_v47 }
 0x4f9   :  { %v5072_v5 = vpop.f32.mrf.mxu0  ;;  %v5146_v43 = vpop.f32.mrf.mxu1 }
 0x4fa   :  { %v4486_v42 = vadd.f32 %v5146_v43, %v7482_v35  ;;  %v3934_v34 = vadd.f32 %v7470_v40, %v5072_v5 }
 0x4fb   :  { %v3928_v63 = vpop.f32.mrf.mxu0  ;;  %v4480_v16 = vpop.f32.mrf.mxu1 }
 0x4fc   :  { %4680 = vst [vmem:[%s8089_s5 + $0xf8] sm:$0xff] %v4486_v42  ;;  %v3929_v21 = vadd.f32 %v7470_v40, %v3928_v63  ;;  %v4481_v60 = vadd.f32 %v7482_v35, %v4480_v16  ;;  %v4048_v15 = vmax.f32 %v3934_v34, 0.0  ;;  %v7926_v40 = vld [vmem:[%s8087_s2] ss:$0 sm:$0xff] }
 0x4fe   :  { %v4047_v62 = vmax.f32 %v3929_v21, 0.0  ;;  %4679 = vst [vmem:[%s8089_s5 + $0xf0] sm:$0xff] %v4481_v60 }
 0x500   :  { %5174 = vmatprep.mubr.msk.f32.mxu1 %vm3338_vm9, %v4047_v62 }
 0x501   :  { %5175 = vmatmul.mubr.msk.f32.gmra.mxu1 %vm3338_vm9, %v4048_v15 }
 0x50d   :  { %v5075_v22 = vpop.f32.mrf.mxu0  ;;  %v5149_v61 = vpop.f32.mrf.mxu1 }
 0x50e   :  { %v4496_v46 = vadd.f32 %v5149_v61, %v7482_v35  ;;  %v3944_v11 = vadd.f32 %v7926_v40, %v5075_v22 }
 0x50f   :  { %v3938_v44 = vpop.f32.mrf.mxu0  ;;  %v4490_v26 = vpop.f32.mrf.mxu1 }
 0x510   :  { %4682 = vst [vmem:[%s8089_s5 + $0x108] sm:$0xff] %v4496_v46  ;;  %v3939_v59 = vadd.f32 %v7926_v40, %v3938_v44  ;;  %v4491_v35 = vadd.f32 %v7936_v4, %v4490_v26  ;;  %v4050_v41 = vmax.f32 %v3944_v11, 0.0 }
 0x512   :  { %v4049_v39 = vmax.f32 %v3939_v59, 0.0  ;;  %4681 = vst [vmem:[%s8089_s5 + $0x100] sm:$0xff] %v4491_v35 }
 0x514   :  { %5177 = vmatprep.mubr.msk.f32.mxu1 %vm3338_vm9, %v4049_v39 }
 0x515   :  { %5178 = vmatmul.mubr.msk.f32.gmra.mxu1 %vm3338_vm9, %v4050_v41 }
 0x521   :  { %v5078_v51 = vpop.f32.mrf.mxu0  ;;  %v5152_v49 = vpop.f32.mrf.mxu1 }
 0x522   :  { %v4506_v14 = vadd.f32 %v7936_v4, %v5152_v49  ;;  %v3954_v1 = vadd.f32 %v7926_v40, %v5078_v51 }
 0x523   :  { %v3948_v12 = vpop.f32.mrf.mxu0  ;;  %v4500_v24 = vpop.f32.mrf.mxu1 }
 0x524   :  { %4684 = vst [vmem:[%s8089_s5 + $0x118] sm:$0xff] %v4506_v14  ;;  %v3949_v57 = vadd.f32 %v7926_v40, %v3948_v12  ;;  %v4501_v6 = vadd.f32 %v7936_v4, %v4500_v24  ;;  %v4052_v37 = vmax.f32 %v3954_v1, 0.0 }
 0x526   :  { %v4051_v25 = vmax.f32 %v3949_v57, 0.0  ;;  %4683 = vst [vmem:[%s8089_s5 + $0x110] sm:$0xff] %v4501_v6 }
 0x528   :  { %5180 = vmatprep.mubr.msk.f32.mxu1 %vm3338_vm9, %v4051_v25 }
 0x529   :  { %5181 = vmatmul.mubr.msk.f32.gmra.mxu1 %vm3338_vm9, %v4052_v37 }
 0x535   :  { %v5081_v56 = vpop.f32.mrf.mxu0  ;;  %v5155_v23 = vpop.f32.mrf.mxu1 }
 0x536   :  { %v4516_v9 = vadd.f32 %v7936_v4, %v5155_v23  ;;  %v3964_v29 = vadd.f32 %v7926_v40, %v5081_v56 }
 0x537   :  { %v3958_v33 = vpop.f32.mrf.mxu0  ;;  %v4510_v7 = vpop.f32.mrf.mxu1 }
 0x538   :  { %4686 = vst [vmem:[%s8089_s5 + $0x128] sm:$0xff] %v4516_v9  ;;  %v3959_v27 = vadd.f32 %v7926_v40, %v3958_v33  ;;  %v4511_v52 = vadd.f32 %v7936_v4, %v4510_v7  ;;  %v4054_v30 = vmax.f32 %v3964_v29, 0.0 }
 0x53a   :  { %v4053_v54 = vmax.f32 %v3959_v27, 0.0  ;;  %4685 = vst [vmem:[%s8089_s5 + $0x120] sm:$0xff] %v4511_v52 }
 0x53c   :  { %5183 = vmatprep.mubr.msk.f32.mxu1 %vm3338_vm9, %v4053_v54 }
 0x53d   :  { %5184 = vmatmul.mubr.msk.f32.gmra.mxu1 %vm3338_vm9, %v4054_v30 }
 0x549   :  { %v5084_v45 = vpop.f32.mrf.mxu0  ;;  %v5158_v0 = vpop.f32.mrf.mxu1 }
 0x54a   :  { %v4526_v20 = vadd.f32 %v7936_v4, %v5158_v0  ;;  %v3974_v18 = vadd.f32 %v7926_v40, %v5084_v45 }
 0x54b   :  { %v3968_v3 = vpop.f32.mrf.mxu0  ;;  %v4520_v55 = vpop.f32.mrf.mxu1 }
 0x54c   :  { %4688 = vst [vmem:[%s8089_s5 + $0x138] sm:$0xff] %v4526_v20  ;;  %v3969_v17 = vadd.f32 %v7926_v40, %v3968_v3  ;;  %v4521_v48 = vadd.f32 %v7936_v4, %v4520_v55  ;;  %v4056_v36 = vmax.f32 %v3974_v18, 0.0 }
 0x54e   :  { %v4055_v8 = vmax.f32 %v3969_v17, 0.0  ;;  %4687 = vst [vmem:[%s8089_s5 + $0x130] sm:$0xff] %v4521_v48 }
 0x550   :  { %5186 = vmatprep.mubr.msk.f32.mxu1 %vm3338_vm9, %v4055_v8 }
 0x551   :  { %5187 = vmatmul.mubr.msk.f32.gmra.mxu1 %vm3338_vm9, %v4056_v36 }
 0x55d   :  { %v5087_v19 = vpop.f32.mrf.mxu0  ;;  %v5161_v13 = vpop.f32.mrf.mxu1 }
 0x55e   :  { %v4536_v50 = vadd.f32 %v7936_v4, %v5161_v13  ;;  %v3984_v28 = vadd.f32 %v7926_v40, %v5087_v19 }
 0x55f   :  { %v3978_v38 = vpop.f32.mrf.mxu0  ;;  %v4530_v2 = vpop.f32.mrf.mxu1 }
 0x560   :  { %4690 = vst [vmem:[%s8089_s5 + $0x148] sm:$0xff] %v4536_v50  ;;  %v3979_v53 = vadd.f32 %v7926_v40, %v3978_v38  ;;  %v4531_v10 = vadd.f32 %v7936_v4, %v4530_v2  ;;  %v4058_v32 = vmax.f32 %v3984_v28, 0.0 }
 0x562   :  { %v4057_v58 = vmax.f32 %v3979_v53, 0.0  ;;  %4689 = vst [vmem:[%s8089_s5 + $0x140] sm:$0xff] %v4531_v10 }
 0x564   :  { %5189 = vmatprep.mubr.msk.f32.mxu1 %vm3338_vm9, %v4057_v58 }
 0x565   :  { %5190 = vmatmul.mubr.msk.f32.gmra.mxu1 %vm3338_vm9, %v4058_v32 }
 0x56f   :  { %v5090_v31 = vpop.f32.mrf.mxu0 }
 0x570   :  { %v3994_v47 = vadd.f32 %v7926_v40, %v5090_v31 }
 0x571   :  { %v3988_v5 = vpop.f32.mrf.mxu0  ;;  %v5164_v63 = vpop.f32.mrf.mxu1 }
 0x572   :  { %v3989_v43 = vadd.f32 %v7926_v40, %v3988_v5  ;;  %v4060_v34 = vmax.f32 %v3994_v47, 0.0  ;;  %v4546_v16 = vadd.f32 %v7936_v4, %v5164_v63 }
 0x573   :  { %v4540_v21 = vpop.f32.mrf.mxu1 }
 0x574   :  { %v4059_v42 = vmax.f32 %v3989_v43, 0.0  ;;  %4692 = vst [vmem:[%s8089_s5 + $0x158] sm:$0xff] %v4546_v16  ;;  %v4541_v60 = vadd.f32 %v7936_v4, %v4540_v21 }
 0x576   :  { %5192 = vmatprep.mubr.msk.f32.mxu1 %vm3338_vm9, %v4059_v42  ;;  %4691 = vst [vmem:[%s8089_s5 + $0x150] sm:$0xff] %v4541_v60 }
 0x577   :  { %5193 = vmatmul.mubr.msk.f32.gmra.mxu1 %vm3338_vm9, %v4060_v34 }
 0x585   :  { %v5167_v62 = vpop.f32.mrf.mxu1 }
 0x586   :  { %v4556_v15 = vadd.f32 %v7936_v4, %v5167_v62 }
 0x587   :  { %v4550_v22 = vpop.f32.mrf.mxu1 }
 0x588   :  { %4694 = vst [vmem:[%s8089_s5 + $0x168] sm:$0xff] %v4556_v15  ;;  %v4551_v61 = vadd.f32 %v7936_v4, %v4550_v22 }
 0x58a   :  { %4693 = vst [vmem:[%s8089_s5 + $0x160] sm:$0xff] %v4551_v61 }
 0x599   :  { %v5170_v46 = vpop.f32.mrf.mxu1 }
 0x59a   :  { %v4566_v40 = vadd.f32 %v7936_v4, %v5170_v46 }
 0x59b   :  { %v4560_v11 = vpop.f32.mrf.mxu1 }
 0x59c   :  { %4696 = vst [vmem:[%s8089_s5 + $0x178] sm:$0xff] %v4566_v40  ;;  %v4561_v44 = vadd.f32 %v7936_v4, %v4560_v11 }
 0x59e   :  { %4695 = vst [vmem:[%s8089_s5 + $0x170] sm:$0xff] %v4561_v44 }
 0x5ad   :  { %v5173_v26 = vpop.f32.mrf.mxu1 }
 0x5ae   :  { %v4576_v59 = vadd.f32 %v7936_v4, %v5173_v26 }
 0x5af   :  { %v4570_v35 = vpop.f32.mrf.mxu1 }
 0x5b0   :  { %4698 = vst [vmem:[%s8089_s5 + $0x188] sm:$0xff] %v4576_v59  ;;  %v4571_v39 = vadd.f32 %v7936_v4, %v4570_v35 }
 0x5b2   :  { %4697 = vst [vmem:[%s8089_s5 + $0x180] sm:$0xff] %v4571_v39 }
 0x5c1   :  { %v5176_v41 = vpop.f32.mrf.mxu1 }
 0x5c2   :  { %v4586_v51 = vadd.f32 %v7936_v4, %v5176_v41 }
 0x5c3   :  { %v4580_v49 = vpop.f32.mrf.mxu1 }
 0x5c4   :  { %4700 = vst [vmem:[%s8089_s5 + $0x198] sm:$0xff] %v4586_v51  ;;  %v4581_v14 = vadd.f32 %v7936_v4, %v4580_v49 }
 0x5c6   :  { %4699 = vst [vmem:[%s8089_s5 + $0x190] sm:$0xff] %v4581_v14 }
 0x5d5   :  { %v5179_v1 = vpop.f32.mrf.mxu1 }
 0x5d6   :  { %v4596_v12 = vadd.f32 %v7936_v4, %v5179_v1 }
 0x5d7   :  { %v4590_v24 = vpop.f32.mrf.mxu1 }
 0x5d8   :  { %4702 = vst [vmem:[%s8089_s5 + $0x1a8] sm:$0xff] %v4596_v12  ;;  %v4591_v57 = vadd.f32 %v7936_v4, %v4590_v24 }
 0x5da   :  { %4701 = vst [vmem:[%s8089_s5 + $0x1a0] sm:$0xff] %v4591_v57 }
 0x5e9   :  { %v5182_v6 = vpop.f32.mrf.mxu1 }
 0x5ea   :  { %v4606_v25 = vadd.f32 %v7936_v4, %v5182_v6 }
 0x5eb   :  { %v4600_v37 = vpop.f32.mrf.mxu1 }
 0x5ec   :  { %4704 = vst [vmem:[%s8089_s5 + $0x1b8] sm:$0xff] %v4606_v25  ;;  %v4601_v56 = vadd.f32 %v7936_v4, %v4600_v37 }
 0x5ee   :  { %4703 = vst [vmem:[%s8089_s5 + $0x1b0] sm:$0xff] %v4601_v56 }
 0x5fd   :  { %v5185_v23 = vpop.f32.mrf.mxu1 }
 0x5fe   :  { %v4616_v9 = vadd.f32 %v7936_v4, %v5185_v23 }
 0x5ff   :  { %v4610_v29 = vpop.f32.mrf.mxu1 }
 0x600   :  { %4706 = vst [vmem:[%s8089_s5 + $0x1c8] sm:$0xff] %v4616_v9  ;;  %v4611_v33 = vadd.f32 %v7936_v4, %v4610_v29 }
 0x602   :  { %4705 = vst [vmem:[%s8089_s5 + $0x1c0] sm:$0xff] %v4611_v33 }
 0x611   :  { %v5188_v7 = vpop.f32.mrf.mxu1 }
 0x612   :  { %v4626_v27 = vadd.f32 %v7936_v4, %v5188_v7 }
 0x613   :  { %v4620_v52 = vpop.f32.mrf.mxu1 }
 0x614   :  { %4708 = vst [vmem:[%s8089_s5 + $0x1d8] sm:$0xff] %v4626_v27  ;;  %v4621_v54 = vadd.f32 %v7936_v4, %v4620_v52 }
 0x616   :  { %4707 = vst [vmem:[%s8089_s5 + $0x1d0] sm:$0xff] %v4621_v54 }
 0x625   :  { %v5191_v30 = vpop.f32.mrf.mxu1 }
 0x626   :  { %v4636_v45 = vadd.f32 %v7936_v4, %v5191_v30 }
 0x627   :  { %v4630_v0 = vpop.f32.mrf.mxu1 }
 0x628   :  { %4710 = vst [vmem:[%s8089_s5 + $0x1e8] sm:$0xff] %v4636_v45  ;;  %v4631_v20 = vadd.f32 %v7936_v4, %v4630_v0 }
 0x62a   :  { %4709 = vst [vmem:[%s8089_s5 + $0x1e0] sm:$0xff] %v4631_v20 }
 0x637   :  { %v5194_v18 = vpop.f32.mrf.mxu1 }
 0x638   :  { %v4646_v3 = vadd.f32 %v7936_v4, %v5194_v18 }
 0x639   :  { %v4640_v55 = vpop.f32.mrf.mxu1 }
 0x63a   :  { %4712 = vst [vmem:[%s8089_s5 + $0x1f8] sm:$0xff] %v4646_v3  ;;  %v4641_v17 = vadd.f32 %v7936_v4, %v4640_v55 }
 0x63c   :  { %4711 = vst [vmem:[%s8089_s5 + $0x1f0] sm:$0xff] %v4641_v17 }

</bundles_post_ra>
